<compile_context>
chip_gen: v7x
topology: tpu7x:2x2x1
jax: 0.10.0
libtpu: 0.0.40
codegen_flags: <defaults>
</compile_context>

<pallas_src>
import jax
import jax.numpy as jnp
from jax import lax
from jax.experimental import pallas as pl
from jax.experimental.pallas import tpu as pltpu


# --------------------------------------------------------------------------
# Pallas kernels
# --------------------------------------------------------------------------
def _conv_relu_pool_kernel(p_ref, w_ref, b_ref, o_ref):
    # p_ref: (P=4, rows, CKKp) bf16  -- 4 pool phases, rows = samples*out_spatial
    # w_ref: (CKKp, Cout) bf16, b_ref: (1, Cout) f32, o_ref: (rows, Cout) f32
    n_phase, rows, ckk = p_ref.shape
    # Single MXU push over all phases (rows % 16 == 0, ckk % 128 == 0 -> the
    # leading-dim collapse is a pure tile re-index).
    z = jnp.dot(p_ref[...].reshape(n_phase * rows, ckk), w_ref[...],
                preferred_element_type=jnp.float32)          # (P*rows, Cout) f32
    # 2x2 max-pool == max over the 4 phase row-blocks (offsets multiple of 8).
    m = z[0:rows]
    for ph in range(1, n_phase):
        m = jnp.maximum(m, z[ph * rows:(ph + 1) * rows])
    # Bias + ReLU once, after the max.
    o_ref[...] = jnp.maximum(m + b_ref[...], 0.0)


def conv_relu_pool(patches, w, b, *, block_rows):
    # patches: (P, R_total, CKKp); w: (CKKp, Cout); b: (1, Cout) -> (R_total, Cout)
    n_phase, total_rows, ckk = patches.shape
    cout = w.shape[1]
    return pl.pallas_call(
        _conv_relu_pool_kernel,
        out_shape=jax.ShapeDtypeStruct((total_rows, cout), jnp.float32),
        grid=(total_rows // block_rows,),
        in_specs=[
            pl.BlockSpec((n_phase, block_rows, ckk), lambda i: (0, i, 0)),
            pl.BlockSpec((ckk, cout), lambda i: (0, 0)),   # weight stays resident
            pl.BlockSpec((1, cout), lambda i: (0, 0)),
        ],
        out_specs=pl.BlockSpec((block_rows, cout), lambda i: (i, 0)),
        compiler_params=pltpu.CompilerParams(dimension_semantics=("parallel",)),
    )(patches, w, b)


def _mlp_kernel(x_ref, w1_ref, b1_ref, w2_ref, b2_ref, w3_ref, b3_ref, o_ref):
    h = jnp.maximum(
        jnp.dot(x_ref[...], w1_ref[...], preferred_element_type=jnp.float32)
        + b1_ref[...], 0.0)
    h = jnp.maximum(
        jnp.dot(h, w2_ref[...], preferred_element_type=jnp.float32)
        + b2_ref[...], 0.0)
    o_ref[...] = (jnp.dot(h, w3_ref[...], preferred_element_type=jnp.float32)
                  + b3_ref[...])


def mlp(x, w1, b1, w2, b2, w3, b3, *, block_n):
    # x: (N_pad, 400) f32 ; all weights padded to 128-wide (lane-dense output).
    n, d = x.shape
    out_d = w3.shape[1]
    const = lambda i: (0, 0)
    return pl.pallas_call(
        _mlp_kernel,
        out_shape=jax.ShapeDtypeStruct((n, out_d), jnp.float32),
        grid=(n // block_n,),
        in_specs=[
            pl.BlockSpec((block_n, d), lambda i: (i, 0)),
            pl.BlockSpec(w1.shape, const), pl.BlockSpec(b1.shape, const),
            pl.BlockSpec(w2.shape, const), pl.BlockSpec(b2.shape, const),
            pl.BlockSpec(w3.shape, const), pl.BlockSpec(b3.shape, const),
        ],
        out_specs=pl.BlockSpec((block_n, out_d), lambda i: (i, 0)),
        compiler_params=pltpu.CompilerParams(dimension_semantics=("parallel",)),
    )(x, w1, b1, w2, b2, w3, b3)


# --------------------------------------------------------------------------
# JAX glue: im2col (+ 2x2-pool phase decomposition) from static strided slices
# --------------------------------------------------------------------------
def _pooled_patches(x_nhwc, K, pool, pad_to):
    """-> (pool*pool, N*Hp*Wp, pad_to); feature order (dy, dx, c), rows (n, p, q)."""
    N, H, W, C = x_nhwc.shape
    Hp = (H - K + 1) // pool
    Wp = (W - K + 1) // pool
    S = Hp * Wp
    phases = []
    for a in range(pool):
        for b in range(pool):
            feats = []
            for dy in range(K):
                for dx in range(K):
                    r0, c0 = a + dy, b + dx
                    feats.append(
                        x_nhwc[:, r0:r0 + pool * (Hp - 1) + 1:pool,
                               c0:c0 + pool * (Wp - 1) + 1:pool, :])  # (N,Hp,Wp,C)
            ph = jnp.concatenate(feats, axis=-1)                      # (N,Hp,Wp,K*K*C)
            phases.append(ph.reshape(N, S, K * K * C))
    p = jnp.stack(phases, axis=0).reshape(pool * pool, N * S, K * K * C)
    if pad_to > K * K * C:
        p = jnp.pad(p, ((0, 0), (0, 0), (0, pad_to - K * K * C)))
    return p


def _prep_conv_w(w, pad_to):
    # (Cout, Cin, K, K) -> (pad_to, Cout) bf16, feature order (dy, dx, c)
    cout, cin, K, _ = w.shape
    m = jnp.transpose(w, (2, 3, 1, 0)).reshape(K * K * cin, cout)
    m = jnp.pad(m, ((0, pad_to - K * K * cin), (0, 0)))
    return m.astype(jnp.bfloat16)


def _pad2(m, rows, cols):
    return jnp.pad(m, ((0, rows - m.shape[0]), (0, cols - m.shape[1])))


# --------------------------------------------------------------------------
# Full forward pass
# --------------------------------------------------------------------------
def net_forward(x, params):
    (w1, b1, w2, b2, wf1, bf1, wf2, bf2, wf3, bf3) = params
    n = x.shape[0]

    # Pad batch to a multiple of 16 so every bf16 row block is (16,128)-tile
    # aligned; padded rows are dropped at the end.
    n_pad = -(-n // 16) * 16
    if n_pad != n:
        x = jnp.pad(x, ((0, n_pad - n), (0, 0), (0, 0), (0, 0)))

    # Samples per grid step (row blocks stay small enough for the default
    # scoped VMEM on v5e/v6e/v7x, double-buffered):
    blk1 = 4                                           # conv1: 4*4*196 rows/step
    blk2 = 16                                          # conv2: 16*4*25 rows/step
    blkm = max(c for c in (128, 64, 32, 16) if n_pad % c == 0)

    x_nhwc = jnp.transpose(x, (0, 2, 3, 1)).astype(jnp.bfloat16)   # (Np,32,32,3)

    # conv1 (3->6, 5x5) + relu + 2x2 maxpool : 32x32 -> 14x14
    p1 = _pooled_patches(x_nhwc, K=5, pool=2, pad_to=128)          # (4, Np*196, 128)
    w1m = _prep_conv_w(w1, pad_to=128)                              # (128, 6) bf16
    h1 = conv_relu_pool(p1, w1m, b1.reshape(1, -1),
                        block_rows=blk1 * 196)                      # (Np*196, 6) f32

    # conv2 (6->16, 5x5) + relu + 2x2 maxpool : 14x14 -> 5x5
    h1_img = h1.reshape(n_pad, 14, 14, 6).astype(jnp.bfloat16)      # free reshape
    p2 = _pooled_patches(h1_img, K=5, pool=2, pad_to=256)           # (4, Np*25, 256)
    w2m = _prep_conv_w(w2, pad_to=256)                               # (256, 16) bf16
    h2 = conv_relu_pool(p2, w2m, b2.reshape(1, -1),
                        block_rows=blk2 * 25)                        # (Np*25, 16) f32

    # flatten: h2 rows are (n, h, w) with channels on lanes -> row-major reshape
    # gives (h, w, c) feature order; fc1's columns are permuted once to match.
    flat = h2.reshape(n_pad, 400)

    wf1p = _pad2(jnp.transpose(wf1.reshape(120, 16, 25), (2, 1, 0)).reshape(400, 120),
                 400, 128)                                           # (400, 128)
    wf2p = _pad2(wf2.T, 128, 128)                                    # (128, 128)
    wf3p = _pad2(wf3.T, 128, 128)                                    # (128, 128)
    bf1p = jnp.pad(bf1, (0, 128 - bf1.shape[0])).reshape(1, 128)
    bf2p = jnp.pad(bf2, (0, 128 - bf2.shape[0])).reshape(1, 128)
    bf3p = jnp.pad(bf3, (0, 128 - bf3.shape[0])).reshape(1, 128)

    out = mlp(flat, wf1p, bf1p, wf2p, bf2p, wf3p, bf3p, block_n=blkm)  # (Np, 128)
    return out[:n, :10]


# --------------------------------------------------------------------------
# Pure-JAX reference (correctness check only)
# --------------------------------------------------------------------------
def net_reference(x, params):
    (w1, b1, w2, b2, wf1, bf1, wf2, bf2, wf3, bf3) = params
    dn = ("NCHW", "OIHW", "NCHW")
    y = lax.conv_general_dilated(x, w1, (1, 1), "VALID", dimension_numbers=dn)
    y = jax.nn.relu(y + b1[None, :, None, None])
    y = lax.reduce_window(y, -jnp.inf, lax.max, (1, 1, 2, 2), (1, 1, 2, 2), "VALID")
    y = lax.conv_general_dilated(y, w2, (1, 1), "VALID", dimension_numbers=dn)
    y = jax.nn.relu(y + b2[None, :, None, None])
    y = lax.reduce_window(y, -jnp.inf, lax.max, (1, 1, 2, 2), (1, 1, 2, 2), "VALID")
    y = y.reshape(y.shape[0], -1)
    y = jax.nn.relu(y @ wf1.T + bf1)
    y = jax.nn.relu(y @ wf2.T + bf2)
    return y @ wf3.T + bf3


if __name__ == "__main__":
    key = jax.random.PRNGKey(0)
    kx, *kp = jax.random.split(key, 11)
    x = jax.random.normal(kx, (2, 3, 32, 32), jnp.float32)

    def u(k, shape, fan_in):
        bound = 1.0 / (fan_in ** 0.5)
        return jax.random.uniform(k, shape, jnp.float32, -bound, bound)

    # deterministic synthetic parameters, PyTorch shapes
    params = (
        u(kp[0], (6, 3, 5, 5), 75),    u(kp[1], (6,), 75),
        u(kp[2], (16, 6, 5, 5), 150),  u(kp[3], (16,), 150),
        u(kp[4], (120, 400), 400),     u(kp[5], (120,), 400),
        u(kp[6], (84, 120), 120),      u(kp[7], (84,), 120),
        u(kp[8], (10, 84), 84),        u(kp[9], (10,), 84),
    )

    out = jax.block_until_ready(jax.jit(net_forward)(x, params))
    assert out.shape == (2, 10)

    ref = net_reference(x, params)
    max_diff = float(jnp.max(jnp.abs(out - ref)))
    # tolerance covers the bf16 MXU operands (accumulation & elementwise are f32)
    assert jnp.allclose(out, ref, rtol=2.5e-2, atol=2.5e-2), f"max diff {max_diff}"

    print("KERNEL_OK")
</pallas_src>

<mosaic_0001>
module attributes {stable_mosaic.version = 11 : i64} {
  func.func @_conv_relu_pool_kernel(%arg0: i32, %arg1: memref<4x784x128xbf16, #tpu.memory_space<vmem>>, %arg2: memref<128x6xbf16, #tpu.memory_space<vmem>>, %arg3: memref<1x6xf32, #tpu.memory_space<vmem>>, %arg4: memref<784x6xf32, #tpu.memory_space<vmem>>) attributes {dimension_semantics = [#tpu.dimension_semantics<parallel>], iteration_bounds = array<i64: 4>, scalar_prefetch = 0 : i64, scratch_operands = 0 : i64, tpu.core_type = #tpu.core_type<tc>, window_params = [{transform_indices = @transform_0, window_bounds = array<i64: 4, 784, 128>}, {pipeline_mode = #tpu.pipeline_mode<synchronous>, transform_indices = @transform_1, window_bounds = array<i64: 128, 6>}, {pipeline_mode = #tpu.pipeline_mode<synchronous>, transform_indices = @transform_2, window_bounds = array<i64: 1, 6>}, {transform_indices = @transform_3, window_bounds = array<i64: 784, 6>}]} {
    %c0 = arith.constant 0 : index
    %c0_0 = arith.constant 0 : index
    %c0_1 = arith.constant 0 : index
    %0 = vector.load %arg1[%c0, %c0_0, %c0_1] : memref<4x784x128xbf16, #tpu.memory_space<vmem>>, vector<4x784x128xbf16>
    %1 = vector.shape_cast %0 : vector<4x784x128xbf16> to vector<3136x128xbf16>
    %c0_2 = arith.constant 0 : index
    %c0_3 = arith.constant 0 : index
    %2 = vector.load %arg2[%c0_2, %c0_3] : memref<128x6xbf16, #tpu.memory_space<vmem>>, vector<128x6xbf16>
    %cst = arith.constant dense<0.000000e+00> : vector<3136x6xf32>
    %3 = tpu.matmul %1, %2, %cst {dimension_numbers = #tpu.dot_dimension_numbers<[1], [0], [0], [1], [0, 0, 1, 1], [], []>} : vector<3136x128xbf16>, vector<128x6xbf16>, vector<3136x6xf32> -> vector<3136x6xf32>
    %4 = vector.extract_strided_slice %3 {offsets = [0, 0], sizes = [784, 6], strides = [1, 1]} : vector<3136x6xf32> to vector<784x6xf32>
    %5 = vector.extract_strided_slice %3 {offsets = [784, 0], sizes = [784, 6], strides = [1, 1]} : vector<3136x6xf32> to vector<784x6xf32>
    %6 = arith.maximumf %4, %5 : vector<784x6xf32>
    %7 = vector.extract_strided_slice %3 {offsets = [1568, 0], sizes = [784, 6], strides = [1, 1]} : vector<3136x6xf32> to vector<784x6xf32>
    %8 = arith.maximumf %6, %7 : vector<784x6xf32>
    %9 = vector.extract_strided_slice %3 {offsets = [2352, 0], sizes = [784, 6], strides = [1, 1]} : vector<3136x6xf32> to vector<784x6xf32>
    %10 = arith.maximumf %8, %9 : vector<784x6xf32>
    %c0_4 = arith.constant 0 : index
    %c0_5 = arith.constant 0 : index
    %11 = vector.load %arg3[%c0_4, %c0_5] : memref<1x6xf32, #tpu.memory_space<vmem>>, vector<1x6xf32>
    %12 = vector.broadcast %11 : vector<1x6xf32> to vector<784x6xf32>
    %13 = arith.addf %10, %12 : vector<784x6xf32>
    %cst_6 = arith.constant 0.000000e+00 : f32
    %14 = vector.broadcast %cst_6 : f32 to vector<784x6xf32>
    %15 = arith.maximumf %13, %14 : vector<784x6xf32>
    %c0_7 = arith.constant 0 : index
    %c0_8 = arith.constant 0 : index
    %16 = vector.load %arg4[%c0_7, %c0_8] : memref<784x6xf32, #tpu.memory_space<vmem>>, vector<784x6xf32>
    tpu.vector_store %arg4[%c0_7, %c0_8], %15 {strides = array<i32>} : memref<784x6xf32, #tpu.memory_space<vmem>>, vector<784x6xf32>,
    return
  }
  func.func @transform_0(%arg0: i32) -> (i32, i32, i32) {
    %c0_i32 = arith.constant 0 : i32
    %c0_i32_0 = arith.constant 0 : i32
    %c0_i32_1 = arith.constant 0 : i32
    return %c0_i32, %arg0, %c0_i32_0 : i32, i32, i32
  }
  func.func @transform_1(%arg0: i32) -> (i32, i32) {
    %c0_i32 = arith.constant 0 : i32
    %c0_i32_0 = arith.constant 0 : i32
    %c0_i32_1 = arith.constant 0 : i32
    return %c0_i32, %c0_i32_0 : i32, i32
  }
  func.func @transform_2(%arg0: i32) -> (i32, i32) {
    %c0_i32 = arith.constant 0 : i32
    %c0_i32_0 = arith.constant 0 : i32
    %c0_i32_1 = arith.constant 0 : i32
    return %c0_i32, %c0_i32_0 : i32, i32
  }
  func.func @transform_3(%arg0: i32) -> (i32, i32) {
    %c0_i32 = arith.constant 0 : i32
    %c0_i32_0 = arith.constant 0 : i32
    return %arg0, %c0_i32 : i32, i32
  }
}

module attributes {stable_mosaic.version = 11 : i64} {
  func.func @_conv_relu_pool_kernel(%arg0: i32, %arg1: memref<4x400x256xbf16, #tpu.memory_space<vmem>>, %arg2: memref<256x16xbf16, #tpu.memory_space<vmem>>, %arg3: memref<1x16xf32, #tpu.memory_space<vmem>>, %arg4: memref<400x16xf32, #tpu.memory_space<vmem>>) attributes {dimension_semantics = [#tpu.dimension_semantics<parallel>], iteration_bounds = array<i64: 1>, scalar_prefetch = 0 : i64, scratch_operands = 0 : i64, tpu.core_type = #tpu.core_type<tc>, window_params = [{transform_indices = @transform_0, window_bounds = array<i64: 4, 400, 256>}, {pipeline_mode = #tpu.pipeline_mode<synchronous>, transform_indices = @transform_1, window_bounds = array<i64: 256, 16>}, {pipeline_mode = #tpu.pipeline_mode<synchronous>, transform_indices = @transform_2, window_bounds = array<i64: 1, 16>}, {transform_indices = @transform_3, window_bounds = array<i64: 400, 16>}]} {
    %c0 = arith.constant 0 : index
    %c0_0 = arith.constant 0 : index
    %c0_1 = arith.constant 0 : index
    %0 = vector.load %arg1[%c0, %c0_0, %c0_1] : memref<4x400x256xbf16, #tpu.memory_space<vmem>>, vector<4x400x256xbf16>
    %1 = vector.shape_cast %0 : vector<4x400x256xbf16> to vector<1600x256xbf16>
    %c0_2 = arith.constant 0 : index
    %c0_3 = arith.constant 0 : index
    %2 = vector.load %arg2[%c0_2, %c0_3] : memref<256x16xbf16, #tpu.memory_space<vmem>>, vector<256x16xbf16>
    %cst = arith.constant dense<0.000000e+00> : vector<1600x16xf32>
    %3 = tpu.matmul %1, %2, %cst {dimension_numbers = #tpu.dot_dimension_numbers<[1], [0], [0], [1], [0, 0, 1, 1], [], []>} : vector<1600x256xbf16>, vector<256x16xbf16>, vector<1600x16xf32> -> vector<1600x16xf32>
    %4 = vector.extract_strided_slice %3 {offsets = [0, 0], sizes = [400, 16], strides = [1, 1]} : vector<1600x16xf32> to vector<400x16xf32>
    %5 = vector.extract_strided_slice %3 {offsets = [400, 0], sizes = [400, 16], strides = [1, 1]} : vector<1600x16xf32> to vector<400x16xf32>
    %6 = arith.maximumf %4, %5 : vector<400x16xf32>
    %7 = vector.extract_strided_slice %3 {offsets = [800, 0], sizes = [400, 16], strides = [1, 1]} : vector<1600x16xf32> to vector<400x16xf32>
    %8 = arith.maximumf %6, %7 : vector<400x16xf32>
    %9 = vector.extract_strided_slice %3 {offsets = [1200, 0], sizes = [400, 16], strides = [1, 1]} : vector<1600x16xf32> to vector<400x16xf32>
    %10 = arith.maximumf %8, %9 : vector<400x16xf32>
    %c0_4 = arith.constant 0 : index
    %c0_5 = arith.constant 0 : index
    %11 = vector.load %arg3[%c0_4, %c0_5] : memref<1x16xf32, #tpu.memory_space<vmem>>, vector<1x16xf32>
    %12 = vector.broadcast %11 : vector<1x16xf32> to vector<400x16xf32>
    %13 = arith.addf %10, %12 : vector<400x16xf32>
    %cst_6 = arith.constant 0.000000e+00 : f32
    %14 = vector.broadcast %cst_6 : f32 to vector<400x16xf32>
    %15 = arith.maximumf %13, %14 : vector<400x16xf32>
    %c0_7 = arith.constant 0 : index
    %c0_8 = arith.constant 0 : index
    %16 = vector.load %arg4[%c0_7, %c0_8] : memref<400x16xf32, #tpu.memory_space<vmem>>, vector<400x16xf32>
    tpu.vector_store %arg4[%c0_7, %c0_8], %15 {strides = array<i32>} : memref<400x16xf32, #tpu.memory_space<vmem>>, vector<400x16xf32>,
    return
  }
  func.func @transform_0(%arg0: i32) -> (i32, i32, i32) {
    %c0_i32 = arith.constant 0 : i32
    %c0_i32_0 = arith.constant 0 : i32
    %c0_i32_1 = arith.constant 0 : i32
    return %c0_i32, %arg0, %c0_i32_0 : i32, i32, i32
  }
  func.func @transform_1(%arg0: i32) -> (i32, i32) {
    %c0_i32 = arith.constant 0 : i32
    %c0_i32_0 = arith.constant 0 : i32
    %c0_i32_1 = arith.constant 0 : i32
    return %c0_i32, %c0_i32_0 : i32, i32
  }
  func.func @transform_2(%arg0: i32) -> (i32, i32) {
    %c0_i32 = arith.constant 0 : i32
    %c0_i32_0 = arith.constant 0 : i32
    %c0_i32_1 = arith.constant 0 : i32
    return %c0_i32, %c0_i32_0 : i32, i32
  }
  func.func @transform_3(%arg0: i32) -> (i32, i32) {
    %c0_i32 = arith.constant 0 : i32
    %c0_i32_0 = arith.constant 0 : i32
    return %arg0, %c0_i32 : i32, i32
  }
}

module attributes {stable_mosaic.version = 11 : i64} {
  func.func @_mlp_kernel(%arg0: i32, %arg1: memref<16x400xf32, #tpu.memory_space<vmem>>, %arg2: memref<400x128xf32, #tpu.memory_space<vmem>>, %arg3: memref<1x128xf32, #tpu.memory_space<vmem>>, %arg4: memref<128x128xf32, #tpu.memory_space<vmem>>, %arg5: memref<1x128xf32, #tpu.memory_space<vmem>>, %arg6: memref<128x128xf32, #tpu.memory_space<vmem>>, %arg7: memref<1x128xf32, #tpu.memory_space<vmem>>, %arg8: memref<16x128xf32, #tpu.memory_space<vmem>>) attributes {dimension_semantics = [#tpu.dimension_semantics<parallel>], iteration_bounds = array<i64: 1>, scalar_prefetch = 0 : i64, scratch_operands = 0 : i64, tpu.core_type = #tpu.core_type<tc>, window_params = [{transform_indices = @transform_0, window_bounds = array<i64: 16, 400>}, {pipeline_mode = #tpu.pipeline_mode<synchronous>, transform_indices = @transform_1, window_bounds = array<i64: 400, 128>}, {pipeline_mode = #tpu.pipeline_mode<synchronous>, transform_indices = @transform_2, window_bounds = array<i64: 1, 128>}, {pipeline_mode = #tpu.pipeline_mode<synchronous>, transform_indices = @transform_3, window_bounds = array<i64: 128, 128>}, {pipeline_mode = #tpu.pipeline_mode<synchronous>, transform_indices = @transform_4, window_bounds = array<i64: 1, 128>}, {pipeline_mode = #tpu.pipeline_mode<synchronous>, transform_indices = @transform_5, window_bounds = array<i64: 128, 128>}, {pipeline_mode = #tpu.pipeline_mode<synchronous>, transform_indices = @transform_6, window_bounds = array<i64: 1, 128>}, {transform_indices = @transform_7, window_bounds = array<i64: 16, 128>}]} {
    %c0 = arith.constant 0 : index
    %c0_0 = arith.constant 0 : index
    %0 = vector.load %arg1[%c0, %c0_0] : memref<16x400xf32, #tpu.memory_space<vmem>>, vector<16x400xf32>
    %c0_1 = arith.constant 0 : index
    %c0_2 = arith.constant 0 : index
    %1 = vector.load %arg2[%c0_1, %c0_2] : memref<400x128xf32, #tpu.memory_space<vmem>>, vector<400x128xf32>
    %cst = arith.constant dense<0.000000e+00> : vector<16x128xf32>
    %2 = tpu.matmul %0, %1, %cst {dimension_numbers = #tpu.dot_dimension_numbers<[1], [0], [0], [1], [0, 0, 1, 1], [], []>} : vector<16x400xf32>, vector<400x128xf32>, vector<16x128xf32> -> vector<16x128xf32>
    %c0_3 = arith.constant 0 : index
    %c0_4 = arith.constant 0 : index
    %3 = vector.load %arg3[%c0_3, %c0_4] : memref<1x128xf32, #tpu.memory_space<vmem>>, vector<1x128xf32>
    %4 = vector.broadcast %3 : vector<1x128xf32> to vector<16x128xf32>
    %5 = arith.addf %2, %4 : vector<16x128xf32>
    %cst_5 = arith.constant 0.000000e+00 : f32
    %6 = vector.broadcast %cst_5 : f32 to vector<16x128xf32>
    %7 = arith.maximumf %5, %6 : vector<16x128xf32>
    %c0_6 = arith.constant 0 : index
    %c0_7 = arith.constant 0 : index
    %8 = vector.load %arg4[%c0_6, %c0_7] : memref<128x128xf32, #tpu.memory_space<vmem>>, vector<128x128xf32>
    %cst_8 = arith.constant dense<0.000000e+00> : vector<16x128xf32>
    %9 = tpu.matmul %7, %8, %cst_8 {dimension_numbers = #tpu.dot_dimension_numbers<[1], [0], [0], [1], [0, 0, 1, 1], [], []>} : vector<16x128xf32>, vector<128x128xf32>, vector<16x128xf32> -> vector<16x128xf32>
    %c0_9 = arith.constant 0 : index
    %c0_10 = arith.constant 0 : index
    %10 = vector.load %arg5[%c0_9, %c0_10] : memref<1x128xf32, #tpu.memory_space<vmem>>, vector<1x128xf32>
    %11 = vector.broadcast %10 : vector<1x128xf32> to vector<16x128xf32>
    %12 = arith.addf %9, %11 : vector<16x128xf32>
    %cst_11 = arith.constant 0.000000e+00 : f32
    %13 = vector.broadcast %cst_11 : f32 to vector<16x128xf32>
    %14 = arith.maximumf %12, %13 : vector<16x128xf32>
    %c0_12 = arith.constant 0 : index
    %c0_13 = arith.constant 0 : index
    %15 = vector.load %arg6[%c0_12, %c0_13] : memref<128x128xf32, #tpu.memory_space<vmem>>, vector<128x128xf32>
    %cst_14 = arith.constant dense<0.000000e+00> : vector<16x128xf32>
    %16 = tpu.matmul %14, %15, %cst_14 {dimension_numbers = #tpu.dot_dimension_numbers<[1], [0], [0], [1], [0, 0, 1, 1], [], []>} : vector<16x128xf32>, vector<128x128xf32>, vector<16x128xf32> -> vector<16x128xf32>
    %c0_15 = arith.constant 0 : index
    %c0_16 = arith.constant 0 : index
    %17 = vector.load %arg7[%c0_15, %c0_16] : memref<1x128xf32, #tpu.memory_space<vmem>>, vector<1x128xf32>
    %18 = vector.broadcast %17 : vector<1x128xf32> to vector<16x128xf32>
    %19 = arith.addf %16, %18 : vector<16x128xf32>
    %c0_17 = arith.constant 0 : index
    %c0_18 = arith.constant 0 : index
    %20 = vector.load %arg8[%c0_17, %c0_18] : memref<16x128xf32, #tpu.memory_space<vmem>>, vector<16x128xf32>
    tpu.vector_store %arg8[%c0_17, %c0_18], %19 {strides = array<i32>} : memref<16x128xf32, #tpu.memory_space<vmem>>, vector<16x128xf32>,
    return
  }
  func.func @transform_0(%arg0: i32) -> (i32, i32) {
    %c0_i32 = arith.constant 0 : i32
    %c0_i32_0 = arith.constant 0 : i32
    return %arg0, %c0_i32 : i32, i32
  }
  func.func @transform_1(%arg0: i32) -> (i32, i32) {
    %c0_i32 = arith.constant 0 : i32
    %c0_i32_0 = arith.constant 0 : i32
    %c0_i32_1 = arith.constant 0 : i32
    return %c0_i32, %c0_i32_0 : i32, i32
  }
  func.func @transform_2(%arg0: i32) -> (i32, i32) {
    %c0_i32 = arith.constant 0 : i32
    %c0_i32_0 = arith.constant 0 : i32
    %c0_i32_1 = arith.constant 0 : i32
    return %c0_i32, %c0_i32_0 : i32, i32
  }
  func.func @transform_3(%arg0: i32) -> (i32, i32) {
    %c0_i32 = arith.constant 0 : i32
    %c0_i32_0 = arith.constant 0 : i32
    %c0_i32_1 = arith.constant 0 : i32
    return %c0_i32, %c0_i32_0 : i32, i32
  }
  func.func @transform_4(%arg0: i32) -> (i32, i32) {
    %c0_i32 = arith.constant 0 : i32
    %c0_i32_0 = arith.constant 0 : i32
    %c0_i32_1 = arith.constant 0 : i32
    return %c0_i32, %c0_i32_0 : i32, i32
  }
  func.func @transform_5(%arg0: i32) -> (i32, i32) {
    %c0_i32 = arith.constant 0 : i32
    %c0_i32_0 = arith.constant 0 : i32
    %c0_i32_1 = arith.constant 0 : i32
    return %c0_i32, %c0_i32_0 : i32, i32
  }
  func.func @transform_6(%arg0: i32) -> (i32, i32) {
    %c0_i32 = arith.constant 0 : i32
    %c0_i32_0 = arith.constant 0 : i32
    %c0_i32_1 = arith.constant 0 : i32
    return %c0_i32, %c0_i32_0 : i32, i32
  }
  func.func @transform_7(%arg0: i32) -> (i32, i32) {
    %c0_i32 = arith.constant 0 : i32
    %c0_i32_0 = arith.constant 0 : i32
    return %arg0, %c0_i32 : i32, i32
  }
}

</mosaic_0001>

<bundles_post_ra>
// kernel: net_forward.3
= control target key start
LH: loop header
LB: loop body
LE: loop exit
PB: predicated region body
PF: predicated region fallthrough
CT: control target
= control target key end

     0   :  { %s6789_s12 = smov 0   ;;  %s6791_s13 = smov 0   ;;  %s8353_s0 = inlined_call_operand.vmem [shape: bf16[4,3136,128], index: 0, kind: input, shape index: {}]   ;;  %s8354_s1 = inlined_call_operand.vmem [shape: bf16[128,6], index: 1, kind: input, shape index: {}]   ;;  %s8355_s2 = inlined_call_operand.vmem [shape: f32[1,6], index: 2, kind: input, shape index: {}]   ;;  %s8356_s3 = inlined_call_operand.vmem [shape: f32[3136,6], index: 3, kind: output, shape index: {}]  }
   0x1   :  { %s6793_s14 = smov 0  }
   0x2 LB: > { %s5671_s15 = sadd.s32 4294967295, %s6767_s14   ;;  %s6806_s16 = sadd.s32 1, %s6767_s14   ;;  %s6767_s14 = sphi %s6793_s14, %s8651_s14   ;;  %s6763_s13 = sphi %s6791_s13, %s8650_s13   ;;  %s6759_s12 = sphi %s6789_s12, %s8649_s12  }
   0x3   : > { %s17_s17 = ssub.s32 %s6767_s14, %s6806_s16  ;;  %s20_s18 = sadd.s32 1, %s6763_s13 }
   0x4   : > { %p18_p0 = scmp.eq.s32.totalorder %s17_s17, 0  ;;  %p27_p1 = scmp.ne.s32.totalorder %s6763_s13, %s6759_s12 }
   0x5   : > { %p28_p2 = scmp.eq.s32.totalorder %s6767_s14, 0  ;;  %p5674_p4 = scmp.ge.s32.totalorder %s6767_s14, 4 }
   0x6   : > { %s6815_s19 = scalar_select %p18_p0, %s6763_s13, %s20_s18  }
   0x7   : > { %p29_p3 = por %p28_p2, %p27_p1  ;;  %127 = sbr.rel (%p5674_p4) target bundleno = 117 (0x75), region = 24 }
   0xe   : > { %130 = sbr.rel (!%p29_p3) target bundleno = 117 (0x75), region = 28  ;;  %s132_s20 = sand.u32 (%p29_p3), 1, %s6763_s13  }
   0xf   : > { %s5885_s21 = smul.u32 (%p29_p3), 392, %s6767_s14 }
  0x10   : > { %s6514_s22 = smul.u32 (%p29_p3), 1568, %s132_s20 }
  0x11   : > { %s6823_s25 = scalar_lea.vmem (%p29_p3), %s8353_s0, %s5885_s21 }
  0x12   : > { %v153_v0 = vld [vmem:[%s6823_s25] sm:$0xff] (%p29_p3)   ;;  %v157_v1 = vld [vmem:[%s6823_s25 + $0x8] sm:$0xff] (%p29_p3)   ;;  %v161_v2 = vld [vmem:[%s6823_s25 + $0x10] sm:$0xff] (%p29_p3)   ;;  %s6828_s26 = scalar_lea.vmem (%p29_p3), [#allocation2], %s6514_s22 }
  0x13   : > { %154 = vst [vmem:[%s6828_s26] sm:$0xff] (%p29_p3), %v153_v0   ;;  %158 = vst [vmem:[%s6828_s26 + $0x8] sm:$0xff] (%p29_p3), %v157_v1   ;;  %v165_v3 = vld [vmem:[%s6823_s25 + $0x18] sm:$0xff] (%p29_p3)   ;;  %v169_v4 = vld [vmem:[%s6823_s25 + $0x20] sm:$0xff] (%p29_p3)  }
  0x14   : > { %162 = vst [vmem:[%s6828_s26 + $0x10] sm:$0xff] (%p29_p3), %v161_v2   ;;  %v173_v5 = vld [vmem:[%s6823_s25 + $0x28] sm:$0xff] (%p29_p3)   ;;  %166 = vst [vmem:[%s6828_s26 + $0x18] sm:$0xff] (%p29_p3), %v165_v3   ;;  %v177_v6 = vld [vmem:[%s6823_s25 + $0x30] sm:$0xff] (%p29_p3)  }
  0x15   : > { %170 = vst [vmem:[%s6828_s26 + $0x20] sm:$0xff] %v169_v4   ;;  %174 = vst [vmem:[%s6828_s26 + $0x28] sm:$0xff] %v173_v5   ;;  %v181_v7 = vld [vmem:[%s6823_s25 + $0x38] sm:$0xff]   ;;  %v185_v8 = vld [vmem:[%s6823_s25 + $0x40] sm:$0xff]  }
  0x16   : > { %178 = vst [vmem:[%s6828_s26 + $0x30] sm:$0xff] %v177_v6   ;;  %182 = vst [vmem:[%s6828_s26 + $0x38] sm:$0xff] %v181_v7   ;;  %v189_v9 = vld [vmem:[%s6823_s25 + $0x48] sm:$0xff]   ;;  %v193_v10 = vld [vmem:[%s6823_s25 + $0x50] sm:$0xff]  }
  0x17   : > { %186 = vst [vmem:[%s6828_s26 + $0x40] sm:$0xff] %v185_v8   ;;  %v197_v11 = vld [vmem:[%s6823_s25 + $0x58] sm:$0xff]   ;;  %190 = vst [vmem:[%s6828_s26 + $0x48] sm:$0xff] %v189_v9   ;;  %v201_v12 = vld [vmem:[%s6823_s25 + $0x60] sm:$0xff]  }
  0x18   : > { %194 = vst [vmem:[%s6828_s26 + $0x50] sm:$0xff] %v193_v10   ;;  %198 = vst [vmem:[%s6828_s26 + $0x58] sm:$0xff] %v197_v11   ;;  %v205_v13 = vld [vmem:[%s6823_s25 + $0x68] sm:$0xff]   ;;  %v209_v14 = vld [vmem:[%s6823_s25 + $0x70] sm:$0xff]  }
  0x19   : > { %202 = vst [vmem:[%s6828_s26 + $0x60] sm:$0xff] %v201_v12   ;;  %206 = vst [vmem:[%s6828_s26 + $0x68] sm:$0xff] %v205_v13   ;;  %v213_v15 = vld [vmem:[%s6823_s25 + $0x78] sm:$0xff]   ;;  %v217_v16 = vld [vmem:[%s6823_s25 + $0x80] sm:$0xff]  }
  0x1a   : > { %210 = vst [vmem:[%s6828_s26 + $0x70] sm:$0xff] %v209_v14   ;;  %v221_v17 = vld [vmem:[%s6823_s25 + $0x88] sm:$0xff]   ;;  %214 = vst [vmem:[%s6828_s26 + $0x78] sm:$0xff] %v213_v15   ;;  %v225_v18 = vld [vmem:[%s6823_s25 + $0x90] sm:$0xff]  }
  0x1b   : > { %218 = vst [vmem:[%s6828_s26 + $0x80] sm:$0xff] %v217_v16   ;;  %222 = vst [vmem:[%s6828_s26 + $0x88] sm:$0xff] %v221_v17   ;;  %v229_v19 = vld [vmem:[%s6823_s25 + $0x98] sm:$0xff]   ;;  %v233_v20 = vld [vmem:[%s6823_s25 + $0xa0] sm:$0xff]  }
  0x1c   : > { %226 = vst [vmem:[%s6828_s26 + $0x90] sm:$0xff] %v225_v18   ;;  %230 = vst [vmem:[%s6828_s26 + $0x98] sm:$0xff] %v229_v19   ;;  %v237_v21 = vld [vmem:[%s6823_s25 + $0xa8] sm:$0xff]   ;;  %v241_v22 = vld [vmem:[%s6823_s25 + $0xb0] sm:$0xff]  }
  0x1d   : > { %234 = vst [vmem:[%s6828_s26 + $0xa0] sm:$0xff] %v233_v20   ;;  %v245_v23 = vld [vmem:[%s6823_s25 + $0xb8] sm:$0xff]   ;;  %238 = vst [vmem:[%s6828_s26 + $0xa8] sm:$0xff] %v237_v21   ;;  %v249_v24 = vld [vmem:[%s6823_s25 + $0xc0] sm:$0xff]  }
  0x1e   : > { %242 = vst [vmem:[%s6828_s26 + $0xb0] sm:$0xff] %v241_v22   ;;  %246 = vst [vmem:[%s6828_s26 + $0xb8] sm:$0xff] %v245_v23   ;;  %v253_v25 = vld [vmem:[%s6823_s25 + $0xc8] sm:$0xff]   ;;  %v257_v26 = vld [vmem:[%s6823_s25 + $0xd0] sm:$0xff]  }
  0x1f   : > { %250 = vst [vmem:[%s6828_s26 + $0xc0] sm:$0xff] %v249_v24   ;;  %254 = vst [vmem:[%s6828_s26 + $0xc8] sm:$0xff] %v253_v25   ;;  %v261_v27 = vld [vmem:[%s6823_s25 + $0xd8] sm:$0xff]   ;;  %v265_v28 = vld [vmem:[%s6823_s25 + $0xe0] sm:$0xff]  }
  0x20   : > { %258 = vst [vmem:[%s6828_s26 + $0xd0] sm:$0xff] %v257_v26   ;;  %v269_v29 = vld [vmem:[%s6823_s25 + $0xe8] sm:$0xff]   ;;  %262 = vst [vmem:[%s6828_s26 + $0xd8] sm:$0xff] %v261_v27   ;;  %v273_v30 = vld [vmem:[%s6823_s25 + $0xf0] sm:$0xff]  }
  0x21   : > { %266 = vst [vmem:[%s6828_s26 + $0xe0] sm:$0xff] %v265_v28   ;;  %270 = vst [vmem:[%s6828_s26 + $0xe8] sm:$0xff] %v269_v29   ;;  %v277_v31 = vld [vmem:[%s6823_s25 + $0xf8] sm:$0xff]   ;;  %v281_v32 = vld [vmem:[%s6823_s25 + $0x100] sm:$0xff]  }
  0x22   : > { %274 = vst [vmem:[%s6828_s26 + $0xf0] sm:$0xff] %v273_v30   ;;  %278 = vst [vmem:[%s6828_s26 + $0xf8] sm:$0xff] %v277_v31   ;;  %v285_v33 = vld [vmem:[%s6823_s25 + $0x108] sm:$0xff]   ;;  %v289_v34 = vld [vmem:[%s6823_s25 + $0x110] sm:$0xff]  }
  0x23   : > { %282 = vst [vmem:[%s6828_s26 + $0x100] sm:$0xff] %v281_v32   ;;  %v293_v35 = vld [vmem:[%s6823_s25 + $0x118] sm:$0xff]   ;;  %286 = vst [vmem:[%s6828_s26 + $0x108] sm:$0xff] %v285_v33   ;;  %v297_v36 = vld [vmem:[%s6823_s25 + $0x120] sm:$0xff]  }
  0x24   : > { %290 = vst [vmem:[%s6828_s26 + $0x110] sm:$0xff] %v289_v34   ;;  %294 = vst [vmem:[%s6828_s26 + $0x118] sm:$0xff] %v293_v35   ;;  %v301_v37 = vld [vmem:[%s6823_s25 + $0x128] sm:$0xff]   ;;  %v305_v38 = vld [vmem:[%s6823_s25 + $0x130] sm:$0xff]  }
  0x25   : > { %298 = vst [vmem:[%s6828_s26 + $0x120] sm:$0xff] %v297_v36   ;;  %302 = vst [vmem:[%s6828_s26 + $0x128] sm:$0xff] %v301_v37   ;;  %v309_v39 = vld [vmem:[%s6823_s25 + $0x138] sm:$0xff]   ;;  %v313_v40 = vld [vmem:[%s6823_s25 + $0x140] sm:$0xff]  }
  0x26   : > { %306 = vst [vmem:[%s6828_s26 + $0x130] sm:$0xff] %v305_v38   ;;  %v317_v41 = vld [vmem:[%s6823_s25 + $0x148] sm:$0xff]   ;;  %310 = vst [vmem:[%s6828_s26 + $0x138] sm:$0xff] %v309_v39   ;;  %v321_v42 = vld [vmem:[%s6823_s25 + $0x150] sm:$0xff]  }
  0x27   : > { %314 = vst [vmem:[%s6828_s26 + $0x140] sm:$0xff] %v313_v40   ;;  %318 = vst [vmem:[%s6828_s26 + $0x148] sm:$0xff] %v317_v41   ;;  %v325_v43 = vld [vmem:[%s6823_s25 + $0x158] sm:$0xff]   ;;  %v329_v44 = vld [vmem:[%s6823_s25 + $0x160] sm:$0xff]  }
  0x28   : > { %322 = vst [vmem:[%s6828_s26 + $0x150] sm:$0xff] %v321_v42   ;;  %326 = vst [vmem:[%s6828_s26 + $0x158] sm:$0xff] %v325_v43   ;;  %v333_v45 = vld [vmem:[%s6823_s25 + $0x168] sm:$0xff]   ;;  %v337_v46 = vld [vmem:[%s6823_s25 + $0x170] sm:$0xff]  }
  0x29   : > { %330 = vst [vmem:[%s6828_s26 + $0x160] sm:$0xff] %v329_v44   ;;  %v341_v47 = vld [vmem:[%s6823_s25 + $0x178] sm:$0xff]   ;;  %334 = vst [vmem:[%s6828_s26 + $0x168] sm:$0xff] %v333_v45   ;;  %v345_v48 = vld [vmem:[%s6823_s25 + $0x180] sm:$0xff]  }
  0x2a   : > { %338 = vst [vmem:[%s6828_s26 + $0x170] sm:$0xff] %v337_v46   ;;  %342 = vst [vmem:[%s6828_s26 + $0x178] sm:$0xff] %v341_v47   ;;  %v349_v49 = vld [vmem:[%s6823_s25 + $0x620] sm:$0xff]   ;;  %v353_v50 = vld [vmem:[%s6823_s25 + $0x628] sm:$0xff]  }
  0x2b   : > { %346 = vst [vmem:[%s6828_s26 + $0x180] sm:$0xff] %v345_v48   ;;  %350 = vst [vmem:[%s6828_s26 + $0x188] sm:$0xff] %v349_v49   ;;  %v357_v51 = vld [vmem:[%s6823_s25 + $0x630] sm:$0xff]   ;;  %v361_v52 = vld [vmem:[%s6823_s25 + $0x638] sm:$0xff]  }
  0x2c   : > { %354 = vst [vmem:[%s6828_s26 + $0x190] sm:$0xff] %v353_v50   ;;  %v365_v53 = vld [vmem:[%s6823_s25 + $0x640] sm:$0xff]   ;;  %358 = vst [vmem:[%s6828_s26 + $0x198] sm:$0xff] %v357_v51   ;;  %v369_v54 = vld [vmem:[%s6823_s25 + $0x648] sm:$0xff]  }
  0x2d   : > { %362 = vst [vmem:[%s6828_s26 + $0x1a0] sm:$0xff] %v361_v52   ;;  %366 = vst [vmem:[%s6828_s26 + $0x1a8] sm:$0xff] %v365_v53   ;;  %v373_v55 = vld [vmem:[%s6823_s25 + $0x650] sm:$0xff]   ;;  %v377_v56 = vld [vmem:[%s6823_s25 + $0x658] sm:$0xff]  }
  0x2e   : > { %370 = vst [vmem:[%s6828_s26 + $0x1b0] sm:$0xff] %v369_v54   ;;  %374 = vst [vmem:[%s6828_s26 + $0x1b8] sm:$0xff] %v373_v55   ;;  %v381_v57 = vld [vmem:[%s6823_s25 + $0x660] sm:$0xff]   ;;  %v385_v58 = vld [vmem:[%s6823_s25 + $0x668] sm:$0xff]  }
  0x2f   : > { %378 = vst [vmem:[%s6828_s26 + $0x1c0] sm:$0xff] %v377_v56   ;;  %v389_v59 = vld [vmem:[%s6823_s25 + $0x670] sm:$0xff]   ;;  %382 = vst [vmem:[%s6828_s26 + $0x1c8] sm:$0xff] %v381_v57   ;;  %v393_v60 = vld [vmem:[%s6823_s25 + $0x678] sm:$0xff]  }
  0x30   : > { %386 = vst [vmem:[%s6828_s26 + $0x1d0] sm:$0xff] %v385_v58   ;;  %390 = vst [vmem:[%s6828_s26 + $0x1d8] sm:$0xff] %v389_v59   ;;  %v397_v61 = vld [vmem:[%s6823_s25 + $0x680] sm:$0xff]   ;;  %v401_v62 = vld [vmem:[%s6823_s25 + $0x688] sm:$0xff]  }
  0x31   : > { %394 = vst [vmem:[%s6828_s26 + $0x1e0] sm:$0xff] %v393_v60   ;;  %398 = vst [vmem:[%s6828_s26 + $0x1e8] sm:$0xff] %v397_v61   ;;  %v405_v63 = vld [vmem:[%s6823_s25 + $0x690] sm:$0xff]   ;;  %v409_v0 = vld [vmem:[%s6823_s25 + $0x698] sm:$0xff]  }
  0x32   : > { %402 = vst [vmem:[%s6828_s26 + $0x1f0] sm:$0xff] %v401_v62   ;;  %v413_v1 = vld [vmem:[%s6823_s25 + $0x6a0] sm:$0xff]   ;;  %406 = vst [vmem:[%s6828_s26 + $0x1f8] sm:$0xff] %v405_v63   ;;  %v417_v2 = vld [vmem:[%s6823_s25 + $0x6a8] sm:$0xff]  }
  0x33   : > { %410 = vst [vmem:[%s6828_s26 + $0x200] sm:$0xff] %v409_v0   ;;  %414 = vst [vmem:[%s6828_s26 + $0x208] sm:$0xff] %v413_v1   ;;  %v421_v3 = vld [vmem:[%s6823_s25 + $0x6b0] sm:$0xff]   ;;  %v425_v4 = vld [vmem:[%s6823_s25 + $0x6b8] sm:$0xff]  }
  0x34   : > { %418 = vst [vmem:[%s6828_s26 + $0x210] sm:$0xff] %v417_v2   ;;  %422 = vst [vmem:[%s6828_s26 + $0x218] sm:$0xff] %v421_v3   ;;  %v429_v5 = vld [vmem:[%s6823_s25 + $0x6c0] sm:$0xff]   ;;  %v433_v6 = vld [vmem:[%s6823_s25 + $0x6c8] sm:$0xff]  }
  0x35   : > { %426 = vst [vmem:[%s6828_s26 + $0x220] sm:$0xff] %v425_v4   ;;  %v437_v7 = vld [vmem:[%s6823_s25 + $0x6d0] sm:$0xff]   ;;  %430 = vst [vmem:[%s6828_s26 + $0x228] sm:$0xff] %v429_v5   ;;  %v441_v8 = vld [vmem:[%s6823_s25 + $0x6d8] sm:$0xff]  }
  0x36   : > { %434 = vst [vmem:[%s6828_s26 + $0x230] sm:$0xff] %v433_v6   ;;  %438 = vst [vmem:[%s6828_s26 + $0x238] sm:$0xff] %v437_v7   ;;  %v445_v9 = vld [vmem:[%s6823_s25 + $0x6e0] sm:$0xff]   ;;  %v449_v10 = vld [vmem:[%s6823_s25 + $0x6e8] sm:$0xff]  }
  0x37   : > { %442 = vst [vmem:[%s6828_s26 + $0x240] sm:$0xff] %v441_v8   ;;  %446 = vst [vmem:[%s6828_s26 + $0x248] sm:$0xff] %v445_v9   ;;  %v453_v11 = vld [vmem:[%s6823_s25 + $0x6f0] sm:$0xff]   ;;  %v457_v12 = vld [vmem:[%s6823_s25 + $0x6f8] sm:$0xff]  }
  0x38   : > { %450 = vst [vmem:[%s6828_s26 + $0x250] sm:$0xff] %v449_v10   ;;  %v461_v13 = vld [vmem:[%s6823_s25 + $0x700] sm:$0xff]   ;;  %454 = vst [vmem:[%s6828_s26 + $0x258] sm:$0xff] %v453_v11   ;;  %v465_v14 = vld [vmem:[%s6823_s25 + $0x708] sm:$0xff]  }
  0x39   : > { %458 = vst [vmem:[%s6828_s26 + $0x260] sm:$0xff] %v457_v12   ;;  %462 = vst [vmem:[%s6828_s26 + $0x268] sm:$0xff] %v461_v13   ;;  %v469_v15 = vld [vmem:[%s6823_s25 + $0x710] sm:$0xff]   ;;  %v473_v16 = vld [vmem:[%s6823_s25 + $0x718] sm:$0xff]  }
  0x3a   : > { %466 = vst [vmem:[%s6828_s26 + $0x270] sm:$0xff] %v465_v14   ;;  %470 = vst [vmem:[%s6828_s26 + $0x278] sm:$0xff] %v469_v15   ;;  %v477_v17 = vld [vmem:[%s6823_s25 + $0x720] sm:$0xff]   ;;  %v481_v18 = vld [vmem:[%s6823_s25 + $0x728] sm:$0xff]  }
  0x3b   : > { %474 = vst [vmem:[%s6828_s26 + $0x280] sm:$0xff] %v473_v16   ;;  %v485_v19 = vld [vmem:[%s6823_s25 + $0x730] sm:$0xff]   ;;  %478 = vst [vmem:[%s6828_s26 + $0x288] sm:$0xff] %v477_v17   ;;  %v489_v20 = vld [vmem:[%s6823_s25 + $0x738] sm:$0xff]  }
  0x3c   : > { %482 = vst [vmem:[%s6828_s26 + $0x290] sm:$0xff] %v481_v18   ;;  %486 = vst [vmem:[%s6828_s26 + $0x298] sm:$0xff] %v485_v19   ;;  %v493_v21 = vld [vmem:[%s6823_s25 + $0x740] sm:$0xff]   ;;  %v497_v22 = vld [vmem:[%s6823_s25 + $0x748] sm:$0xff]  }
  0x3d   : > { %490 = vst [vmem:[%s6828_s26 + $0x2a0] sm:$0xff] %v489_v20   ;;  %494 = vst [vmem:[%s6828_s26 + $0x2a8] sm:$0xff] %v493_v21   ;;  %v501_v23 = vld [vmem:[%s6823_s25 + $0x750] sm:$0xff]   ;;  %v505_v24 = vld [vmem:[%s6823_s25 + $0x758] sm:$0xff]  }
  0x3e   : > { %498 = vst [vmem:[%s6828_s26 + $0x2b0] sm:$0xff] %v497_v22   ;;  %v509_v25 = vld [vmem:[%s6823_s25 + $0x760] sm:$0xff]   ;;  %502 = vst [vmem:[%s6828_s26 + $0x2b8] sm:$0xff] %v501_v23   ;;  %v513_v26 = vld [vmem:[%s6823_s25 + $0x768] sm:$0xff]  }
  0x3f   : > { %506 = vst [vmem:[%s6828_s26 + $0x2c0] sm:$0xff] %v505_v24   ;;  %510 = vst [vmem:[%s6828_s26 + $0x2c8] sm:$0xff] %v509_v25   ;;  %v517_v27 = vld [vmem:[%s6823_s25 + $0x770] sm:$0xff]   ;;  %v521_v28 = vld [vmem:[%s6823_s25 + $0x778] sm:$0xff]  }
  0x40   : > { %514 = vst [vmem:[%s6828_s26 + $0x2d0] sm:$0xff] %v513_v26   ;;  %518 = vst [vmem:[%s6828_s26 + $0x2d8] sm:$0xff] %v517_v27   ;;  %v525_v29 = vld [vmem:[%s6823_s25 + $0x780] sm:$0xff]   ;;  %v529_v30 = vld [vmem:[%s6823_s25 + $0x788] sm:$0xff]  }
  0x41   : > { %522 = vst [vmem:[%s6828_s26 + $0x2e0] sm:$0xff] %v521_v28   ;;  %v533_v31 = vld [vmem:[%s6823_s25 + $0x790] sm:$0xff]   ;;  %526 = vst [vmem:[%s6828_s26 + $0x2e8] sm:$0xff] %v525_v29   ;;  %v537_v32 = vld [vmem:[%s6823_s25 + $0x798] sm:$0xff]  }
  0x42   : > { %530 = vst [vmem:[%s6828_s26 + $0x2f0] sm:$0xff] %v529_v30   ;;  %534 = vst [vmem:[%s6828_s26 + $0x2f8] sm:$0xff] %v533_v31   ;;  %v541_v33 = vld [vmem:[%s6823_s25 + $0x7a0] sm:$0xff]   ;;  %v549_v35 = vld [vmem:[%s6823_s25 + $0xc48] sm:$0xff]  }
  0x43   : > { %v545_v34 = vld [vmem:[%s6823_s25 + $0xc40] sm:$0xff]   ;;  %538 = vst [vmem:[%s6828_s26 + $0x300] sm:$0xff] %v537_v32   ;;  %542 = vst [vmem:[%s6828_s26 + $0x308] sm:$0xff] %v541_v33   ;;  %v553_v36 = vld [vmem:[%s6823_s25 + $0xc50] sm:$0xff]  }
  0x44   : > { %546 = vst [vmem:[%s6828_s26 + $0x310] sm:$0xff] %v545_v34   ;;  %v557_v37 = vld [vmem:[%s6823_s25 + $0xc58] sm:$0xff]   ;;  %550 = vst [vmem:[%s6828_s26 + $0x318] sm:$0xff] %v549_v35   ;;  %v561_v38 = vld [vmem:[%s6823_s25 + $0xc60] sm:$0xff]  }
  0x45   : > { %554 = vst [vmem:[%s6828_s26 + $0x320] sm:$0xff] %v553_v36   ;;  %558 = vst [vmem:[%s6828_s26 + $0x328] sm:$0xff] %v557_v37   ;;  %v565_v39 = vld [vmem:[%s6823_s25 + $0xc68] sm:$0xff]   ;;  %v569_v40 = vld [vmem:[%s6823_s25 + $0xc70] sm:$0xff]  }
  0x46   : > { %562 = vst [vmem:[%s6828_s26 + $0x330] sm:$0xff] %v561_v38   ;;  %566 = vst [vmem:[%s6828_s26 + $0x338] sm:$0xff] %v565_v39   ;;  %v573_v41 = vld [vmem:[%s6823_s25 + $0xc78] sm:$0xff]   ;;  %v577_v42 = vld [vmem:[%s6823_s25 + $0xc80] sm:$0xff]  }
  0x47   : > { %570 = vst [vmem:[%s6828_s26 + $0x340] sm:$0xff] %v569_v40   ;;  %v581_v43 = vld [vmem:[%s6823_s25 + $0xc88] sm:$0xff]   ;;  %574 = vst [vmem:[%s6828_s26 + $0x348] sm:$0xff] %v573_v41   ;;  %v585_v44 = vld [vmem:[%s6823_s25 + $0xc90] sm:$0xff]  }
  0x48   : > { %578 = vst [vmem:[%s6828_s26 + $0x350] sm:$0xff] %v577_v42   ;;  %582 = vst [vmem:[%s6828_s26 + $0x358] sm:$0xff] %v581_v43   ;;  %v589_v45 = vld [vmem:[%s6823_s25 + $0xc98] sm:$0xff]   ;;  %v593_v46 = vld [vmem:[%s6823_s25 + $0xca0] sm:$0xff]  }
  0x49   : > { %586 = vst [vmem:[%s6828_s26 + $0x360] sm:$0xff] %v585_v44   ;;  %590 = vst [vmem:[%s6828_s26 + $0x368] sm:$0xff] %v589_v45   ;;  %v597_v47 = vld [vmem:[%s6823_s25 + $0xca8] sm:$0xff]   ;;  %v601_v48 = vld [vmem:[%s6823_s25 + $0xcb0] sm:$0xff]  }
  0x4a   : > { %594 = vst [vmem:[%s6828_s26 + $0x370] sm:$0xff] %v593_v46   ;;  %v605_v49 = vld [vmem:[%s6823_s25 + $0xcb8] sm:$0xff]   ;;  %598 = vst [vmem:[%s6828_s26 + $0x378] sm:$0xff] %v597_v47   ;;  %v609_v50 = vld [vmem:[%s6823_s25 + $0xcc0] sm:$0xff]  }
  0x4b   : > { %602 = vst [vmem:[%s6828_s26 + $0x380] sm:$0xff] %v601_v48   ;;  %606 = vst [vmem:[%s6828_s26 + $0x388] sm:$0xff] %v605_v49   ;;  %v613_v51 = vld [vmem:[%s6823_s25 + $0xcc8] sm:$0xff]   ;;  %v617_v52 = vld [vmem:[%s6823_s25 + $0xcd0] sm:$0xff]  }
  0x4c   : > { %610 = vst [vmem:[%s6828_s26 + $0x390] sm:$0xff] %v609_v50   ;;  %614 = vst [vmem:[%s6828_s26 + $0x398] sm:$0xff] %v613_v51   ;;  %v621_v53 = vld [vmem:[%s6823_s25 + $0xcd8] sm:$0xff]   ;;  %v625_v54 = vld [vmem:[%s6823_s25 + $0xce0] sm:$0xff]  }
  0x4d   : > { %618 = vst [vmem:[%s6828_s26 + $0x3a0] sm:$0xff] %v617_v52   ;;  %v629_v55 = vld [vmem:[%s6823_s25 + $0xce8] sm:$0xff]   ;;  %622 = vst [vmem:[%s6828_s26 + $0x3a8] sm:$0xff] %v621_v53   ;;  %v633_v56 = vld [vmem:[%s6823_s25 + $0xcf0] sm:$0xff]  }
  0x4e   : > { %626 = vst [vmem:[%s6828_s26 + $0x3b0] sm:$0xff] %v625_v54   ;;  %630 = vst [vmem:[%s6828_s26 + $0x3b8] sm:$0xff] %v629_v55   ;;  %v637_v57 = vld [vmem:[%s6823_s25 + $0xcf8] sm:$0xff]   ;;  %v641_v58 = vld [vmem:[%s6823_s25 + $0xd00] sm:$0xff]  }
  0x4f   : > { %634 = vst [vmem:[%s6828_s26 + $0x3c0] sm:$0xff] %v633_v56   ;;  %638 = vst [vmem:[%s6828_s26 + $0x3c8] sm:$0xff] %v637_v57   ;;  %v645_v59 = vld [vmem:[%s6823_s25 + $0xd08] sm:$0xff]   ;;  %v649_v60 = vld [vmem:[%s6823_s25 + $0xd10] sm:$0xff]  }
  0x50   : > { %642 = vst [vmem:[%s6828_s26 + $0x3d0] sm:$0xff] %v641_v58   ;;  %v653_v61 = vld [vmem:[%s6823_s25 + $0xd18] sm:$0xff]   ;;  %646 = vst [vmem:[%s6828_s26 + $0x3d8] sm:$0xff] %v645_v59   ;;  %v657_v62 = vld [vmem:[%s6823_s25 + $0xd20] sm:$0xff]  }
  0x51   : > { %650 = vst [vmem:[%s6828_s26 + $0x3e0] sm:$0xff] %v649_v60   ;;  %654 = vst [vmem:[%s6828_s26 + $0x3e8] sm:$0xff] %v653_v61   ;;  %v661_v63 = vld [vmem:[%s6823_s25 + $0xd28] sm:$0xff]   ;;  %v665_v0 = vld [vmem:[%s6823_s25 + $0xd30] sm:$0xff]  }
  0x52   : > { %658 = vst [vmem:[%s6828_s26 + $0x3f0] sm:$0xff] %v657_v62   ;;  %662 = vst [vmem:[%s6828_s26 + $0x3f8] sm:$0xff] %v661_v63   ;;  %v669_v1 = vld [vmem:[%s6823_s25 + $0xd38] sm:$0xff]   ;;  %v673_v2 = vld [vmem:[%s6823_s25 + $0xd40] sm:$0xff]  }
  0x53   : > { %666 = vst [vmem:[%s6828_s26 + $0x400] sm:$0xff] %v665_v0   ;;  %v677_v3 = vld [vmem:[%s6823_s25 + $0xd48] sm:$0xff]   ;;  %670 = vst [vmem:[%s6828_s26 + $0x408] sm:$0xff] %v669_v1   ;;  %v681_v4 = vld [vmem:[%s6823_s25 + $0xd50] sm:$0xff]  }
  0x54   : > { %674 = vst [vmem:[%s6828_s26 + $0x410] sm:$0xff] %v673_v2   ;;  %678 = vst [vmem:[%s6828_s26 + $0x418] sm:$0xff] %v677_v3   ;;  %v685_v5 = vld [vmem:[%s6823_s25 + $0xd58] sm:$0xff]   ;;  %v689_v6 = vld [vmem:[%s6823_s25 + $0xd60] sm:$0xff]  }
  0x55   : > { %682 = vst [vmem:[%s6828_s26 + $0x420] sm:$0xff] %v681_v4   ;;  %686 = vst [vmem:[%s6828_s26 + $0x428] sm:$0xff] %v685_v5   ;;  %v693_v7 = vld [vmem:[%s6823_s25 + $0xd68] sm:$0xff]   ;;  %v697_v8 = vld [vmem:[%s6823_s25 + $0xd70] sm:$0xff]  }
  0x56   : > { %690 = vst [vmem:[%s6828_s26 + $0x430] sm:$0xff] %v689_v6   ;;  %v701_v9 = vld [vmem:[%s6823_s25 + $0xd78] sm:$0xff]   ;;  %694 = vst [vmem:[%s6828_s26 + $0x438] sm:$0xff] %v693_v7   ;;  %v705_v10 = vld [vmem:[%s6823_s25 + $0xd80] sm:$0xff]  }
  0x57   : > { %698 = vst [vmem:[%s6828_s26 + $0x440] sm:$0xff] %v697_v8   ;;  %702 = vst [vmem:[%s6828_s26 + $0x448] sm:$0xff] %v701_v9   ;;  %v709_v11 = vld [vmem:[%s6823_s25 + $0xd88] sm:$0xff]   ;;  %v713_v12 = vld [vmem:[%s6823_s25 + $0xd90] sm:$0xff]  }
  0x58   : > { %706 = vst [vmem:[%s6828_s26 + $0x450] sm:$0xff] %v705_v10   ;;  %710 = vst [vmem:[%s6828_s26 + $0x458] sm:$0xff] %v709_v11   ;;  %v717_v13 = vld [vmem:[%s6823_s25 + $0xd98] sm:$0xff]   ;;  %v721_v14 = vld [vmem:[%s6823_s25 + $0xda0] sm:$0xff]  }
  0x59   : > { %714 = vst [vmem:[%s6828_s26 + $0x460] sm:$0xff] %v713_v12   ;;  %v725_v15 = vld [vmem:[%s6823_s25 + $0xda8] sm:$0xff]   ;;  %718 = vst [vmem:[%s6828_s26 + $0x468] sm:$0xff] %v717_v13   ;;  %v729_v16 = vld [vmem:[%s6823_s25 + $0xdb0] sm:$0xff]  }
  0x5a   : > { %722 = vst [vmem:[%s6828_s26 + $0x470] sm:$0xff] %v721_v14   ;;  %726 = vst [vmem:[%s6828_s26 + $0x478] sm:$0xff] %v725_v15   ;;  %v733_v17 = vld [vmem:[%s6823_s25 + $0xdb8] sm:$0xff]   ;;  %v737_v18 = vld [vmem:[%s6823_s25 + $0xdc0] sm:$0xff]  }
  0x5b   : > { %730 = vst [vmem:[%s6828_s26 + $0x480] sm:$0xff] %v729_v16   ;;  %734 = vst [vmem:[%s6828_s26 + $0x488] sm:$0xff] %v733_v17   ;;  %v741_v19 = vld [vmem:[%s6823_s25 + $0x1260] sm:$0xff]   ;;  %v745_v20 = vld [vmem:[%s6823_s25 + $0x1268] sm:$0xff]  }
  0x5c   : > { %738 = vst [vmem:[%s6828_s26 + $0x490] sm:$0xff] %v737_v18   ;;  %v749_v21 = vld [vmem:[%s6823_s25 + $0x1270] sm:$0xff]   ;;  %742 = vst [vmem:[%s6828_s26 + $0x498] sm:$0xff] %v741_v19   ;;  %v753_v22 = vld [vmem:[%s6823_s25 + $0x1278] sm:$0xff]  }
  0x5d   : > { %746 = vst [vmem:[%s6828_s26 + $0x4a0] sm:$0xff] %v745_v20   ;;  %750 = vst [vmem:[%s6828_s26 + $0x4a8] sm:$0xff] %v749_v21   ;;  %v757_v23 = vld [vmem:[%s6823_s25 + $0x1280] sm:$0xff]   ;;  %v761_v24 = vld [vmem:[%s6823_s25 + $0x1288] sm:$0xff]  }
  0x5e   : > { %754 = vst [vmem:[%s6828_s26 + $0x4b0] sm:$0xff] %v753_v22   ;;  %758 = vst [vmem:[%s6828_s26 + $0x4b8] sm:$0xff] %v757_v23   ;;  %v765_v25 = vld [vmem:[%s6823_s25 + $0x1290] sm:$0xff]   ;;  %v769_v26 = vld [vmem:[%s6823_s25 + $0x1298] sm:$0xff]  }
  0x5f   : > { %762 = vst [vmem:[%s6828_s26 + $0x4c0] sm:$0xff] %v761_v24   ;;  %v773_v27 = vld [vmem:[%s6823_s25 + $0x12a0] sm:$0xff]   ;;  %766 = vst [vmem:[%s6828_s26 + $0x4c8] sm:$0xff] %v765_v25   ;;  %v777_v28 = vld [vmem:[%s6823_s25 + $0x12a8] sm:$0xff]  }
  0x60   : > { %770 = vst [vmem:[%s6828_s26 + $0x4d0] sm:$0xff] %v769_v26   ;;  %774 = vst [vmem:[%s6828_s26 + $0x4d8] sm:$0xff] %v773_v27   ;;  %v781_v29 = vld [vmem:[%s6823_s25 + $0x12b0] sm:$0xff]   ;;  %v785_v30 = vld [vmem:[%s6823_s25 + $0x12b8] sm:$0xff]  }
  0x61   : > { %778 = vst [vmem:[%s6828_s26 + $0x4e0] sm:$0xff] %v777_v28   ;;  %782 = vst [vmem:[%s6828_s26 + $0x4e8] sm:$0xff] %v781_v29   ;;  %v789_v31 = vld [vmem:[%s6823_s25 + $0x12c0] sm:$0xff]   ;;  %v793_v32 = vld [vmem:[%s6823_s25 + $0x12c8] sm:$0xff]  }
  0x62   : > { %786 = vst [vmem:[%s6828_s26 + $0x4f0] sm:$0xff] %v785_v30   ;;  %v797_v33 = vld [vmem:[%s6823_s25 + $0x12d0] sm:$0xff]   ;;  %790 = vst [vmem:[%s6828_s26 + $0x4f8] sm:$0xff] %v789_v31   ;;  %v801_v34 = vld [vmem:[%s6823_s25 + $0x12d8] sm:$0xff]  }
  0x63   : > { %794 = vst [vmem:[%s6828_s26 + $0x500] sm:$0xff] %v793_v32   ;;  %798 = vst [vmem:[%s6828_s26 + $0x508] sm:$0xff] %v797_v33   ;;  %v805_v35 = vld [vmem:[%s6823_s25 + $0x12e0] sm:$0xff]   ;;  %v809_v36 = vld [vmem:[%s6823_s25 + $0x12e8] sm:$0xff]  }
  0x64   : > { %802 = vst [vmem:[%s6828_s26 + $0x510] sm:$0xff] %v801_v34   ;;  %806 = vst [vmem:[%s6828_s26 + $0x518] sm:$0xff] %v805_v35   ;;  %v813_v37 = vld [vmem:[%s6823_s25 + $0x12f0] sm:$0xff]   ;;  %v817_v38 = vld [vmem:[%s6823_s25 + $0x12f8] sm:$0xff]  }
  0x65   : > { %810 = vst [vmem:[%s6828_s26 + $0x520] sm:$0xff] %v809_v36   ;;  %v821_v39 = vld [vmem:[%s6823_s25 + $0x1300] sm:$0xff]   ;;  %814 = vst [vmem:[%s6828_s26 + $0x528] sm:$0xff] %v813_v37   ;;  %v825_v40 = vld [vmem:[%s6823_s25 + $0x1308] sm:$0xff]  }
  0x66   : > { %818 = vst [vmem:[%s6828_s26 + $0x530] sm:$0xff] %v817_v38   ;;  %822 = vst [vmem:[%s6828_s26 + $0x538] sm:$0xff] %v821_v39   ;;  %v829_v41 = vld [vmem:[%s6823_s25 + $0x1310] sm:$0xff]   ;;  %v833_v42 = vld [vmem:[%s6823_s25 + $0x1318] sm:$0xff]  }
  0x67   : > { %826 = vst [vmem:[%s6828_s26 + $0x540] sm:$0xff] %v825_v40   ;;  %830 = vst [vmem:[%s6828_s26 + $0x548] sm:$0xff] %v829_v41   ;;  %v837_v43 = vld [vmem:[%s6823_s25 + $0x1320] sm:$0xff]   ;;  %v841_v44 = vld [vmem:[%s6823_s25 + $0x1328] sm:$0xff]  }
  0x68   : > { %834 = vst [vmem:[%s6828_s26 + $0x550] sm:$0xff] %v833_v42   ;;  %v845_v45 = vld [vmem:[%s6823_s25 + $0x1330] sm:$0xff]   ;;  %838 = vst [vmem:[%s6828_s26 + $0x558] sm:$0xff] %v837_v43   ;;  %v849_v46 = vld [vmem:[%s6823_s25 + $0x1338] sm:$0xff]  }
  0x69   : > { %842 = vst [vmem:[%s6828_s26 + $0x560] sm:$0xff] %v841_v44   ;;  %846 = vst [vmem:[%s6828_s26 + $0x568] sm:$0xff] %v845_v45   ;;  %v853_v47 = vld [vmem:[%s6823_s25 + $0x1340] sm:$0xff]   ;;  %v857_v48 = vld [vmem:[%s6823_s25 + $0x1348] sm:$0xff]  }
  0x6a   : > { %850 = vst [vmem:[%s6828_s26 + $0x570] sm:$0xff] %v849_v46   ;;  %854 = vst [vmem:[%s6828_s26 + $0x578] sm:$0xff] %v853_v47   ;;  %v861_v49 = vld [vmem:[%s6823_s25 + $0x1350] sm:$0xff]   ;;  %v865_v50 = vld [vmem:[%s6823_s25 + $0x1358] sm:$0xff]  }
  0x6b   : > { %858 = vst [vmem:[%s6828_s26 + $0x580] sm:$0xff] %v857_v48   ;;  %v869_v51 = vld [vmem:[%s6823_s25 + $0x1360] sm:$0xff]   ;;  %862 = vst [vmem:[%s6828_s26 + $0x588] sm:$0xff] %v861_v49   ;;  %v873_v52 = vld [vmem:[%s6823_s25 + $0x1368] sm:$0xff]  }
  0x6c   : > { %866 = vst [vmem:[%s6828_s26 + $0x590] sm:$0xff] %v865_v50   ;;  %870 = vst [vmem:[%s6828_s26 + $0x598] sm:$0xff] %v869_v51   ;;  %v877_v53 = vld [vmem:[%s6823_s25 + $0x1370] sm:$0xff]   ;;  %v881_v54 = vld [vmem:[%s6823_s25 + $0x1378] sm:$0xff]  }
  0x6d   : > { %874 = vst [vmem:[%s6828_s26 + $0x5a0] sm:$0xff] %v873_v52   ;;  %878 = vst [vmem:[%s6828_s26 + $0x5a8] sm:$0xff] %v877_v53   ;;  %v885_v55 = vld [vmem:[%s6823_s25 + $0x1380] sm:$0xff]   ;;  %v889_v56 = vld [vmem:[%s6823_s25 + $0x1388] sm:$0xff]  }
  0x6e   : > { %882 = vst [vmem:[%s6828_s26 + $0x5b0] sm:$0xff] %v881_v54   ;;  %v893_v57 = vld [vmem:[%s6823_s25 + $0x1390] sm:$0xff]   ;;  %886 = vst [vmem:[%s6828_s26 + $0x5b8] sm:$0xff] %v885_v55   ;;  %v897_v58 = vld [vmem:[%s6823_s25 + $0x1398] sm:$0xff]  }
  0x6f   : > { %890 = vst [vmem:[%s6828_s26 + $0x5c0] sm:$0xff] %v889_v56   ;;  %894 = vst [vmem:[%s6828_s26 + $0x5c8] sm:$0xff] %v893_v57   ;;  %v901_v59 = vld [vmem:[%s6823_s25 + $0x13a0] sm:$0xff]   ;;  %v905_v60 = vld [vmem:[%s6823_s25 + $0x13a8] sm:$0xff]  }
  0x70   : > { %898 = vst [vmem:[%s6828_s26 + $0x5d0] sm:$0xff] %v897_v58   ;;  %902 = vst [vmem:[%s6828_s26 + $0x5d8] sm:$0xff] %v901_v59   ;;  %v909_v61 = vld [vmem:[%s6823_s25 + $0x13b0] sm:$0xff]   ;;  %v913_v62 = vld [vmem:[%s6823_s25 + $0x13b8] sm:$0xff]  }
  0x71   : > { %906 = vst [vmem:[%s6828_s26 + $0x5e0] sm:$0xff] %v905_v60   ;;  %v917_v63 = vld [vmem:[%s6823_s25 + $0x13c0] sm:$0xff]   ;;  %910 = vst [vmem:[%s6828_s26 + $0x5e8] sm:$0xff] %v909_v61   ;;  %v921_v0 = vld [vmem:[%s6823_s25 + $0x13c8] sm:$0xff]  }
  0x72   : > { %914 = vst [vmem:[%s6828_s26 + $0x5f0] sm:$0xff] %v913_v62   ;;  %918 = vst [vmem:[%s6828_s26 + $0x5f8] sm:$0xff] %v917_v63   ;;  %v925_v1 = vld [vmem:[%s6823_s25 + $0x13d0] sm:$0xff]   ;;  %v929_v2 = vld [vmem:[%s6823_s25 + $0x13d8] sm:$0xff]  }
  0x73   : > { %922 = vst [vmem:[%s6828_s26 + $0x600] sm:$0xff] %v921_v0   ;;  %926 = vst [vmem:[%s6828_s26 + $0x608] sm:$0xff] %v925_v1   ;;  %v933_v3 = vld [vmem:[%s6823_s25 + $0x13e0] sm:$0xff]  }
  0x74   : > { %930 = vst [vmem:[%s6828_s26 + $0x610] sm:$0xff] %v929_v2   ;;  %934 = vst [vmem:[%s6828_s26 + $0x618] sm:$0xff] %v933_v3  }
  0x75 PF: > { %p5676_p5 = scmp.ge.s32.totalorder %s6767_s14, 1  ;;  %p1742_p6 = scmp.lt.s32.totalorder %s6767_s14, 5 }
  0x77   : > { %p1743_p7 = pnand %p5676_p5, %p1742_p6 }
  0x79   : > { %1746 = sbr.rel (%p1743_p7) target bundleno = 771 (0x303), region = 69 }
  0x80   : > { %v6540_v4 = vld [vmem:[%s8354_s1] sm:$0xff]   ;;  %s1749_s29 = sand.u32 1, %s6759_s12   ;;  %v6541_v5 = vld [vmem:[%s8354_s1 + $0x8] sm:$0xff]   ;;  %v6542_v6 = vld [vmem:[%s8354_s1 + $0x10] sm:$0xff]   ;;  %s1773_s24 = smul.u32 98, %s5671_s15  ;;  %vm5510_vm0 = vcmask 48128  }
  0x81   : > { %s6515_s5 = smul.u32 1568, %s1749_s29  ;;  %6090 = vmatprep.subr.bf16.mxu0 %v6540_v4  ;;  %6498 = vmatprep.subr.bf16.mxu1 %v6540_v4  ;;  %v6543_v7 = vld [vmem:[%s8354_s1 + $0x18] sm:$0xff]   ;;  %v6544_v10 = vld [vmem:[%s8354_s1 + $0x20] sm:$0xff]   ;;  %v6545_v11 = vld [vmem:[%s8354_s1 + $0x28] sm:$0xff]  }
  0x82   : > { %6091 = vmatpush3.bf16.msra.mxu0 %v6540_v4  ;;  %6506 = vmatpush3.bf16.msra.mxu1 %v6540_v4  ;;  %v6546_v12 = vld [vmem:[%s8354_s1 + $0x30] sm:$0xff]   ;;  %v6547_v13 = vld [vmem:[%s8354_s1 + $0x38] sm:$0xff]   ;;  %p1774_p8 = scmp.lt.s32.totalorder %s1773_s24, 391 }
  0x83   : > { %6092 = vmatprep.subr.bf16.mxu0 %v6541_v5  ;;  %6499 = vmatprep.subr.bf16.mxu1 %v6541_v5  ;;  %s7234_s10 = scalar_lea.vmem [#allocation2], %s6515_s5 }
  0x84   : > { %v6548_v8 = vld [vmem:[%s7234_s10] sm:$0xff]   ;;  %v6550_v9 = vld [vmem:[%s7234_s10 + $0x310] sm:$0xff]   ;;  %v6549_v14 = vld [vmem:[%s7234_s10 + $0x8] sm:$0xff]   ;;  %s8653_s24 = smov (!%p1774_p8, %s1773_s24), 391 }
  0x85   : > { %6106 = vmatprep.mubr.bf16.mxu0 %v6548_v8  ;;  %6302 = vmatprep.mubr.bf16.mxu1 %v6550_v9  ;;  %v6551_v15 = vld [vmem:[%s7234_s10 + $0x318] sm:$0xff]   ;;  %v6552_v16 = vld [vmem:[%s7234_s10 + $0x10] sm:$0xff]   ;;  %v6554_v17 = vld [vmem:[%s7234_s10 + $0x320] sm:$0xff]   ;;  %s5677_s25 = sshll.u32 %s8653_s24, 3 }
  0x86   : > { %6093 = vmatpush3.bf16.msra.mxu0 %v6541_v5  ;;  %6507 = vmatpush3.bf16.msra.mxu1 %v6541_v5  ;;  %v6553_v18 = vld [vmem:[%s7234_s10 + $0x18] sm:$0xff]   ;;  %v6555_v19 = vld [vmem:[%s7234_s10 + $0x328] sm:$0xff]   ;;  %v6556_v20 = vld [vmem:[%s7234_s10 + $0x20] sm:$0xff]   ;;  %s7851_s28 = scalar_lea.vmem %s8356_s3, %s5677_s25 }
  0x87   : > { %6094 = vmatprep.subr.bf16.mxu0 %v6542_v6  ;;  %6500 = vmatprep.subr.bf16.mxu1 %v6542_v6  ;;  %v6558_v21 = vld [vmem:[%s7234_s10 + $0x330] sm:$0xff]   ;;  %v6557_v22 = vld [vmem:[%s7234_s10 + $0x28] sm:$0xff]   ;;  %v6559_v23 = vld [vmem:[%s7234_s10 + $0x338] sm:$0xff]  }
  0x88   : > { %v6560_v24 = vld [vmem:[%s7234_s10 + $0x30] sm:$0xff]   ;;  %v6562_v25 = vld [vmem:[%s7234_s10 + $0x340] sm:$0xff]   ;;  %v6561_v26 = vld [vmem:[%s7234_s10 + $0x38] sm:$0xff]  }
  0x89   : > { %v6563_v27 = vld [vmem:[%s7234_s10 + $0x348] sm:$0xff]   ;;  %v6564_v28 = vld [vmem:[%s7234_s10 + $0x40] sm:$0xff]   ;;  %v6566_v29 = vld [vmem:[%s7234_s10 + $0x350] sm:$0xff]  }
  0x8a   : > { %6095 = vmatpush3.bf16.msra.mxu0 %v6542_v6  ;;  %6508 = vmatpush3.bf16.msra.mxu1 %v6542_v6  ;;  %v6565_v30 = vld [vmem:[%s7234_s10 + $0x48] sm:$0xff]   ;;  %v6567_v31 = vld [vmem:[%s7234_s10 + $0x358] sm:$0xff]   ;;  %v6568_v32 = vld [vmem:[%s7234_s10 + $0x50] sm:$0xff]  }
  0x8b   : > { %6096 = vmatprep.subr.bf16.mxu0 %v6543_v7  ;;  %6501 = vmatprep.subr.bf16.mxu1 %v6543_v7  ;;  %v6570_v33 = vld [vmem:[%s7234_s10 + $0x360] sm:$0xff]   ;;  %v6569_v34 = vld [vmem:[%s7234_s10 + $0x58] sm:$0xff]   ;;  %v6571_v35 = vld [vmem:[%s7234_s10 + $0x368] sm:$0xff]  }
  0x8c   : > { %v6572_v36 = vld [vmem:[%s7234_s10 + $0x60] sm:$0xff]   ;;  %v6574_v37 = vld [vmem:[%s7234_s10 + $0x370] sm:$0xff]   ;;  %v6573_v38 = vld [vmem:[%s7234_s10 + $0x68] sm:$0xff]  }
  0x8d   : > { %v6575_v39 = vld [vmem:[%s7234_s10 + $0x378] sm:$0xff]   ;;  %v6576_v40 = vld [vmem:[%s7234_s10 + $0x70] sm:$0xff]   ;;  %v6578_v41 = vld [vmem:[%s7234_s10 + $0x380] sm:$0xff]  }
  0x8e   : > { %6097 = vmatpush3.bf16.msra.mxu0 %v6543_v7  ;;  %6509 = vmatpush3.bf16.msra.mxu1 %v6543_v7  ;;  %v6577_v42 = vld [vmem:[%s7234_s10 + $0x78] sm:$0xff]   ;;  %v6579_v43 = vld [vmem:[%s7234_s10 + $0x388] sm:$0xff]   ;;  %v6580_v44 = vld [vmem:[%s7234_s10 + $0x80] sm:$0xff]  }
  0x8f   : > { %6098 = vmatprep.subr.bf16.mxu0 %v6544_v10  ;;  %6502 = vmatprep.subr.bf16.mxu1 %v6544_v10  ;;  %v6582_v45 = vld [vmem:[%s7234_s10 + $0x390] sm:$0xff]   ;;  %v6581_v46 = vld [vmem:[%s7234_s10 + $0x88] sm:$0xff]   ;;  %v6583_v47 = vld [vmem:[%s7234_s10 + $0x398] sm:$0xff]  }
  0x90   : > { %v6584_v48 = vld [vmem:[%s7234_s10 + $0x90] sm:$0xff]   ;;  %v6586_v49 = vld [vmem:[%s7234_s10 + $0x3a0] sm:$0xff]   ;;  %v6585_v50 = vld [vmem:[%s7234_s10 + $0x98] sm:$0xff]  }
  0x91   : > { %v6587_v51 = vld [vmem:[%s7234_s10 + $0x3a8] sm:$0xff]   ;;  %v6588_v52 = vld [vmem:[%s7234_s10 + $0xa0] sm:$0xff]   ;;  %v6590_v53 = vld [vmem:[%s7234_s10 + $0x3b0] sm:$0xff]  }
  0x92   : > { %6099 = vmatpush3.bf16.msra.mxu0 %v6544_v10  ;;  %6510 = vmatpush3.bf16.msra.mxu1 %v6544_v10  ;;  %v6589_v54 = vld [vmem:[%s7234_s10 + $0xa8] sm:$0xff]   ;;  %v6591_v55 = vld [vmem:[%s7234_s10 + $0x3b8] sm:$0xff]   ;;  %v6592_v56 = vld [vmem:[%s7234_s10 + $0xb0] sm:$0xff]  }
  0x93   : > { %6100 = vmatprep.subr.bf16.mxu0 %v6545_v11  ;;  %6503 = vmatprep.subr.bf16.mxu1 %v6545_v11  ;;  %v6594_v57 = vld [vmem:[%s7234_s10 + $0x3c0] sm:$0xff]   ;;  %v6593_v58 = vld [vmem:[%s7234_s10 + $0xb8] sm:$0xff]   ;;  %v6595_v59 = vld [vmem:[%s7234_s10 + $0x3c8] sm:$0xff]  }
  0x94   : > { %v6596_v60 = vld [vmem:[%s7234_s10 + $0xc0] sm:$0xff]   ;;  %v6598_v61 = vld [vmem:[%s7234_s10 + $0x3d0] sm:$0xff]   ;;  %v6597_v62 = vld [vmem:[%s7234_s10 + $0xc8] sm:$0xff]  }
  0x95   : > { %v6599_v63 = vld [vmem:[%s7234_s10 + $0x3d8] sm:$0xff]   ;;  %v6600_v0 = vld [vmem:[%s7234_s10 + $0xd0] sm:$0xff]   ;;  %v6602_v1 = vld [vmem:[%s7234_s10 + $0x3e0] sm:$0xff]  }
  0x96   : > { %6101 = vmatpush3.bf16.msra.mxu0 %v6545_v11  ;;  %6511 = vmatpush3.bf16.msra.mxu1 %v6545_v11  ;;  %v6601_v2 = vld [vmem:[%s7234_s10 + $0xd8] sm:$0xff]   ;;  %v6603_v3 = vld [vmem:[%s7234_s10 + $0x3e8] sm:$0xff]   ;;  %v6604_v4 = vld [vmem:[%s7234_s10 + $0xe0] sm:$0xff]  }
  0x97   : > { %6102 = vmatprep.subr.bf16.mxu0 %v6546_v12  ;;  %6504 = vmatprep.subr.bf16.mxu1 %v6546_v12  ;;  %v6606_v5 = vld [vmem:[%s7234_s10 + $0x3f0] sm:$0xff]   ;;  %v6605_v6 = vld [vmem:[%s7234_s10 + $0xe8] sm:$0xff]   ;;  %v6607_v7 = vld [vmem:[%s7234_s10 + $0x3f8] sm:$0xff]  }
  0x98   : > { %v6608_v8 = vld [vmem:[%s7234_s10 + $0xf0] sm:$0xff]   ;;  %v6610_v9 = vld [vmem:[%s7234_s10 + $0x400] sm:$0xff]   ;;  %v6609_v10 = vld [vmem:[%s7234_s10 + $0xf8] sm:$0xff]  }
  0x99   : > { %v6611_v11 = vld [vmem:[%s7234_s10 + $0x408] sm:$0xff]  }
  0x9a   : > { %6103 = vmatpush3.bf16.msra.mxu0 %v6546_v12  ;;  %6512 = vmatpush3.bf16.msra.mxu1 %v6546_v12  ;;  %v6612_v12 = vld [vmem:[%s7234_s10 + $0x100] sm:$0xff]  }
  0x9b   : > { %6104 = vmatprep.subr.bf16.mxu0 %v6547_v13  ;;  %6505 = vmatprep.subr.bf16.mxu1 %v6547_v13 }
  0x9e   : > { %6105 = vmatpush3.bf16.msra.mxu0 %v6547_v13  ;;  %6513 = vmatpush3.bf16.msra.mxu1 %v6547_v13  ;;  %v6614_v13 = vld [vmem:[%s7234_s10 + $0x410] sm:$0xff]  }
  0xa1   : > { %6107 = vmatmul.mubr.bf16.vlgmr.msra.gmra.mrb[0].mxu0 %v6549_v14  ;;  %6303 = vmatmul.mubr.bf16.vlgmr.msra.gmra.mrb[0].mxu1 %v6551_v15  ;;  %v6613_v14 = vld [vmem:[%s7234_s10 + $0x108] sm:$0xff]   ;;  %v6615_v15 = vld [vmem:[%s7234_s10 + $0x418] sm:$0xff]  }
  0xa2   : > { %6110 = vmatprep.mubr.bf16.mxu0 %v6552_v16  ;;  %6306 = vmatprep.mubr.bf16.mxu1 %v6554_v17  ;;  %v6616_v16 = vld [vmem:[%s7234_s10 + $0x110] sm:$0xff]   ;;  %v6618_v17 = vld [vmem:[%s7234_s10 + $0x420] sm:$0xff]  }
  0xa9   : > { %6111 = vmatmul.mubr.bf16.gmra.mrb[4].mxu0 %v6553_v18  ;;  %6307 = vmatmul.mubr.bf16.gmra.mrb[4].mxu1 %v6555_v19  ;;  %v6617_v18 = vld [vmem:[%s7234_s10 + $0x118] sm:$0xff]   ;;  %v6619_v19 = vld [vmem:[%s7234_s10 + $0x428] sm:$0xff]  }
  0xaa   : > { %6114 = vmatprep.mubr.bf16.mxu0 %v6556_v20  ;;  %6310 = vmatprep.mubr.bf16.mxu1 %v6558_v21  ;;  %v6620_v20 = vld [vmem:[%s7234_s10 + $0x120] sm:$0xff]   ;;  %v6622_v21 = vld [vmem:[%s7234_s10 + $0x430] sm:$0xff]  }
  0xb1   : > { %6115 = vmatmul.mubr.bf16.gmra.mrb[8].mxu0 %v6557_v22  ;;  %6311 = vmatmul.mubr.bf16.gmra.mrb[8].mxu1 %v6559_v23  ;;  %v6621_v22 = vld [vmem:[%s7234_s10 + $0x128] sm:$0xff]   ;;  %v6623_v23 = vld [vmem:[%s7234_s10 + $0x438] sm:$0xff]  }
  0xb2   : > { %6118 = vmatprep.mubr.bf16.mxu0 %v6560_v24  ;;  %6314 = vmatprep.mubr.bf16.mxu1 %v6562_v25  ;;  %v6624_v24 = vld [vmem:[%s7234_s10 + $0x130] sm:$0xff]   ;;  %v6626_v25 = vld [vmem:[%s7234_s10 + $0x440] sm:$0xff]  }
  0xb9   : > { %6119 = vmatmul.mubr.bf16.gmra.mrb[12].mxu0 %v6561_v26  ;;  %6315 = vmatmul.mubr.bf16.gmra.mrb[12].mxu1 %v6563_v27  ;;  %v6625_v26 = vld [vmem:[%s7234_s10 + $0x138] sm:$0xff]   ;;  %v6627_v27 = vld [vmem:[%s7234_s10 + $0x448] sm:$0xff]  }
  0xba   : > { %6122 = vmatprep.mubr.bf16.mxu0 %v6564_v28  ;;  %6318 = vmatprep.mubr.bf16.mxu1 %v6566_v29  ;;  %v6628_v28 = vld [vmem:[%s7234_s10 + $0x140] sm:$0xff]   ;;  %v6630_v29 = vld [vmem:[%s7234_s10 + $0x450] sm:$0xff]  }
  0xc1   : > { %6123 = vmatmul.mubr.bf16.gmra.mrb[16].mxu0 %v6565_v30  ;;  %6319 = vmatmul.mubr.bf16.gmra.mrb[16].mxu1 %v6567_v31  ;;  %v6629_v30 = vld [vmem:[%s7234_s10 + $0x148] sm:$0xff]   ;;  %v6631_v31 = vld [vmem:[%s7234_s10 + $0x458] sm:$0xff]  }
  0xc2   : > { %6126 = vmatprep.mubr.bf16.mxu0 %v6568_v32  ;;  %6322 = vmatprep.mubr.bf16.mxu1 %v6570_v33  ;;  %v6632_v32 = vld [vmem:[%s7234_s10 + $0x150] sm:$0xff]   ;;  %v6634_v33 = vld [vmem:[%s7234_s10 + $0x460] sm:$0xff]  }
  0xc9   : > { %6127 = vmatmul.mubr.bf16.gmra.mrb[20].mxu0 %v6569_v34  ;;  %6323 = vmatmul.mubr.bf16.gmra.mrb[20].mxu1 %v6571_v35  ;;  %v6633_v34 = vld [vmem:[%s7234_s10 + $0x158] sm:$0xff]   ;;  %v6635_v35 = vld [vmem:[%s7234_s10 + $0x468] sm:$0xff]  }
  0xca   : > { %6130 = vmatprep.mubr.bf16.mxu0 %v6572_v36  ;;  %6326 = vmatprep.mubr.bf16.mxu1 %v6574_v37  ;;  %v6636_v36 = vld [vmem:[%s7234_s10 + $0x160] sm:$0xff]   ;;  %v6638_v37 = vld [vmem:[%s7234_s10 + $0x470] sm:$0xff]  }
  0xd1   : > { %6131 = vmatmul.mubr.bf16.gmra.mrb[24].mxu0 %v6573_v38  ;;  %6327 = vmatmul.mubr.bf16.gmra.mrb[24].mxu1 %v6575_v39  ;;  %v6637_v38 = vld [vmem:[%s7234_s10 + $0x168] sm:$0xff]   ;;  %v6639_v39 = vld [vmem:[%s7234_s10 + $0x478] sm:$0xff]  }
  0xd2   : > { %6134 = vmatprep.mubr.bf16.mxu0 %v6576_v40  ;;  %6330 = vmatprep.mubr.bf16.mxu1 %v6578_v41  ;;  %v6640_v40 = vld [vmem:[%s7234_s10 + $0x170] sm:$0xff]   ;;  %v6642_v41 = vld [vmem:[%s7234_s10 + $0x480] sm:$0xff]  }
  0xd9   : > { %6135 = vmatmul.mubr.bf16.gmra.mrb[28].mxu0 %v6577_v42  ;;  %6331 = vmatmul.mubr.bf16.gmra.mrb[28].mxu1 %v6579_v43  ;;  %v6641_v42 = vld [vmem:[%s7234_s10 + $0x178] sm:$0xff]   ;;  %v6643_v43 = vld [vmem:[%s7234_s10 + $0x488] sm:$0xff]  }
  0xda   : > { %6138 = vmatprep.mubr.bf16.mxu0 %v6580_v44  ;;  %6334 = vmatprep.mubr.bf16.mxu1 %v6582_v45  ;;  %v6644_v44 = vld [vmem:[%s7234_s10 + $0x180] sm:$0xff]   ;;  %v6646_v45 = vld [vmem:[%s7234_s10 + $0x490] sm:$0xff]  }
  0xe1   : > { %6139 = vmatmul.mubr.bf16.gmra.mrb[32].mxu0 %v6581_v46  ;;  %6335 = vmatmul.mubr.bf16.gmra.mrb[32].mxu1 %v6583_v47  ;;  %v6645_v46 = vld [vmem:[%s7234_s10 + $0x188] sm:$0xff]   ;;  %v6647_v47 = vld [vmem:[%s7234_s10 + $0x498] sm:$0xff]  }
  0xe2   : > { %6142 = vmatprep.mubr.bf16.mxu0 %v6584_v48  ;;  %6338 = vmatprep.mubr.bf16.mxu1 %v6586_v49  ;;  %v6648_v48 = vld [vmem:[%s7234_s10 + $0x190] sm:$0xff]   ;;  %v6650_v49 = vld [vmem:[%s7234_s10 + $0x4a0] sm:$0xff]  }
  0xe9   : > { %6143 = vmatmul.mubr.bf16.gmra.mrb[36].mxu0 %v6585_v50  ;;  %6339 = vmatmul.mubr.bf16.gmra.mrb[36].mxu1 %v6587_v51  ;;  %v6649_v50 = vld [vmem:[%s7234_s10 + $0x198] sm:$0xff]   ;;  %v6651_v51 = vld [vmem:[%s7234_s10 + $0x4a8] sm:$0xff]  }
  0xea   : > { %6146 = vmatprep.mubr.bf16.mxu0 %v6588_v52  ;;  %6342 = vmatprep.mubr.bf16.mxu1 %v6590_v53  ;;  %v6652_v52 = vld [vmem:[%s7234_s10 + $0x1a0] sm:$0xff]   ;;  %v6654_v53 = vld [vmem:[%s7234_s10 + $0x4b0] sm:$0xff]  }
  0xf1   : > { %6147 = vmatmul.mubr.bf16.gmra.mrb[40].mxu0 %v6589_v54  ;;  %6343 = vmatmul.mubr.bf16.gmra.mrb[40].mxu1 %v6591_v55  ;;  %v6653_v54 = vld [vmem:[%s7234_s10 + $0x1a8] sm:$0xff]   ;;  %v6655_v55 = vld [vmem:[%s7234_s10 + $0x4b8] sm:$0xff]  }
  0xf2   : > { %6150 = vmatprep.mubr.bf16.mxu0 %v6592_v56  ;;  %6346 = vmatprep.mubr.bf16.mxu1 %v6594_v57  ;;  %v6656_v56 = vld [vmem:[%s7234_s10 + $0x1b0] sm:$0xff]   ;;  %v6658_v57 = vld [vmem:[%s7234_s10 + $0x4c0] sm:$0xff]  }
  0xf9   : > { %6151 = vmatmul.mubr.bf16.gmra.mrb[44].mxu0 %v6593_v58  ;;  %6347 = vmatmul.mubr.bf16.gmra.mrb[44].mxu1 %v6595_v59 }
  0xfa   : > { %6154 = vmatprep.mubr.bf16.mxu0 %v6596_v60  ;;  %6350 = vmatprep.mubr.bf16.mxu1 %v6598_v61 }
 0x101   : > { %6155 = vmatmul.mubr.bf16.gmra.mrb[48].mxu0 %v6597_v62  ;;  %6351 = vmatmul.mubr.bf16.gmra.mrb[48].mxu1 %v6599_v63  ;;  %v6657_v62 = vld [vmem:[%s7234_s10 + $0x1b8] sm:$0xff]   ;;  %v6659_v63 = vld [vmem:[%s7234_s10 + $0x4c8] sm:$0xff]  }
 0x102   : > { %6158 = vmatprep.mubr.bf16.mxu0 %v6600_v0  ;;  %6354 = vmatprep.mubr.bf16.mxu1 %v6602_v1 }
 0x109   : > { %6159 = vmatmul.mubr.bf16.gmra.mrb[52].mxu0 %v6601_v2  ;;  %6355 = vmatmul.mubr.bf16.gmra.mrb[52].mxu1 %v6603_v3  ;;  %v6660_v2 = vld [vmem:[%s7234_s10 + $0x1c0] sm:$0xff]   ;;  %v6662_v3 = vld [vmem:[%s7234_s10 + $0x4d0] sm:$0xff]  }
 0x10a   : > { %6162 = vmatprep.mubr.bf16.mxu0 %v6604_v4  ;;  %6358 = vmatprep.mubr.bf16.mxu1 %v6606_v5 }
 0x111   : > { %6163 = vmatmul.mubr.bf16.gmra.mrb[56].mxu0 %v6605_v6  ;;  %6359 = vmatmul.mubr.bf16.gmra.mrb[56].mxu1 %v6607_v7 }
 0x112   : > { %6166 = vmatprep.mubr.bf16.mxu0 %v6608_v8  ;;  %6362 = vmatprep.mubr.bf16.mxu1 %v6610_v9 }
 0x119   : > { %6167 = vmatmul.mubr.bf16.gmra.mrb[60].mxu0 %v6609_v10  ;;  %6363 = vmatmul.mubr.bf16.gmra.mrb[60].mxu1 %v6611_v11  ;;  %v6661_v10 = vld [vmem:[%s7234_s10 + $0x1c8] sm:$0xff]   ;;  %v6663_v11 = vld [vmem:[%s7234_s10 + $0x4d8] sm:$0xff]  }
 0x11a   : > { %6170 = vmatprep.mubr.bf16.mxu0 %v6612_v12  ;;  %6366 = vmatprep.mubr.bf16.mxu1 %v6614_v13 }
 0x121   : > { %6171 = vmatmul.mubr.bf16.gmra.mrb[64].mxu0 %v6613_v14  ;;  %6367 = vmatmul.mubr.bf16.gmra.mrb[64].mxu1 %v6615_v15  ;;  %v6664_v14 = vld [vmem:[%s7234_s10 + $0x1d0] sm:$0xff]   ;;  %v6666_v15 = vld [vmem:[%s7234_s10 + $0x4e0] sm:$0xff]  }
 0x122   : > { %6174 = vmatprep.mubr.bf16.mxu0 %v6616_v16  ;;  %6370 = vmatprep.mubr.bf16.mxu1 %v6618_v17 }
 0x129   : > { %6175 = vmatmul.mubr.bf16.gmra.mrb[68].mxu0 %v6617_v18  ;;  %6371 = vmatmul.mubr.bf16.gmra.mrb[68].mxu1 %v6619_v19 }
 0x12a   : > { %6178 = vmatprep.mubr.bf16.mxu0 %v6620_v20  ;;  %6374 = vmatprep.mubr.bf16.mxu1 %v6622_v21 }
 0x131   : > { %6179 = vmatmul.mubr.bf16.gmra.mrb[72].mxu0 %v6621_v22  ;;  %6375 = vmatmul.mubr.bf16.gmra.mrb[72].mxu1 %v6623_v23  ;;  %v6665_v22 = vld [vmem:[%s7234_s10 + $0x1d8] sm:$0xff]   ;;  %v6667_v23 = vld [vmem:[%s7234_s10 + $0x4e8] sm:$0xff]  }
 0x132   : > { %6182 = vmatprep.mubr.bf16.mxu0 %v6624_v24  ;;  %6378 = vmatprep.mubr.bf16.mxu1 %v6626_v25 }
 0x139   : > { %6183 = vmatmul.mubr.bf16.gmra.mrb[76].mxu0 %v6625_v26  ;;  %6379 = vmatmul.mubr.bf16.gmra.mrb[76].mxu1 %v6627_v27  ;;  %v6668_v26 = vld [vmem:[%s7234_s10 + $0x1e0] sm:$0xff]   ;;  %v6670_v27 = vld [vmem:[%s7234_s10 + $0x4f0] sm:$0xff]  }
 0x13a   : > { %6186 = vmatprep.mubr.bf16.mxu0 %v6628_v28  ;;  %6382 = vmatprep.mubr.bf16.mxu1 %v6630_v29 }
 0x141   : > { %6187 = vmatmul.mubr.bf16.gmra.mrb[80].mxu0 %v6629_v30  ;;  %6383 = vmatmul.mubr.bf16.gmra.mrb[80].mxu1 %v6631_v31 }
 0x142   : > { %6190 = vmatprep.mubr.bf16.mxu0 %v6632_v32  ;;  %6386 = vmatprep.mubr.bf16.mxu1 %v6634_v33 }
 0x149   : > { %6191 = vmatmul.mubr.bf16.gmra.mrb[84].mxu0 %v6633_v34  ;;  %6387 = vmatmul.mubr.bf16.gmra.mrb[84].mxu1 %v6635_v35  ;;  %v6669_v34 = vld [vmem:[%s7234_s10 + $0x1e8] sm:$0xff]   ;;  %v6671_v35 = vld [vmem:[%s7234_s10 + $0x4f8] sm:$0xff]  }
 0x14a   : > { %6194 = vmatprep.mubr.bf16.mxu0 %v6636_v36  ;;  %6390 = vmatprep.mubr.bf16.mxu1 %v6638_v37 }
 0x151   : > { %6195 = vmatmul.mubr.bf16.gmra.mrb[88].mxu0 %v6637_v38  ;;  %6391 = vmatmul.mubr.bf16.gmra.mrb[88].mxu1 %v6639_v39  ;;  %v6672_v38 = vld [vmem:[%s7234_s10 + $0x1f0] sm:$0xff]   ;;  %v6674_v39 = vld [vmem:[%s7234_s10 + $0x500] sm:$0xff]  }
 0x152   : > { %6198 = vmatprep.mubr.bf16.mxu0 %v6640_v40  ;;  %6394 = vmatprep.mubr.bf16.mxu1 %v6642_v41 }
 0x159   : > { %6199 = vmatmul.mubr.bf16.gmra.mrb[92].mxu0 %v6641_v42  ;;  %6395 = vmatmul.mubr.bf16.gmra.mrb[92].mxu1 %v6643_v43 }
 0x15a   : > { %6202 = vmatprep.mubr.bf16.mxu0 %v6644_v44  ;;  %6398 = vmatprep.mubr.bf16.mxu1 %v6646_v45 }
 0x161   : > { %6203 = vmatmul.mubr.bf16.gmra.mrb[96].mxu0 %v6645_v46  ;;  %6399 = vmatmul.mubr.bf16.gmra.mrb[96].mxu1 %v6647_v47  ;;  %v6673_v46 = vld [vmem:[%s7234_s10 + $0x1f8] sm:$0xff]   ;;  %v6675_v47 = vld [vmem:[%s7234_s10 + $0x508] sm:$0xff]  }
 0x162   : > { %6206 = vmatprep.mubr.bf16.mxu0 %v6648_v48  ;;  %6402 = vmatprep.mubr.bf16.mxu1 %v6650_v49 }
 0x169   : > { %6207 = vmatmul.mubr.bf16.gmra.mrb[100].mxu0 %v6649_v50  ;;  %6403 = vmatmul.mubr.bf16.gmra.mrb[100].mxu1 %v6651_v51  ;;  %v6676_v50 = vld [vmem:[%s7234_s10 + $0x200] sm:$0xff]   ;;  %v6678_v51 = vld [vmem:[%s7234_s10 + $0x510] sm:$0xff]  }
 0x16a   : > { %6210 = vmatprep.mubr.bf16.mxu0 %v6652_v52  ;;  %6406 = vmatprep.mubr.bf16.mxu1 %v6654_v53 }
 0x171   : > { %6211 = vmatmul.mubr.bf16.gmra.mrb[104].mxu0 %v6653_v54  ;;  %6407 = vmatmul.mubr.bf16.gmra.mrb[104].mxu1 %v6655_v55 }
 0x172   : > { %6214 = vmatprep.mubr.bf16.mxu0 %v6656_v56  ;;  %6410 = vmatprep.mubr.bf16.mxu1 %v6658_v57 }
 0x174   : > { %v7358_v58 = vpop.f32.mrb[0].mxu0  ;;  %v7360_v59 = vpop.f32.mrb[0].mxu1 }
 0x175   : > { %v7362_v60 = vpop.f32.mrb[1].mxu0  ;;  %v7364_v61 = vpop.f32.mrb[1].mxu1 }
 0x176   : > { %v7368_v0 = vpop.f32.mrb[2].mxu0  ;;  %v7370_v1 = vpop.f32.mrb[2].mxu1 }
 0x177   : > { %v7374_v4 = vpop.f32.mrb[3].mxu0  ;;  %v7376_v5 = vpop.f32.mrb[3].mxu1 }
 0x179   : > { %6215 = vmatmul.mubr.bf16.gmra.mrb[108].mxu0 %v6657_v62  ;;  %6411 = vmatmul.mubr.bf16.gmra.mrb[108].mxu1 %v6659_v63  ;;  %v6677_v62 = vld [vmem:[%s7234_s10 + $0x208] sm:$0xff]   ;;  %v6679_v63 = vld [vmem:[%s7234_s10 + $0x518] sm:$0xff]  }
 0x17a   : > { %6218 = vmatprep.mubr.bf16.mxu0 %v6660_v2  ;;  %6414 = vmatprep.mubr.bf16.mxu1 %v6662_v3 }
 0x17c   : > { %v7378_v6 = vpop.f32.mrb[4].mxu0  ;;  %v7380_v7 = vpop.f32.mrb[4].mxu1 }
 0x17d   : > { %v7382_v8 = vpop.f32.mrb[5].mxu0  ;;  %v7384_v9 = vpop.f32.mrb[5].mxu1 }
 0x17e   : > { %v7388_v12 = vpop.f32.mrb[6].mxu0  ;;  %v7390_v13 = vpop.f32.mrb[6].mxu1 }
 0x17f   : > { %v7394_v16 = vpop.f32.mrb[7].mxu0  ;;  %v7396_v17 = vpop.f32.mrb[7].mxu1 }
 0x181   : > { %6219 = vmatmul.mubr.bf16.gmra.mrb[112].mxu0 %v6661_v10  ;;  %6415 = vmatmul.mubr.bf16.gmra.mrb[112].mxu1 %v6663_v11  ;;  %v6680_v10 = vld [vmem:[%s7234_s10 + $0x210] sm:$0xff]   ;;  %v6682_v11 = vld [vmem:[%s7234_s10 + $0x520] sm:$0xff]  }
 0x182   : > { %6222 = vmatprep.mubr.bf16.mxu0 %v6664_v14  ;;  %6418 = vmatprep.mubr.bf16.mxu1 %v6666_v15 }
 0x184   : > { %v7398_v18 = vpop.f32.mrb[8].mxu0  ;;  %v7400_v19 = vpop.f32.mrb[8].mxu1 }
 0x185   : > { %v7402_v20 = vpop.f32.mrb[9].mxu0  ;;  %v7404_v21 = vpop.f32.mrb[9].mxu1 }
 0x186   : > { %v7408_v24 = vpop.f32.mrb[10].mxu0  ;;  %v7410_v25 = vpop.f32.mrb[10].mxu1 }
 0x187   : > { %v7414_v28 = vpop.f32.mrb[11].mxu0  ;;  %v7416_v29 = vpop.f32.mrb[11].mxu1 }
 0x189   : > { %6223 = vmatmul.mubr.bf16.gmra.mrb[116].mxu0 %v6665_v22  ;;  %6419 = vmatmul.mubr.bf16.gmra.mrb[116].mxu1 %v6667_v23 }
 0x18a   : > { %6226 = vmatprep.mubr.bf16.mxu0 %v6668_v26  ;;  %6422 = vmatprep.mubr.bf16.mxu1 %v6670_v27 }
 0x18c   : > { %v7418_v30 = vpop.f32.mrb[12].mxu0  ;;  %v7420_v31 = vpop.f32.mrb[12].mxu1 }
 0x18d   : > { %v7422_v32 = vpop.f32.mrb[13].mxu0  ;;  %v7424_v33 = vpop.f32.mrb[13].mxu1 }
 0x18e   : > { %v7428_v36 = vpop.f32.mrb[14].mxu0  ;;  %v7430_v37 = vpop.f32.mrb[14].mxu1 }
 0x18f   : > { %v7434_v40 = vpop.f32.mrb[15].mxu0  ;;  %v7436_v41 = vpop.f32.mrb[15].mxu1 }
 0x191   : > { %6227 = vmatmul.mubr.bf16.gmra.mrb[120].mxu0 %v6669_v34  ;;  %6423 = vmatmul.mubr.bf16.gmra.mrb[120].mxu1 %v6671_v35  ;;  %v6681_v34 = vld [vmem:[%s7234_s10 + $0x218] sm:$0xff]   ;;  %v6683_v35 = vld [vmem:[%s7234_s10 + $0x528] sm:$0xff]  }
 0x192   : > { %6230 = vmatprep.mubr.bf16.mxu0 %v6672_v38  ;;  %6426 = vmatprep.mubr.bf16.mxu1 %v6674_v39 }
 0x194   : > { %v7438_v42 = vpop.f32.mrb[16].mxu0  ;;  %v7440_v43 = vpop.f32.mrb[16].mxu1 }
 0x195   : > { %v7442_v44 = vpop.f32.mrb[17].mxu0  ;;  %v7444_v45 = vpop.f32.mrb[17].mxu1 }
 0x196   : > { %v7448_v48 = vpop.f32.mrb[18].mxu0  ;;  %v7450_v49 = vpop.f32.mrb[18].mxu1 }
 0x197   : > { %v7454_v52 = vpop.f32.mrb[19].mxu0  ;;  %v7456_v53 = vpop.f32.mrb[19].mxu1 }
 0x199   : > { %6231 = vmatmul.mubr.bf16.gmra.mrb[124].mxu0 %v6673_v46  ;;  %6427 = vmatmul.mubr.bf16.gmra.mrb[124].mxu1 %v6675_v47  ;;  %v6684_v46 = vld [vmem:[%s7234_s10 + $0x220] sm:$0xff]   ;;  %v6686_v47 = vld [vmem:[%s7234_s10 + $0x530] sm:$0xff]  }
 0x19a   : > { %6234 = vmatprep.mubr.bf16.mxu0 %v6676_v50  ;;  %6430 = vmatprep.mubr.bf16.mxu1 %v6678_v51 }
 0x19c   : > { %v7458_v54 = vpop.f32.mrb[20].mxu0  ;;  %v7460_v55 = vpop.f32.mrb[20].mxu1 }
 0x19d   : > { %v7462_v56 = vpop.f32.mrb[21].mxu0  ;;  %v7464_v57 = vpop.f32.mrb[21].mxu1 }
 0x19e   : > { %v7468_v2 = vpop.f32.mrb[22].mxu0  ;;  %v7470_v3 = vpop.f32.mrb[22].mxu1 }
 0x19f   : > { %8357 = vst [vmem:[#allocation3_spill] sm:$0xff] %v7470_v3  ;;  %v7474_v14 = vpop.f32.mrb[23].mxu0  ;;  %v7476_v15 = vpop.f32.mrb[23].mxu1 }
 0x1a1   : > { %6235 = vmatmul.mubr.bf16.gmra.mrb[128].mxu0 %v6677_v62  ;;  %6431 = vmatmul.mubr.bf16.gmra.mrb[128].mxu1 %v6679_v63 }
 0x1a2   : > { %6238 = vmatprep.mubr.bf16.mxu0 %v6680_v10  ;;  %6434 = vmatprep.mubr.bf16.mxu1 %v6682_v11 }
 0x1a4   : > { %v7478_v22 = vpop.f32.mrb[24].mxu0  ;;  %v7480_v23 = vpop.f32.mrb[24].mxu1 }
 0x1a5   : > { %8358 = vst [vmem:[#allocation4_spill] sm:$0xff] %v7478_v22  ;;  %8359 = vst [vmem:[#allocation5_spill] sm:$0xff] %v7480_v23  ;;  %v7482_v26 = vpop.f32.mrb[25].mxu0  ;;  %v7484_v27 = vpop.f32.mrb[25].mxu1 }
 0x1a6   : > { %v7488_v38 = vpop.f32.mrb[26].mxu0  ;;  %v7490_v39 = vpop.f32.mrb[26].mxu1 }
 0x1a7   : > { %8360 = vst [vmem:[#allocation6_spill] sm:$0xff] %v7488_v38  ;;  %8361 = vst [vmem:[#allocation7_spill] sm:$0xff] %v7490_v39  ;;  %v7494_v50 = vpop.f32.mrb[27].mxu0  ;;  %v7496_v51 = vpop.f32.mrb[27].mxu1  ;;  %v6685_v39 = vld [vmem:[%s7234_s10 + $0x228] sm:$0xff]   ;;  %v6687_v38 = vld [vmem:[%s7234_s10 + $0x538] sm:$0xff]  }
 0x1a8   : > { %8362 = vst [vmem:[#allocation8_spill] sm:$0xff] %v7496_v51 }
 0x1a9   : > { %6239 = vmatmul.mubr.bf16.gmra.mrb[132].mxu0 %v6681_v34  ;;  %6435 = vmatmul.mubr.bf16.gmra.mrb[132].mxu1 %v6683_v35  ;;  %v6688_v34 = vld [vmem:[%s7234_s10 + $0x230] sm:$0xff]   ;;  %v6690_v35 = vld [vmem:[%s7234_s10 + $0x540] sm:$0xff]  }
 0x1aa   : > { %6242 = vmatprep.mubr.bf16.mxu0 %v6684_v46  ;;  %6438 = vmatprep.mubr.bf16.mxu1 %v6686_v47 }
 0x1ac   : > { %v7498_v62 = vpop.f32.mrb[28].mxu0  ;;  %v7500_v63 = vpop.f32.mrb[28].mxu1 }
 0x1ad   : > { %8363 = vst [vmem:[#allocation9_spill] sm:$0xff] %v7498_v62  ;;  %8364 = vst [vmem:[#allocation10_spill] sm:$0xff] %v7500_v63  ;;  %v7502_v10 = vpop.f32.mrb[29].mxu0  ;;  %v7504_v11 = vpop.f32.mrb[29].mxu1 }
 0x1ae   : > { %8365 = vst [vmem:[#allocation11_spill] sm:$0xff] %v7502_v10  ;;  %8366 = vst [vmem:[#allocation12_spill] sm:$0xff] %v7504_v11  ;;  %v7508_v23 = vpop.f32.mrb[30].mxu0  ;;  %v7510_v22 = vpop.f32.mrb[30].mxu1  ;;  %v6691_v10 = vld [vmem:[%s7234_s10 + $0x548] sm:$0xff]  }
 0x1af   : > { %8367 = vst [vmem:[#allocation13_spill] sm:$0xff] %v7508_v23  ;;  %8368 = vst [vmem:[#allocation14_spill] sm:$0xff] %v7510_v22  ;;  %v7514_v46 = vpop.f32.mrb[31].mxu0  ;;  %v7516_v47 = vpop.f32.mrb[31].mxu1  ;;  %v6689_v22 = vld [vmem:[%s7234_s10 + $0x238] sm:$0xff]  }
 0x1b0   : > { %8369 = vst [vmem:[#allocation15_spill] sm:$0xff] %v7514_v46  ;;  %8370 = vst [vmem:[#allocation16_spill] sm:$0xff] %v7516_v47 }
 0x1b1   : > { %6243 = vmatmul.mubr.bf16.gmra.mrb[136].mxu0 %v6685_v39  ;;  %6439 = vmatmul.mubr.bf16.gmra.mrb[136].mxu1 %v6687_v38  ;;  %v6692_v39 = vld [vmem:[%s7234_s10 + $0x240] sm:$0xff]   ;;  %v6694_v38 = vld [vmem:[%s7234_s10 + $0x550] sm:$0xff]  }
 0x1b2   : > { %6246 = vmatprep.mubr.bf16.mxu0 %v6688_v34  ;;  %6442 = vmatprep.mubr.bf16.mxu1 %v6690_v35 }
 0x1b4   : > { %v7518_v63 = vpop.f32.mrb[32].mxu0  ;;  %v7520_v62 = vpop.f32.mrb[32].mxu1 }
 0x1b5   : > { %8371 = vst [vmem:[#allocation17_spill] sm:$0xff] %v7518_v63  ;;  %8372 = vst [vmem:[#allocation18_spill] sm:$0xff] %v7520_v62  ;;  %v7522_v11 = vpop.f32.mrb[33].mxu0  ;;  %v7524_v23 = vpop.f32.mrb[33].mxu1 }
 0x1b6   : > { %8373 = vst [vmem:[#allocation19_spill] sm:$0xff] %v7522_v11  ;;  %8374 = vst [vmem:[#allocation20_spill] sm:$0xff] %v7524_v23  ;;  %v7528_v3 = vpop.f32.mrb[34].mxu0  ;;  %v7530_v46 = vpop.f32.mrb[34].mxu1  ;;  %v6695_v11 = vld [vmem:[%s7234_s10 + $0x558] sm:$0xff]  }
 0x1b7   : > { %8375 = vst [vmem:[#allocation21_spill] sm:$0xff] %v7528_v3  ;;  %8376 = vst [vmem:[#allocation22_spill] sm:$0xff] %v7530_v46  ;;  %v7534_v34 = vpop.f32.mrb[35].mxu0  ;;  %v7536_v35 = vpop.f32.mrb[35].mxu1  ;;  %v6693_v46 = vld [vmem:[%s7234_s10 + $0x248] sm:$0xff]  }
 0x1b8   : > { %8377 = vst [vmem:[#allocation23_spill] sm:$0xff] %v7534_v34  ;;  %8378 = vst [vmem:[#allocation24_spill] sm:$0xff] %v7536_v35 }
 0x1b9   : > { %6247 = vmatmul.mubr.bf16.gmra.mrb[140].mxu0 %v6689_v22  ;;  %6443 = vmatmul.mubr.bf16.gmra.mrb[140].mxu1 %v6691_v10  ;;  %v6696_v22 = vld [vmem:[%s7234_s10 + $0x250] sm:$0xff]   ;;  %v6698_v10 = vld [vmem:[%s7234_s10 + $0x560] sm:$0xff]  }
 0x1ba   : > { %6250 = vmatprep.mubr.bf16.mxu0 %v6692_v39  ;;  %6446 = vmatprep.mubr.bf16.mxu1 %v6694_v38 }
 0x1bc   : > { %v7538_v62 = vpop.f32.mrb[36].mxu0  ;;  %v7540_v63 = vpop.f32.mrb[36].mxu1 }
 0x1bd   : > { %8379 = vst [vmem:[#allocation25_spill] sm:$0xff] %v7538_v62  ;;  %8380 = vst [vmem:[#allocation26_spill] sm:$0xff] %v7540_v63  ;;  %v7542_v23 = vpop.f32.mrb[37].mxu0  ;;  %v7544_v3 = vpop.f32.mrb[37].mxu1 }
 0x1be   : > { %8381 = vst [vmem:[#allocation27_spill] sm:$0xff] %v7542_v23  ;;  %8382 = vst [vmem:[#allocation28_spill] sm:$0xff] %v7544_v3  ;;  %v7548_v47 = vpop.f32.mrb[38].mxu0  ;;  %v7550_v34 = vpop.f32.mrb[38].mxu1  ;;  %v6699_v23 = vld [vmem:[%s7234_s10 + $0x568] sm:$0xff]  }
 0x1bf   : > { %8383 = vst [vmem:[#allocation29_spill] sm:$0xff] %v7548_v47  ;;  %8384 = vst [vmem:[#allocation30_spill] sm:$0xff] %v7550_v34  ;;  %v7554_v39 = vpop.f32.mrb[39].mxu0  ;;  %v7556_v38 = vpop.f32.mrb[39].mxu1  ;;  %v6697_v34 = vld [vmem:[%s7234_s10 + $0x258] sm:$0xff]  }
 0x1c0   : > { %8385 = vst [vmem:[#allocation31_spill] sm:$0xff] %v7554_v39  ;;  %8386 = vst [vmem:[#allocation32_spill] sm:$0xff] %v7556_v38 }
 0x1c1   : > { %6251 = vmatmul.mubr.bf16.gmra.mrb[144].mxu0 %v6693_v46  ;;  %6447 = vmatmul.mubr.bf16.gmra.mrb[144].mxu1 %v6695_v11  ;;  %v6700_v46 = vld [vmem:[%s7234_s10 + $0x260] sm:$0xff]   ;;  %v6702_v11 = vld [vmem:[%s7234_s10 + $0x570] sm:$0xff]  }
 0x1c2   : > { %6254 = vmatprep.mubr.bf16.mxu0 %v6696_v22  ;;  %6450 = vmatprep.mubr.bf16.mxu1 %v6698_v10 }
 0x1c4   : > { %v7558_v63 = vpop.f32.mrb[40].mxu0  ;;  %v7560_v62 = vpop.f32.mrb[40].mxu1 }
 0x1c5   : > { %8387 = vst [vmem:[#allocation33_spill] sm:$0xff] %v7558_v63  ;;  %8388 = vst [vmem:[#allocation34_spill] sm:$0xff] %v7560_v62  ;;  %v7562_v3 = vpop.f32.mrb[41].mxu0  ;;  %v7564_v47 = vpop.f32.mrb[41].mxu1 }
 0x1c6   : > { %8389 = vst [vmem:[#allocation35_spill] sm:$0xff] %v7562_v3  ;;  %8390 = vst [vmem:[#allocation36_spill] sm:$0xff] %v7564_v47  ;;  %v7568_v35 = vpop.f32.mrb[42].mxu0  ;;  %v7570_v39 = vpop.f32.mrb[42].mxu1  ;;  %v6703_v3 = vld [vmem:[%s7234_s10 + $0x578] sm:$0xff]  }
 0x1c7   : > { %8391 = vst [vmem:[#allocation37_spill] sm:$0xff] %v7568_v35  ;;  %8392 = vst [vmem:[#allocation38_spill] sm:$0xff] %v7570_v39  ;;  %v7574_v22 = vpop.f32.mrb[43].mxu0  ;;  %v7576_v10 = vpop.f32.mrb[43].mxu1  ;;  %v6701_v39 = vld [vmem:[%s7234_s10 + $0x268] sm:$0xff]  }
 0x1c8   : > { %8393 = vst [vmem:[#allocation39_spill] sm:$0xff] %v7574_v22  ;;  %8394 = vst [vmem:[#allocation40_spill] sm:$0xff] %v7576_v10 }
 0x1c9   : > { %6255 = vmatmul.mubr.bf16.gmra.mrb[148].mxu0 %v6697_v34  ;;  %6451 = vmatmul.mubr.bf16.gmra.mrb[148].mxu1 %v6699_v23  ;;  %v6704_v34 = vld [vmem:[%s7234_s10 + $0x270] sm:$0xff]   ;;  %v6706_v23 = vld [vmem:[%s7234_s10 + $0x580] sm:$0xff]  }
 0x1ca   : > { %6258 = vmatprep.mubr.bf16.mxu0 %v6700_v46  ;;  %6454 = vmatprep.mubr.bf16.mxu1 %v6702_v11 }
 0x1cc   : > { %v7578_v62 = vpop.f32.mrb[44].mxu0  ;;  %v7580_v63 = vpop.f32.mrb[44].mxu1 }
 0x1cd   : > { %8395 = vst [vmem:[#allocation41_spill] sm:$0xff] %v7578_v62  ;;  %8396 = vst [vmem:[#allocation42_spill] sm:$0xff] %v7580_v63  ;;  %v7582_v47 = vpop.f32.mrb[45].mxu0  ;;  %v7584_v35 = vpop.f32.mrb[45].mxu1 }
 0x1ce   : > { %8397 = vst [vmem:[#allocation43_spill] sm:$0xff] %v7582_v47  ;;  %8398 = vst [vmem:[#allocation44_spill] sm:$0xff] %v7584_v35  ;;  %v7588_v38 = vpop.f32.mrb[46].mxu0  ;;  %v7590_v22 = vpop.f32.mrb[46].mxu1  ;;  %v6707_v47 = vld [vmem:[%s7234_s10 + $0x588] sm:$0xff]  }
 0x1cf   : > { %8399 = vst [vmem:[#allocation45_spill] sm:$0xff] %v7588_v38  ;;  %8400 = vst [vmem:[#allocation46_spill] sm:$0xff] %v7590_v22  ;;  %v7594_v46 = vpop.f32.mrb[47].mxu0  ;;  %v7596_v11 = vpop.f32.mrb[47].mxu1  ;;  %v6705_v22 = vld [vmem:[%s7234_s10 + $0x278] sm:$0xff]  }
 0x1d0   : > { %8401 = vst [vmem:[#allocation47_spill] sm:$0xff] %v7594_v46  ;;  %8402 = vst [vmem:[#allocation48_spill] sm:$0xff] %v7596_v11 }
 0x1d1   : > { %6259 = vmatmul.mubr.bf16.gmra.mrb[152].mxu0 %v6701_v39  ;;  %6455 = vmatmul.mubr.bf16.gmra.mrb[152].mxu1 %v6703_v3  ;;  %v6708_v39 = vld [vmem:[%s7234_s10 + $0x280] sm:$0xff]   ;;  %v6710_v3 = vld [vmem:[%s7234_s10 + $0x590] sm:$0xff]  }
 0x1d2   : > { %6262 = vmatprep.mubr.bf16.mxu0 %v6704_v34  ;;  %6458 = vmatprep.mubr.bf16.mxu1 %v6706_v23 }
 0x1d4   : > { %v7598_v63 = vpop.f32.mrb[48].mxu0  ;;  %v7600_v62 = vpop.f32.mrb[48].mxu1 }
 0x1d5   : > { %8403 = vst [vmem:[#allocation49_spill] sm:$0xff] %v7598_v63  ;;  %8404 = vst [vmem:[#allocation50_spill] sm:$0xff] %v7600_v62  ;;  %v7602_v35 = vpop.f32.mrb[49].mxu0  ;;  %v7604_v38 = vpop.f32.mrb[49].mxu1 }
 0x1d6   : > { %8405 = vst [vmem:[#allocation51_spill] sm:$0xff] %v7602_v35  ;;  %8406 = vst [vmem:[#allocation52_spill] sm:$0xff] %v7604_v38  ;;  %v7608_v10 = vpop.f32.mrb[50].mxu0  ;;  %v7610_v46 = vpop.f32.mrb[50].mxu1  ;;  %v6711_v35 = vld [vmem:[%s7234_s10 + $0x598] sm:$0xff]  }
 0x1d7   : > { %8407 = vst [vmem:[#allocation53_spill] sm:$0xff] %v7608_v10  ;;  %8408 = vst [vmem:[#allocation54_spill] sm:$0xff] %v7610_v46  ;;  %v7614_v34 = vpop.f32.mrb[51].mxu0  ;;  %v7616_v23 = vpop.f32.mrb[51].mxu1  ;;  %v6709_v46 = vld [vmem:[%s7234_s10 + $0x288] sm:$0xff]  }
 0x1d8   : > { %8409 = vst [vmem:[#allocation55_spill] sm:$0xff] %v7614_v34  ;;  %8410 = vst [vmem:[#allocation56_spill] sm:$0xff] %v7616_v23 }
 0x1d9   : > { %6263 = vmatmul.mubr.bf16.gmra.mrb[156].mxu0 %v6705_v22  ;;  %6459 = vmatmul.mubr.bf16.gmra.mrb[156].mxu1 %v6707_v47  ;;  %v6712_v22 = vld [vmem:[%s7234_s10 + $0x290] sm:$0xff]   ;;  %v6714_v47 = vld [vmem:[%s7234_s10 + $0x5a0] sm:$0xff]  }
 0x1da   : > { %6266 = vmatprep.mubr.bf16.mxu0 %v6708_v39  ;;  %6462 = vmatprep.mubr.bf16.mxu1 %v6710_v3 }
 0x1dc   : > { %v7618_v62 = vpop.f32.mrb[52].mxu0  ;;  %v7620_v63 = vpop.f32.mrb[52].mxu1 }
 0x1dd   : > { %8411 = vst [vmem:[#allocation57_spill] sm:$0xff] %v7618_v62  ;;  %8412 = vst [vmem:[#allocation58_spill] sm:$0xff] %v7620_v63  ;;  %v7622_v38 = vpop.f32.mrb[53].mxu0  ;;  %v7624_v10 = vpop.f32.mrb[53].mxu1 }
 0x1de   : > { %8413 = vst [vmem:[#allocation59_spill] sm:$0xff] %v7622_v38  ;;  %8414 = vst [vmem:[#allocation60_spill] sm:$0xff] %v7624_v10  ;;  %v7628_v11 = vpop.f32.mrb[54].mxu0  ;;  %v7630_v34 = vpop.f32.mrb[54].mxu1  ;;  %v6715_v38 = vld [vmem:[%s7234_s10 + $0x5a8] sm:$0xff]  }
 0x1df   : > { %8415 = vst [vmem:[#allocation61_spill] sm:$0xff] %v7628_v11  ;;  %8416 = vst [vmem:[#allocation62_spill] sm:$0xff] %v7630_v34  ;;  %v7634_v39 = vpop.f32.mrb[55].mxu0  ;;  %v7636_v3 = vpop.f32.mrb[55].mxu1  ;;  %v6713_v34 = vld [vmem:[%s7234_s10 + $0x298] sm:$0xff]  }
 0x1e0   : > { %8417 = vst [vmem:[#allocation63_spill] sm:$0xff] %v7634_v39  ;;  %8418 = vst [vmem:[#allocation64_spill] sm:$0xff] %v7636_v3 }
 0x1e1   : > { %6267 = vmatmul.mubr.bf16.gmra.mrb[160].mxu0 %v6709_v46  ;;  %6463 = vmatmul.mubr.bf16.gmra.mrb[160].mxu1 %v6711_v35  ;;  %v6716_v46 = vld [vmem:[%s7234_s10 + $0x2a0] sm:$0xff]   ;;  %v6718_v35 = vld [vmem:[%s7234_s10 + $0x5b0] sm:$0xff]  }
 0x1e2   : > { %6270 = vmatprep.mubr.bf16.mxu0 %v6712_v22  ;;  %6466 = vmatprep.mubr.bf16.mxu1 %v6714_v47 }
 0x1e4   : > { %v7638_v63 = vpop.f32.mrb[56].mxu0  ;;  %v7640_v62 = vpop.f32.mrb[56].mxu1 }
 0x1e5   : > { %8419 = vst [vmem:[#allocation65_spill] sm:$0xff] %v7638_v63  ;;  %8420 = vst [vmem:[#allocation66_spill] sm:$0xff] %v7640_v62  ;;  %v7642_v10 = vpop.f32.mrb[57].mxu0  ;;  %v7644_v11 = vpop.f32.mrb[57].mxu1 }
 0x1e6   : > { %8421 = vst [vmem:[#allocation67_spill] sm:$0xff] %v7642_v10  ;;  %8422 = vst [vmem:[#allocation68_spill] sm:$0xff] %v7644_v11  ;;  %v7648_v23 = vpop.f32.mrb[58].mxu0  ;;  %v7650_v39 = vpop.f32.mrb[58].mxu1  ;;  %v6719_v10 = vld [vmem:[%s7234_s10 + $0x5b8] sm:$0xff]  }
 0x1e7   : > { %8423 = vst [vmem:[#allocation69_spill] sm:$0xff] %v7648_v23  ;;  %8424 = vst [vmem:[#allocation70_spill] sm:$0xff] %v7650_v39  ;;  %v7654_v22 = vpop.f32.mrb[59].mxu0  ;;  %v7656_v47 = vpop.f32.mrb[59].mxu1  ;;  %v6717_v39 = vld [vmem:[%s7234_s10 + $0x2a8] sm:$0xff]  }
 0x1e8   : > { %8425 = vst [vmem:[#allocation71_spill] sm:$0xff] %v7654_v22  ;;  %8426 = vst [vmem:[#allocation72_spill] sm:$0xff] %v7656_v47 }
 0x1e9   : > { %6271 = vmatmul.mubr.bf16.gmra.mrb[164].mxu0 %v6713_v34  ;;  %6467 = vmatmul.mubr.bf16.gmra.mrb[164].mxu1 %v6715_v38  ;;  %v6720_v34 = vld [vmem:[%s7234_s10 + $0x2b0] sm:$0xff]   ;;  %v6722_v38 = vld [vmem:[%s7234_s10 + $0x5c0] sm:$0xff]  }
 0x1ea   : > { %6274 = vmatprep.mubr.bf16.mxu0 %v6716_v46  ;;  %6470 = vmatprep.mubr.bf16.mxu1 %v6718_v35 }
 0x1ec   : > { %v7658_v62 = vpop.f32.mrb[60].mxu0  ;;  %v7660_v63 = vpop.f32.mrb[60].mxu1 }
 0x1ed   : > { %8427 = vst [vmem:[#allocation73_spill] sm:$0xff] %v7658_v62  ;;  %8428 = vst [vmem:[#allocation74_spill] sm:$0xff] %v7660_v63  ;;  %v7662_v11 = vpop.f32.mrb[61].mxu0  ;;  %v7664_v23 = vpop.f32.mrb[61].mxu1 }
 0x1ee   : > { %8429 = vst [vmem:[#allocation75_spill] sm:$0xff] %v7662_v11  ;;  %8430 = vst [vmem:[#allocation76_spill] sm:$0xff] %v7664_v23  ;;  %v7668_v3 = vpop.f32.mrb[62].mxu0  ;;  %v7670_v22 = vpop.f32.mrb[62].mxu1  ;;  %v6723_v11 = vld [vmem:[%s7234_s10 + $0x5c8] sm:$0xff]  }
 0x1ef   : > { %8431 = vst [vmem:[#allocation77_spill] sm:$0xff] %v7668_v3  ;;  %8432 = vst [vmem:[#allocation78_spill] sm:$0xff] %v7670_v22  ;;  %v7674_v46 = vpop.f32.mrb[63].mxu0  ;;  %v7676_v35 = vpop.f32.mrb[63].mxu1  ;;  %v6721_v22 = vld [vmem:[%s7234_s10 + $0x2b8] sm:$0xff]  }
 0x1f0   : > { %8433 = vst [vmem:[#allocation79_spill] sm:$0xff] %v7674_v46  ;;  %8434 = vst [vmem:[#allocation80_spill] sm:$0xff] %v7676_v35 }
 0x1f1   : > { %6275 = vmatmul.mubr.bf16.gmra.mrb[168].mxu0 %v6717_v39  ;;  %6471 = vmatmul.mubr.bf16.gmra.mrb[168].mxu1 %v6719_v10  ;;  %v6724_v39 = vld [vmem:[%s7234_s10 + $0x2c0] sm:$0xff]   ;;  %v6726_v10 = vld [vmem:[%s7234_s10 + $0x5d0] sm:$0xff]  }
 0x1f2   : > { %6278 = vmatprep.mubr.bf16.mxu0 %v6720_v34  ;;  %6474 = vmatprep.mubr.bf16.mxu1 %v6722_v38 }
 0x1f4   : > { %v7678_v63 = vpop.f32.mrb[64].mxu0  ;;  %v7680_v62 = vpop.f32.mrb[64].mxu1 }
 0x1f5   : > { %8435 = vst [vmem:[#allocation81_spill] sm:$0xff] %v7678_v63  ;;  %8436 = vst [vmem:[#allocation82_spill] sm:$0xff] %v7680_v62  ;;  %v7682_v23 = vpop.f32.mrb[65].mxu0  ;;  %v7684_v3 = vpop.f32.mrb[65].mxu1 }
 0x1f6   : > { %8437 = vst [vmem:[#allocation83_spill] sm:$0xff] %v7682_v23  ;;  %8438 = vst [vmem:[#allocation84_spill] sm:$0xff] %v7684_v3  ;;  %v7688_v47 = vpop.f32.mrb[66].mxu0  ;;  %v7690_v46 = vpop.f32.mrb[66].mxu1  ;;  %v6727_v23 = vld [vmem:[%s7234_s10 + $0x5d8] sm:$0xff]  }
 0x1f7   : > { %8439 = vst [vmem:[#allocation85_spill] sm:$0xff] %v7688_v47  ;;  %8440 = vst [vmem:[#allocation86_spill] sm:$0xff] %v7690_v46  ;;  %v7694_v34 = vpop.f32.mrb[67].mxu0  ;;  %v7696_v38 = vpop.f32.mrb[67].mxu1  ;;  %v6725_v46 = vld [vmem:[%s7234_s10 + $0x2c8] sm:$0xff]  }
 0x1f8   : > { %8441 = vst [vmem:[#allocation87_spill] sm:$0xff] %v7694_v34  ;;  %8442 = vst [vmem:[#allocation88_spill] sm:$0xff] %v7696_v38 }
 0x1f9   : > { %6279 = vmatmul.mubr.bf16.gmra.mrb[172].mxu0 %v6721_v22  ;;  %6475 = vmatmul.mubr.bf16.gmra.mrb[172].mxu1 %v6723_v11  ;;  %v6728_v22 = vld [vmem:[%s7234_s10 + $0x2d0] sm:$0xff]   ;;  %v6730_v11 = vld [vmem:[%s7234_s10 + $0x5e0] sm:$0xff]  }
 0x1fa   : > { %6282 = vmatprep.mubr.bf16.mxu0 %v6724_v39  ;;  %6478 = vmatprep.mubr.bf16.mxu1 %v6726_v10 }
 0x1fc   : > { %v7698_v62 = vpop.f32.mrb[68].mxu0  ;;  %v7700_v63 = vpop.f32.mrb[68].mxu1 }
 0x1fd   : > { %8443 = vst [vmem:[#allocation89_spill] sm:$0xff] %v7698_v62  ;;  %8444 = vst [vmem:[#allocation90_spill] sm:$0xff] %v7700_v63  ;;  %v7702_v3 = vpop.f32.mrb[69].mxu0  ;;  %v7704_v47 = vpop.f32.mrb[69].mxu1 }
 0x1fe   : > { %8445 = vst [vmem:[#allocation91_spill] sm:$0xff] %v7702_v3  ;;  %8446 = vst [vmem:[#allocation92_spill] sm:$0xff] %v7704_v47  ;;  %v7708_v35 = vpop.f32.mrb[70].mxu0  ;;  %v7710_v34 = vpop.f32.mrb[70].mxu1  ;;  %v6731_v3 = vld [vmem:[%s7234_s10 + $0x5e8] sm:$0xff]  }
 0x1ff   : > { %8447 = vst [vmem:[#allocation93_spill] sm:$0xff] %v7708_v35  ;;  %8448 = vst [vmem:[#allocation94_spill] sm:$0xff] %v7710_v34  ;;  %v7714_v39 = vpop.f32.mrb[71].mxu0  ;;  %v7716_v10 = vpop.f32.mrb[71].mxu1  ;;  %v6729_v34 = vld [vmem:[%s7234_s10 + $0x2d8] sm:$0xff]  }
 0x200   : > { %8449 = vst [vmem:[#allocation95_spill] sm:$0xff] %v7714_v39  ;;  %8450 = vst [vmem:[#allocation96_spill] sm:$0xff] %v7716_v10 }
 0x201   : > { %6283 = vmatmul.mubr.bf16.gmra.mrb[176].mxu0 %v6725_v46  ;;  %6479 = vmatmul.mubr.bf16.gmra.mrb[176].mxu1 %v6727_v23  ;;  %v6732_v46 = vld [vmem:[%s7234_s10 + $0x2e0] sm:$0xff]   ;;  %v6734_v23 = vld [vmem:[%s7234_s10 + $0x5f0] sm:$0xff]  }
 0x202   : > { %6286 = vmatprep.mubr.bf16.mxu0 %v6728_v22  ;;  %6482 = vmatprep.mubr.bf16.mxu1 %v6730_v11 }
 0x204   : > { %v7718_v63 = vpop.f32.mrb[72].mxu0  ;;  %v7720_v62 = vpop.f32.mrb[72].mxu1 }
 0x205   : > { %8451 = vst [vmem:[#allocation97_spill] sm:$0xff] %v7718_v63  ;;  %8452 = vst [vmem:[#allocation98_spill] sm:$0xff] %v7720_v62  ;;  %v7722_v47 = vpop.f32.mrb[73].mxu0  ;;  %v7724_v35 = vpop.f32.mrb[73].mxu1 }
 0x206   : > { %8453 = vst [vmem:[#allocation99_spill] sm:$0xff] %v7722_v47  ;;  %8454 = vst [vmem:[#allocation100_spill] sm:$0xff] %v7724_v35  ;;  %v7728_v38 = vpop.f32.mrb[74].mxu0  ;;  %v7730_v39 = vpop.f32.mrb[74].mxu1  ;;  %v6735_v47 = vld [vmem:[%s7234_s10 + $0x5f8] sm:$0xff]  }
 0x207   : > { %8455 = vst [vmem:[#allocation101_spill] sm:$0xff] %v7728_v38  ;;  %8456 = vst [vmem:[#allocation102_spill] sm:$0xff] %v7730_v39  ;;  %v7734_v22 = vpop.f32.mrb[75].mxu0  ;;  %v7736_v11 = vpop.f32.mrb[75].mxu1  ;;  %v6733_v39 = vld [vmem:[%s7234_s10 + $0x2e8] sm:$0xff]  }
 0x208   : > { %8457 = vst [vmem:[#allocation103_spill] sm:$0xff] %v7734_v22  ;;  %8458 = vst [vmem:[#allocation104_spill] sm:$0xff] %v7736_v11 }
 0x209   : > { %6287 = vmatmul.mubr.bf16.gmra.mrb[180].mxu0 %v6729_v34  ;;  %6483 = vmatmul.mubr.bf16.gmra.mrb[180].mxu1 %v6731_v3  ;;  %v6736_v34 = vld [vmem:[%s7234_s10 + $0x2f0] sm:$0xff]   ;;  %v6738_v3 = vld [vmem:[%s7234_s10 + $0x600] sm:$0xff]  }
 0x20a   : > { %6290 = vmatprep.mubr.bf16.mxu0 %v6732_v46  ;;  %6486 = vmatprep.mubr.bf16.mxu1 %v6734_v23 }
 0x20c   : > { %v7738_v62 = vpop.f32.mrb[76].mxu0  ;;  %v7740_v63 = vpop.f32.mrb[76].mxu1 }
 0x20d   : > { %8459 = vst [vmem:[#allocation105_spill] sm:$0xff] %v7738_v62  ;;  %8460 = vst [vmem:[#allocation106_spill] sm:$0xff] %v7740_v63  ;;  %v7742_v35 = vpop.f32.mrb[77].mxu0  ;;  %v7744_v38 = vpop.f32.mrb[77].mxu1 }
 0x20e   : > { %8461 = vst [vmem:[#allocation107_spill] sm:$0xff] %v7742_v35  ;;  %8462 = vst [vmem:[#allocation108_spill] sm:$0xff] %v7744_v38  ;;  %v7748_v10 = vpop.f32.mrb[78].mxu0  ;;  %v7750_v22 = vpop.f32.mrb[78].mxu1  ;;  %v6739_v35 = vld [vmem:[%s7234_s10 + $0x608] sm:$0xff]  }
 0x20f   : > { %8463 = vst [vmem:[#allocation109_spill] sm:$0xff] %v7748_v10  ;;  %8464 = vst [vmem:[#allocation110_spill] sm:$0xff] %v7750_v22  ;;  %v7754_v46 = vpop.f32.mrb[79].mxu0  ;;  %v7756_v23 = vpop.f32.mrb[79].mxu1  ;;  %v6737_v22 = vld [vmem:[%s7234_s10 + $0x2f8] sm:$0xff]  }
 0x210   : > { %8465 = vst [vmem:[#allocation111_spill] sm:$0xff] %v7754_v46  ;;  %8466 = vst [vmem:[#allocation112_spill] sm:$0xff] %v7756_v23 }
 0x211   : > { %6291 = vmatmul.mubr.bf16.gmra.mrb[184].mxu0 %v6733_v39  ;;  %6487 = vmatmul.mubr.bf16.gmra.mrb[184].mxu1 %v6735_v47  ;;  %v6740_v39 = vld [vmem:[%s7234_s10 + $0x300] sm:$0xff]   ;;  %v6742_v47 = vld [vmem:[%s7234_s10 + $0x610] sm:$0xff]  }
 0x212   : > { %6294 = vmatprep.mubr.bf16.mxu0 %v6736_v34  ;;  %6490 = vmatprep.mubr.bf16.mxu1 %v6738_v3 }
 0x214   : > { %v7758_v63 = vpop.f32.mrb[80].mxu0  ;;  %v7760_v62 = vpop.f32.mrb[80].mxu1 }
 0x215   : > { %8467 = vst [vmem:[#allocation113_spill] sm:$0xff] %v7758_v63  ;;  %8468 = vst [vmem:[#allocation114_spill] sm:$0xff] %v7760_v62  ;;  %v7762_v38 = vpop.f32.mrb[81].mxu0  ;;  %v7764_v10 = vpop.f32.mrb[81].mxu1 }
 0x216   : > { %8469 = vst [vmem:[#allocation115_spill] sm:$0xff] %v7762_v38  ;;  %8470 = vst [vmem:[#allocation116_spill] sm:$0xff] %v7764_v10  ;;  %v7768_v11 = vpop.f32.mrb[82].mxu0  ;;  %v7770_v46 = vpop.f32.mrb[82].mxu1 }
 0x217   : > { %8471 = vst [vmem:[#allocation117_spill] sm:$0xff] %v7768_v11  ;;  %8472 = vst [vmem:[#allocation118_spill] sm:$0xff] %v7770_v46  ;;  %v7774_v34 = vpop.f32.mrb[83].mxu0  ;;  %v7776_v3 = vpop.f32.mrb[83].mxu1  ;;  %v6741_v11 = vld [vmem:[%s7234_s10 + $0x308] sm:$0xff]   ;;  %v6743_v46 = vld [vmem:[%s7234_s10 + $0x618] sm:$0xff]  }
 0x218   : > { %8473 = vst [vmem:[#allocation119_spill] sm:$0xff] %v7774_v34  ;;  %8474 = vst [vmem:[#allocation120_spill] sm:$0xff] %v7776_v3 }
 0x219   : > { %6295 = vmatmul.mubr.bf16.gmra.mrb[188].mxu0 %v6737_v22  ;;  %6491 = vmatmul.mubr.bf16.gmra.mrb[188].mxu1 %v6739_v35 }
 0x21a   : > { %6298 = vmatprep.mubr.bf16.mxu0 %v6740_v39  ;;  %6494 = vmatprep.mubr.bf16.mxu1 %v6742_v47 }
 0x21c   : > { %v7778_v62 = vpop.f32.mrb[84].mxu0  ;;  %v7780_v63 = vpop.f32.mrb[84].mxu1 }
 0x21d   : > { %8475 = vst [vmem:[#allocation121_spill] sm:$0xff] %v7778_v62  ;;  %8476 = vst [vmem:[#allocation122_spill] sm:$0xff] %v7780_v63  ;;  %v7782_v10 = vpop.f32.mrb[85].mxu0  ;;  %v7784_v38 = vpop.f32.mrb[85].mxu1 }
 0x21e   : > { %8477 = vst [vmem:[#allocation123_spill] sm:$0xff] %v7782_v10  ;;  %8478 = vst [vmem:[#allocation124_spill] sm:$0xff] %v7784_v38  ;;  %v7788_v23 = vpop.f32.mrb[86].mxu0  ;;  %v7790_v51 = vpop.f32.mrb[86].mxu1 }
 0x21f   : > { %8479 = vst [vmem:[#allocation125_spill] sm:$0xff] %v7788_v23  ;;  %8480 = vst [vmem:[#allocation126_spill] sm:$0xff] %v7790_v51  ;;  %v7792_v34 = vpop.f32.mrb[87].mxu0  ;;  %v7794_v35 = vpop.f32.mrb[87].mxu1 }
 0x220   : > { %8481 = vst [vmem:[#allocation127_spill] sm:$0xff] %v7792_v34  ;;  %8482 = vst [vmem:[#allocation128_spill] sm:$0xff] %v7794_v35 }
 0x221   : > { %6299 = vmatmul.mubr.bf16.gmra.mrb[192].mxu0 %v6741_v11  ;;  %6495 = vmatmul.mubr.bf16.gmra.mrb[192].mxu1 %v6743_v46 }
 0x224   : > { %v7796_v22 = vpop.f32.mrb[88].mxu0  ;;  %v7798_v39 = vpop.f32.mrb[88].mxu1 }
 0x225   : > { %8483 = vst [vmem:[#allocation129_spill] sm:$0xff] %v7796_v22  ;;  %8484 = vst [vmem:[#allocation130_spill] sm:$0xff] %v7798_v39  ;;  %v7800_v47 = vpop.f32.mrb[89].mxu0  ;;  %v7802_v63 = vpop.f32.mrb[89].mxu1 }
 0x226   : > { %8485 = vst [vmem:[#allocation131_spill] sm:$0xff] %v7800_v47  ;;  %8486 = vst [vmem:[#allocation132_spill] sm:$0xff] %v7802_v63  ;;  %v7804_v62 = vpop.f32.mrb[90].mxu0  ;;  %v7806_v23 = vpop.f32.mrb[90].mxu1 }
 0x227   : > { %8487 = vst [vmem:[#allocation133_spill] sm:$0xff] %v7804_v62  ;;  %8488 = vst [vmem:[#allocation134_spill] sm:$0xff] %v7806_v23  ;;  %v7808_v51 = vpop.f32.mrb[91].mxu0  ;;  %v7810_v34 = vpop.f32.mrb[91].mxu1 }
 0x228   : > { %8489 = vst [vmem:[#allocation135_spill] sm:$0xff] %v7808_v51  ;;  %8490 = vst [vmem:[#allocation136_spill] sm:$0xff] %v7810_v34 }
 0x22c   : > { %v7812_v38 = vpop.f32.mrb[92].mxu0  ;;  %v7814_v11 = vpop.f32.mrb[92].mxu1 }
 0x22d   : > { %8491 = vst [vmem:[#allocation137_spill] sm:$0xff] %v7812_v38  ;;  %8492 = vst [vmem:[#allocation138_spill] sm:$0xff] %v7814_v11  ;;  %v7816_v46 = vpop.f32.mrb[93].mxu0  ;;  %v7818_v22 = vpop.f32.mrb[93].mxu1 }
 0x22e   : > { %8493 = vst [vmem:[#allocation139_spill] sm:$0xff] %v7816_v46  ;;  %8494 = vst [vmem:[#allocation140_spill] sm:$0xff] %v7818_v22  ;;  %v7822_v39 = vpop.f32.mrb[94].mxu0  ;;  %v7824_v63 = vpop.f32.mrb[94].mxu1 }
 0x22f   : > { %8495 = vst [vmem:[#allocation141_spill] sm:$0xff] %v7822_v39  ;;  %8496 = vst [vmem:[#allocation142_spill] sm:$0xff] %v7824_v63  ;;  %v7826_v62 = vpop.f32.mrb[95].mxu0  ;;  %v7828_v23 = vpop.f32.mrb[95].mxu1 }
 0x230   : > { %8497 = vst [vmem:[#allocation143_spill] sm:$0xff] %v7826_v62  ;;  %8498 = vst [vmem:[#allocation144_spill] sm:$0xff] %v7828_v23  ;;  %v7844_v23 = vld [vmem:[%s8355_s2] ss:$0 sm:$0xff] }
 0x234   : > { %v6204_v34 = vpop.f32.mrb[96].mxu0  ;;  %v6400_v51 = vpop.f32.mrb[96].mxu1 }
 0x235   : > { %v5013_v38 = vmax.f32 %v7362_v60, %v6204_v34  ;;  %v7831_v11 = vpop.f32.mrb[97].mxu0  ;;  %v7833_v46 = vpop.f32.mrb[97].mxu1 }
 0x236   : > { %8499 = vst [vmem:[#allocation145_spill] sm:$0xff] %v7831_v11  ;;  %8500 = vst [vmem:[#allocation146_spill] sm:$0xff] %v7833_v46  ;;  %v6205_v22 = vpop.f32.mrb[98].mxu0  ;;  %v6401_v47 = vpop.f32.mrb[98].mxu1 }
 0x237   : > { %v5111_v39 = vmax.f32 %v5013_v38, %v7364_v61  ;;  %v5014_v63 = vmax.f32 %v7374_v4, %v6205_v22  ;;  %v7837_v35 = vpop.f32.mrb[99].mxu0  ;;  %v7839_v62 = vpop.f32.mrb[99].mxu1 }
 0x238   : > { %8501 = vst [vmem:[#allocation147_spill] sm:$0xff] %v7837_v35  ;;  %8502 = vst [vmem:[#allocation148_spill] sm:$0xff] %v7839_v62 }
 0x239   : > { %v5209_v60 = vmax.f32 %v5111_v39, %v6400_v51  ;;  %v5112_v34 = vmax.f32 %v5014_v63, %v7376_v5 }
 0x23b   : > { %v5314_v46 = vadd.f32 %v7844_v23, %v5209_v60  ;;  %v5210_v11 = vmax.f32 %v5112_v34, %v6401_v47 }
 0x23c   : > { %v6208_v61 = vpop.f32.mrb[100].mxu0  ;;  %v6404_v4 = vpop.f32.mrb[100].mxu1 }
 0x23d   : > { %v5412_v38 = vmax.f32 %v5314_v46, 0.0  ;;  %v5315_v22 = vadd.f32 %v7844_v23, %v5210_v11  ;;  %v5017_v51 = vmax.f32 %v7382_v8, %v6208_v61  ;;  %v3846_v39 = vpop.f32.mrb[101].mxu0  ;;  %v4630_v5 = vpop.f32.mrb[101].mxu1 }
 0x23e   : > { %v5015_v63 = vmax.f32 %v7358_v58, %v3846_v39  ;;  %v6209_v47 = vpop.f32.mrb[102].mxu0  ;;  %v6405_v60 = vpop.f32.mrb[102].mxu1 }
 0x23f   : > { %5511 = vst.msk [vmem:[%s7851_s28] sm:$0xff] %vm5510_vm0, %v5412_v38  ;;  %v5413_v34 = vmax.f32 %v5315_v22, 0.0  ;;  %v5115_v62 = vmax.f32 %v5017_v51, %v7384_v9  ;;  %v5018_v35 = vmax.f32 %v7394_v16, %v6209_v47  ;;  %v3849_v10 = vpop.f32.mrb[103].mxu0  ;;  %v4633_v46 = vpop.f32.mrb[103].mxu1 }
 0x240   : > { %v5113_v3 = vmax.f32 %v5015_v63, %v7360_v59  ;;  %v5016_v11 = vmax.f32 %v7368_v0, %v3849_v10 }
 0x241   : > { %5512 = vst.msk [vmem:[%s7851_s28 + $0x8] sm:$0xff] %vm5510_vm0, %v5413_v34  ;;  %v5213_v8 = vmax.f32 %v5115_v62, %v6404_v4  ;;  %v5116_v58 = vmax.f32 %v5018_v35, %v7396_v17 }
 0x242   : > { %v5211_v61 = vmax.f32 %v5113_v3, %v4630_v5  ;;  %v5114_v39 = vmax.f32 %v5016_v11, %v7370_v1 }
 0x243   : > { %v5318_v38 = vadd.f32 %v7844_v23, %v5213_v8  ;;  %v5214_v9 = vmax.f32 %v5116_v58, %v6405_v60 }
 0x244   : > { %v5316_v16 = vadd.f32 %v7844_v23, %v5211_v61  ;;  %v5212_v22 = vmax.f32 %v5114_v39, %v4633_v46  ;;  %v6212_v51 = vpop.f32.mrb[104].mxu0  ;;  %v6408_v47 = vpop.f32.mrb[104].mxu1 }
 0x245   : > { %v5416_v59 = vmax.f32 %v5318_v38, 0.0  ;;  %v5319_v0 = vadd.f32 %v7844_v23, %v5214_v9  ;;  %v5021_v62 = vmax.f32 %v7402_v20, %v6212_v51  ;;  %v3862_v10 = vpop.f32.mrb[105].mxu0  ;;  %v4646_v17 = vpop.f32.mrb[105].mxu1 }
 0x246   : > { %v5414_v3 = vmax.f32 %v5316_v16, 0.0  ;;  %v5317_v1 = vadd.f32 %v7844_v23, %v5212_v22  ;;  %v5019_v35 = vmax.f32 %v7378_v6, %v3862_v10  ;;  %v6213_v4 = vpop.f32.mrb[106].mxu0  ;;  %v6409_v5 = vpop.f32.mrb[106].mxu1 }
 0x247   : > { %5515 = vst.msk [vmem:[%s7851_s28 + $0x20] sm:$0xff] %vm5510_vm0, %v5416_v59  ;;  %v5417_v63 = vmax.f32 %v5319_v0, 0.0  ;;  %v5119_v60 = vmax.f32 %v5021_v62, %v7404_v21  ;;  %v5022_v34 = vmax.f32 %v7414_v28, %v6213_v4  ;;  %v3865_v46 = vpop.f32.mrb[107].mxu0  ;;  %v4649_v20 = vpop.f32.mrb[107].mxu1 }
 0x248   : > { %5513 = vst.msk [vmem:[%s7851_s28 + $0x10] sm:$0xff] %vm5510_vm0, %v5414_v3  ;;  %v5415_v11 = vmax.f32 %v5317_v1, 0.0  ;;  %v5117_v8 = vmax.f32 %v5019_v35, %v7380_v7  ;;  %v5020_v58 = vmax.f32 %v7388_v12, %v3865_v46 }
 0x249   : > { %5516 = vst.msk [vmem:[%s7851_s28 + $0x28] sm:$0xff] %vm5510_vm0, %v5417_v63  ;;  %v5217_v6 = vmax.f32 %v5119_v60, %v6408_v47  ;;  %v5120_v61 = vmax.f32 %v5022_v34, %v7416_v29 }
 0x24a   : > { %5514 = vst.msk [vmem:[%s7851_s28 + $0x18] sm:$0xff] %vm5510_vm0, %v5415_v11  ;;  %v5215_v39 = vmax.f32 %v5117_v8, %v4646_v17  ;;  %v5118_v21 = vmax.f32 %v5020_v58, %v7390_v13 }
 0x24b   : > { %v5322_v28 = vadd.f32 %v7844_v23, %v5217_v6  ;;  %v5218_v38 = vmax.f32 %v5120_v61, %v6409_v5 }
 0x24c   : > { %v5320_v9 = vadd.f32 %v7844_v23, %v5215_v39  ;;  %v5216_v16 = vmax.f32 %v5118_v21, %v4649_v20  ;;  %v6216_v7 = vpop.f32.mrb[108].mxu0  ;;  %v6412_v22 = vpop.f32.mrb[108].mxu1 }
 0x24d   : > { %v5420_v12 = vmax.f32 %v5322_v28, 0.0  ;;  %v5323_v51 = vadd.f32 %v7844_v23, %v5218_v38  ;;  %v5025_v29 = vmax.f32 %v7422_v32, %v6216_v7  ;;  %v3878_v47 = vpop.f32.mrb[109].mxu0  ;;  %v4662_v59 = vpop.f32.mrb[109].mxu1 }
 0x24e   : > { %v5418_v0 = vmax.f32 %v5320_v9, 0.0  ;;  %v5321_v13 = vadd.f32 %v7844_v23, %v5216_v16  ;;  %v5023_v62 = vmax.f32 %v7398_v18, %v3878_v47  ;;  %v6217_v10 = vpop.f32.mrb[110].mxu0  ;;  %v6413_v17 = vpop.f32.mrb[110].mxu1 }
 0x24f   : > { %5519 = vst.msk [vmem:[%s7851_s28 + $0x40] sm:$0xff] %vm5510_vm0, %v5420_v12  ;;  %v5421_v3 = vmax.f32 %v5323_v51, 0.0  ;;  %v5123_v1 = vmax.f32 %v5025_v29, %v7424_v33  ;;  %v5026_v35 = vmax.f32 %v7434_v40, %v6217_v10  ;;  %v3881_v4 = vpop.f32.mrb[111].mxu0  ;;  %v4665_v32 = vpop.f32.mrb[111].mxu1 }
 0x250   : > { %5517 = vst.msk [vmem:[%s7851_s28 + $0x30] sm:$0xff] %vm5510_vm0, %v5418_v0  ;;  %v5419_v5 = vmax.f32 %v5321_v13, 0.0  ;;  %v5121_v63 = vmax.f32 %v5023_v62, %v7400_v19  ;;  %v5024_v60 = vmax.f32 %v7408_v24, %v3881_v4 }
 0x251   : > { %5520 = vst.msk [vmem:[%s7851_s28 + $0x48] sm:$0xff] %vm5510_vm0, %v5421_v3  ;;  %v5221_v18 = vmax.f32 %v5123_v1, %v6412_v22  ;;  %v5124_v34 = vmax.f32 %v5026_v35, %v7436_v41 }
 0x252   : > { %5518 = vst.msk [vmem:[%s7851_s28 + $0x38] sm:$0xff] %vm5510_vm0, %v5419_v5  ;;  %v5219_v46 = vmax.f32 %v5121_v63, %v4662_v59  ;;  %v5122_v33 = vmax.f32 %v5024_v60, %v7410_v25 }
 0x253   : > { %v5326_v40 = vadd.f32 %v7844_v23, %v5221_v18  ;;  %v5222_v20 = vmax.f32 %v5124_v34, %v6413_v17 }
 0x254   : > { %v5324_v11 = vadd.f32 %v7844_v23, %v5219_v46  ;;  %v5220_v8 = vmax.f32 %v5122_v33, %v4665_v32  ;;  %v6220_v19 = vpop.f32.mrb[112].mxu0  ;;  %v6416_v58 = vpop.f32.mrb[112].mxu1 }
 0x255   : > { %v5424_v24 = vmax.f32 %v5326_v40, 0.0  ;;  %v5327_v6 = vadd.f32 %v7844_v23, %v5222_v20  ;;  %v5029_v41 = vmax.f32 %v7442_v44, %v6220_v19  ;;  %v3894_v61 = vpop.f32.mrb[113].mxu0  ;;  %v4678_v39 = vpop.f32.mrb[113].mxu1 }
 0x256   : > { %v5422_v21 = vmax.f32 %v5324_v11, 0.0  ;;  %v5325_v25 = vadd.f32 %v7844_v23, %v5220_v8  ;;  %v5027_v28 = vmax.f32 %v7418_v30, %v3894_v61  ;;  %v6221_v38 = vpop.f32.mrb[114].mxu0  ;;  %v6417_v9 = vpop.f32.mrb[114].mxu1 }
 0x257   : > { %5523 = vst.msk [vmem:[%s7851_s28 + $0x60] sm:$0xff] %vm5510_vm0, %v5424_v24  ;;  %v5425_v16 = vmax.f32 %v5327_v6, 0.0  ;;  %v5127_v7 = vmax.f32 %v5029_v41, %v7444_v45  ;;  %v5030_v22 = vmax.f32 %v7454_v52, %v6221_v38  ;;  %v3897_v12 = vpop.f32.mrb[115].mxu0  ;;  %v4681_v44 = vpop.f32.mrb[115].mxu1 }
 0x258   : > { %5521 = vst.msk [vmem:[%s7851_s28 + $0x50] sm:$0xff] %vm5510_vm0, %v5422_v21  ;;  %v5423_v51 = vmax.f32 %v5325_v25, 0.0  ;;  %v5125_v29 = vmax.f32 %v5027_v28, %v7420_v31  ;;  %v5028_v47 = vmax.f32 %v7428_v36, %v3897_v12 }
 0x259   : > { %5524 = vst.msk [vmem:[%s7851_s28 + $0x68] sm:$0xff] %vm5510_vm0, %v5425_v16  ;;  %v5225_v30 = vmax.f32 %v5127_v7, %v6416_v58  ;;  %v5128_v59 = vmax.f32 %v5030_v22, %v7456_v53 }
 0x25a   : > { %5522 = vst.msk [vmem:[%s7851_s28 + $0x58] sm:$0xff] %vm5510_vm0, %v5423_v51  ;;  %v5223_v0 = vmax.f32 %v5125_v29, %v4678_v39  ;;  %v5126_v45 = vmax.f32 %v5028_v47, %v7430_v37  ;;  %v8503_v29 = vld [vmem:[#allocation8_spill] sm:$0xff] }
 0x25b   : > { %v5330_v52 = vadd.f32 %v7844_v23, %v5225_v30  ;;  %v5226_v13 = vmax.f32 %v5128_v59, %v6417_v9 }
 0x25c   : > { %v5328_v62 = vadd.f32 %v7844_v23, %v5223_v0  ;;  %v5224_v10 = vmax.f32 %v5126_v45, %v4681_v44  ;;  %v6224_v31 = vpop.f32.mrb[116].mxu0  ;;  %v6420_v17 = vpop.f32.mrb[116].mxu1 }
 0x25d   : > { %v5428_v36 = vmax.f32 %v5330_v52, 0.0  ;;  %v5331_v3 = vadd.f32 %v7844_v23, %v5226_v13  ;;  %v5033_v53 = vmax.f32 %v7462_v56, %v6224_v31  ;;  %v3910_v1 = vpop.f32.mrb[117].mxu0  ;;  %v4694_v35 = vpop.f32.mrb[117].mxu1 }
 0x25e   : > { %v5426_v4 = vmax.f32 %v5328_v62, 0.0  ;;  %v5329_v37 = vadd.f32 %v7844_v23, %v5224_v10  ;;  %v5031_v32 = vmax.f32 %v7438_v42, %v3910_v1  ;;  %v6225_v5 = vpop.f32.mrb[118].mxu0  ;;  %v6421_v63 = vpop.f32.mrb[118].mxu1  ;;  %v8505_v10 = vld [vmem:[#allocation11_spill] sm:$0xff]  ;;  %v8506_v1 = vld [vmem:[#allocation4_spill] sm:$0xff] }
 0x25f   : > { %5527 = vst.msk [vmem:[%s7851_s28 + $0x80] sm:$0xff] %vm5510_vm0, %v5428_v36  ;;  %v5429_v60 = vmax.f32 %v5331_v3, 0.0  ;;  %v5131_v18 = vmax.f32 %v5033_v53, %v7464_v57  ;;  %v5034_v34 = vmax.f32 %v7474_v14, %v6225_v5  ;;  %v3913_v46 = vpop.f32.mrb[119].mxu0  ;;  %v4697_v56 = vpop.f32.mrb[119].mxu1  ;;  %v8507_v5 = vld [vmem:[#allocation12_spill] sm:$0xff] }
 0x260   : > { %5525 = vst.msk [vmem:[%s7851_s28 + $0x70] sm:$0xff] %vm5510_vm0, %v5426_v4  ;;  %v5427_v33 = vmax.f32 %v5329_v37, 0.0  ;;  %v5129_v40 = vmax.f32 %v5031_v32, %v7440_v43  ;;  %v5032_v20 = vmax.f32 %v7448_v48, %v3913_v46 }
 0x261   : > { %5528 = vst.msk [vmem:[%s7851_s28 + $0x88] sm:$0xff] %vm5510_vm0, %v5429_v60  ;;  %v5229_v42 = vmax.f32 %v5131_v18, %v6420_v17  ;;  %v5132_v11 = vmax.f32 %v5034_v34, %v7476_v15  ;;  %v8508_v60 = vld [vmem:[#allocation15_spill] sm:$0xff] }
 0x262   : > { %5526 = vst.msk [vmem:[%s7851_s28 + $0x78] sm:$0xff] %vm5510_vm0, %v5427_v33  ;;  %v5227_v8 = vmax.f32 %v5129_v40, %v4694_v35  ;;  %v5130_v57 = vmax.f32 %v5032_v20, %v7450_v49  ;;  %v8509_v33 = vld [vmem:[#allocation5_spill] sm:$0xff]  ;;  %v8510_v20 = vld [vmem:[#allocation6_spill] sm:$0xff] }
 0x263   : > { %v5334_v14 = vadd.f32 %v7844_v23, %v5229_v42  ;;  %v5230_v19 = vmax.f32 %v5132_v11, %v6421_v63 }
 0x264   : > { %v5332_v58 = vadd.f32 %v7844_v23, %v5227_v8  ;;  %v5228_v24 = vmax.f32 %v5130_v57, %v4697_v56  ;;  %v6228_v43 = vpop.f32.mrb[120].mxu0  ;;  %v6424_v6 = vpop.f32.mrb[120].mxu1  ;;  %v8511_v8 = vld [vmem:[#allocation16_spill] sm:$0xff] }
 0x265   : > { %v5432_v48 = vmax.f32 %v5334_v14, 0.0  ;;  %v5335_v41 = vadd.f32 %v7844_v23, %v5230_v19  ;;  %v5037_v15 = vmax.f32 %v7482_v26, %v6228_v43  ;;  %v3926_v61 = vpop.f32.mrb[121].mxu0  ;;  %v4710_v39 = vpop.f32.mrb[121].mxu1  ;;  %v8512_v19 = vld [vmem:[#allocation7_spill] sm:$0xff] }
 0x266   : > { %v5430_v21 = vmax.f32 %v5332_v58, 0.0  ;;  %v5333_v49 = vadd.f32 %v7844_v23, %v5228_v24  ;;  %v5035_v25 = vmax.f32 %v7458_v54, %v3926_v61  ;;  %v6229_v28 = vpop.f32.mrb[122].mxu0  ;;  %v6425_v38 = vpop.f32.mrb[122].mxu1 }
 0x267   : > { %5531 = vst.msk [vmem:[%s7851_s28 + $0xa0] sm:$0xff] %vm5510_vm0, %v5432_v48  ;;  %v5433_v9 = vmax.f32 %v5335_v41, 0.0  ;;  %v5135_v16 = vmax.f32 %v5037_v15, %v7484_v27  ;;  %v5038_v7 = vmax.f32 %v7494_v50, %v6229_v28  ;;  %v3929_v22 = vpop.f32.mrb[123].mxu0  ;;  %v4713_v26 = vpop.f32.mrb[123].mxu1  ;;  %v8504_v27 = vld [vmem:[#allocation3_spill] sm:$0xff] }
 0x268   : > { %5529 = vst.msk [vmem:[%s7851_s28 + $0x90] sm:$0xff] %vm5510_vm0, %v5430_v21  ;;  %v5431_v12 = vmax.f32 %v5333_v49, 0.0  ;;  %v5133_v44 = vmax.f32 %v5035_v25, %v7460_v55  ;;  %v5036_v51 = vmax.f32 %v7468_v2, %v3929_v22  ;;  %v8513_v21 = vld [vmem:[#allocation19_spill] sm:$0xff] }
 0x269   : > { %5532 = vst.msk [vmem:[%s7851_s28 + $0xa8] sm:$0xff] %vm5510_vm0, %v5433_v9  ;;  %v5233_v54 = vmax.f32 %v5135_v16, %v6424_v6  ;;  %v5136_v47 = vmax.f32 %v5038_v7, %v8503_v29  ;;  %v8514_v16 = vld [vmem:[#allocation9_spill] sm:$0xff] }
 0x26a   : > { %5530 = vst.msk [vmem:[%s7851_s28 + $0x98] sm:$0xff] %vm5510_vm0, %v5431_v12  ;;  %v5231_v30 = vmax.f32 %v5133_v44, %v4710_v39  ;;  %v5134_v59 = vmax.f32 %v5036_v51, %v8504_v27  ;;  %v8515_v44 = vld [vmem:[#allocation20_spill] sm:$0xff] }
 0x26b   : > { %v5338_v50 = vadd.f32 %v7844_v23, %v5233_v54  ;;  %v5234_v0 = vmax.f32 %v5136_v47, %v6425_v38  ;;  %v8516_v54 = vld [vmem:[#allocation23_spill] sm:$0xff] }
 0x26c   : > { %v5336_v45 = vadd.f32 %v7844_v23, %v5231_v30  ;;  %v5232_v52 = vmax.f32 %v5134_v59, %v4713_v26  ;;  %v6232_v55 = vpop.f32.mrb[124].mxu0  ;;  %v6428_v13 = vpop.f32.mrb[124].mxu1  ;;  %v8517_v59 = vld [vmem:[#allocation10_spill] sm:$0xff] }
 0x26d   : > { %v5436_v2 = vmax.f32 %v5338_v50, 0.0  ;;  %v5339_v62 = vadd.f32 %v7844_v23, %v5234_v0  ;;  %v5041_v31 = vmax.f32 %v8505_v10, %v6232_v55  ;;  %v3942_v17 = vpop.f32.mrb[125].mxu0  ;;  %v4726_v36 = vpop.f32.mrb[125].mxu1  ;;  %v8518_v0 = vld [vmem:[#allocation13_spill] sm:$0xff]  ;;  %v8519_v55 = vld [vmem:[#allocation24_spill] sm:$0xff] }
 0x26e   : > { %v5434_v3 = vmax.f32 %v5336_v45, 0.0  ;;  %v5337_v53 = vadd.f32 %v7844_v23, %v5232_v52  ;;  %v5039_v35 = vmax.f32 %v8506_v1, %v3942_v17  ;;  %v6233_v4 = vpop.f32.mrb[126].mxu0  ;;  %v6429_v37 = vpop.f32.mrb[126].mxu1 }
 0x26f   : > { %5535 = vst.msk [vmem:[%s7851_s28 + $0xc0] sm:$0xff] %vm5510_vm0, %v5436_v2  ;;  %v5437_v32 = vmax.f32 %v5339_v62, 0.0  ;;  %v5139_v63 = vmax.f32 %v5041_v31, %v8507_v5  ;;  %v5042_v18 = vmax.f32 %v8508_v60, %v6233_v4  ;;  %v3945_v34 = vpop.f32.mrb[127].mxu0  ;;  %v4729_v46 = vpop.f32.mrb[127].mxu1  ;;  %v8520_v62 = vld [vmem:[#allocation14_spill] sm:$0xff] }
 0x270   : > { %5533 = vst.msk [vmem:[%s7851_s28 + $0xb0] sm:$0xff] %vm5510_vm0, %v5434_v3  ;;  %v5435_v56 = vmax.f32 %v5337_v53, 0.0  ;;  %v5137_v40 = vmax.f32 %v5039_v35, %v8509_v33  ;;  %v5040_v42 = vmax.f32 %v8510_v20, %v3945_v34  ;;  %v8522_v34 = vld [vmem:[#allocation17_spill] sm:$0xff]  ;;  %v8523_v20 = vld [vmem:[#allocation28_spill] sm:$0xff] }
 0x271   : > { %5536 = vst.msk [vmem:[%s7851_s28 + $0xc8] sm:$0xff] %vm5510_vm0, %v5437_v32  ;;  %v5237_v11 = vmax.f32 %v5139_v63, %v6428_v13  ;;  %v5140_v57 = vmax.f32 %v5042_v18, %v8511_v8 }
 0x272   : > { %5534 = vst.msk [vmem:[%s7851_s28 + $0xb8] sm:$0xff] %vm5510_vm0, %v5435_v56  ;;  %v5235_v14 = vmax.f32 %v5137_v40, %v4726_v36  ;;  %v5138_v58 = vmax.f32 %v5040_v42, %v8512_v19 }
 0x273   : > { %v5342_v24 = vadd.f32 %v7844_v23, %v5237_v11  ;;  %v5238_v43 = vmax.f32 %v5140_v57, %v6429_v37  ;;  %v8521_v37 = vld [vmem:[#allocation27_spill] sm:$0xff] }
 0x274   : > { %v5340_v6 = vadd.f32 %v7844_v23, %v5235_v14  ;;  %v5236_v48 = vmax.f32 %v5138_v58, %v4729_v46  ;;  %v6236_v41 = vpop.f32.mrb[128].mxu0  ;;  %v6432_v15 = vpop.f32.mrb[128].mxu1  ;;  %v8524_v11 = vld [vmem:[#allocation31_spill] sm:$0xff]  ;;  %v8525_v58 = vld [vmem:[#allocation18_spill] sm:$0xff] }
 0x275   : > { %v5440_v61 = vmax.f32 %v5342_v24, 0.0  ;;  %v5343_v39 = vadd.f32 %v7844_v23, %v5238_v43  ;;  %v5045_v49 = vmax.f32 %v8513_v21, %v6236_v41  ;;  %v3958_v25 = vpop.f32.mrb[129].mxu0  ;;  %v4742_v28 = vpop.f32.mrb[129].mxu1  ;;  %v8526_v43 = vld [vmem:[#allocation21_spill] sm:$0xff]  ;;  %v8527_v41 = vld [vmem:[#allocation32_spill] sm:$0xff] }
 0x276   : > { %v5438_v38 = vmax.f32 %v5340_v6, 0.0  ;;  %v5341_v9 = vadd.f32 %v7844_v23, %v5236_v48  ;;  %v5043_v7 = vmax.f32 %v8514_v16, %v3958_v25  ;;  %v6237_v22 = vpop.f32.mrb[130].mxu0  ;;  %v6433_v26 = vpop.f32.mrb[130].mxu1 }
 0x277   : > { %5539 = vst.msk [vmem:[%s7851_s28 + $0xe0] sm:$0xff] %vm5510_vm0, %v5440_v61  ;;  %v5441_v12 = vmax.f32 %v5343_v39, 0.0  ;;  %v5143_v51 = vmax.f32 %v5045_v49, %v8515_v44  ;;  %v5046_v29 = vmax.f32 %v8516_v54, %v6237_v22  ;;  %v3961_v47 = vpop.f32.mrb[131].mxu0  ;;  %v4745_v30 = vpop.f32.mrb[131].mxu1  ;;  %v8528_v39 = vld [vmem:[#allocation22_spill] sm:$0xff] }
 0x278   : > { %5537 = vst.msk [vmem:[%s7851_s28 + $0xd0] sm:$0xff] %vm5510_vm0, %v5438_v38  ;;  %v5439_v27 = vmax.f32 %v5341_v9, 0.0  ;;  %v5141_v50 = vmax.f32 %v5043_v7, %v8517_v59  ;;  %v5044_v45 = vmax.f32 %v8518_v0, %v3961_v47  ;;  %v8530_v47 = vld [vmem:[#allocation25_spill] sm:$0xff]  ;;  %v8531_v0 = vld [vmem:[#allocation36_spill] sm:$0xff] }
 0x279   : > { %5540 = vst.msk [vmem:[%s7851_s28 + $0xe8] sm:$0xff] %vm5510_vm0, %v5441_v12  ;;  %v5241_v52 = vmax.f32 %v5143_v51, %v6432_v15  ;;  %v5144_v13 = vmax.f32 %v5046_v29, %v8519_v55 }
 0x27a   : > { %5538 = vst.msk [vmem:[%s7851_s28 + $0xd8] sm:$0xff] %vm5510_vm0, %v5439_v27  ;;  %v5239_v2 = vmax.f32 %v5141_v50, %v4742_v28  ;;  %v5142_v10 = vmax.f32 %v5044_v45, %v8520_v62 }
 0x27b   : > { %v5346_v31 = vadd.f32 %v7844_v23, %v5241_v52  ;;  %v5242_v17 = vmax.f32 %v5144_v13, %v6433_v26  ;;  %v8529_v26 = vld [vmem:[#allocation35_spill] sm:$0xff] }
 0x27c   : > { %v5344_v36 = vadd.f32 %v7844_v23, %v5239_v2  ;;  %v5240_v3 = vmax.f32 %v5142_v10, %v4745_v30  ;;  %v6240_v53 = vpop.f32.mrb[132].mxu0  ;;  %v6436_v1 = vpop.f32.mrb[132].mxu1  ;;  %v8532_v52 = vld [vmem:[#allocation39_spill] sm:$0xff]  ;;  %v8533_v10 = vld [vmem:[#allocation26_spill] sm:$0xff] }
 0x27d   : > { %v5444_v35 = vmax.f32 %v5346_v31, 0.0  ;;  %v5347_v4 = vadd.f32 %v7844_v23, %v5242_v17  ;;  %v5049_v32 = vmax.f32 %v8521_v37, %v6240_v53  ;;  %v3974_v5 = vpop.f32.mrb[133].mxu0  ;;  %v4758_v63 = vpop.f32.mrb[133].mxu1  ;;  %v8534_v17 = vld [vmem:[#allocation29_spill] sm:$0xff]  ;;  %v8535_v53 = vld [vmem:[#allocation40_spill] sm:$0xff] }
 0x27e   : > { %v5442_v60 = vmax.f32 %v5344_v36, 0.0  ;;  %v5345_v18 = vadd.f32 %v7844_v23, %v5240_v3  ;;  %v5047_v46 = vmax.f32 %v8522_v34, %v3974_v5  ;;  %v6241_v56 = vpop.f32.mrb[134].mxu0  ;;  %v6437_v33 = vpop.f32.mrb[134].mxu1 }
 0x27f   : > { %5543 = vst.msk [vmem:[%s7851_s28 + $0x100] sm:$0xff] %vm5510_vm0, %v5444_v35  ;;  %v5445_v40 = vmax.f32 %v5347_v4, 0.0  ;;  %v5147_v42 = vmax.f32 %v5049_v32, %v8523_v20  ;;  %v5050_v8 = vmax.f32 %v8524_v11, %v6241_v56  ;;  %v3977_v57 = vpop.f32.mrb[135].mxu0  ;;  %v4761_v14 = vpop.f32.mrb[135].mxu1  ;;  %v8536_v4 = vld [vmem:[#allocation30_spill] sm:$0xff] }
 0x280   : > { %5541 = vst.msk [vmem:[%s7851_s28 + $0xf0] sm:$0xff] %vm5510_vm0, %v5442_v60  ;;  %v5443_v19 = vmax.f32 %v5345_v18, 0.0  ;;  %v5145_v24 = vmax.f32 %v5047_v46, %v8525_v58  ;;  %v5048_v6 = vmax.f32 %v8526_v43, %v3977_v57  ;;  %v8538_v57 = vld [vmem:[#allocation33_spill] sm:$0xff]  ;;  %v8539_v43 = vld [vmem:[#allocation44_spill] sm:$0xff] }
 0x281   : > { %5544 = vst.msk [vmem:[%s7851_s28 + $0x108] sm:$0xff] %vm5510_vm0, %v5445_v40  ;;  %v5245_v48 = vmax.f32 %v5147_v42, %v6436_v1  ;;  %v5148_v15 = vmax.f32 %v5050_v8, %v8527_v41 }
 0x282   : > { %5542 = vst.msk [vmem:[%s7851_s28 + $0xf8] sm:$0xff] %vm5510_vm0, %v5443_v19  ;;  %v5243_v61 = vmax.f32 %v5145_v24, %v4758_v63  ;;  %v5146_v21 = vmax.f32 %v5048_v6, %v8528_v39 }
 0x283   : > { %v5350_v49 = vadd.f32 %v7844_v23, %v5245_v48  ;;  %v5246_v25 = vmax.f32 %v5148_v15, %v6437_v33  ;;  %v8537_v33 = vld [vmem:[#allocation43_spill] sm:$0xff] }
 0x284   : > { %v5348_v28 = vadd.f32 %v7844_v23, %v5243_v61  ;;  %v5244_v38 = vmax.f32 %v5146_v21, %v4761_v14  ;;  %v6244_v9 = vpop.f32.mrb[136].mxu0  ;;  %v6440_v16 = vpop.f32.mrb[136].mxu1  ;;  %v8540_v48 = vld [vmem:[#allocation47_spill] sm:$0xff]  ;;  %v8541_v21 = vld [vmem:[#allocation34_spill] sm:$0xff] }
 0x285   : > { %v5448_v7 = vmax.f32 %v5350_v49, 0.0  ;;  %v5351_v22 = vadd.f32 %v7844_v23, %v5246_v25  ;;  %v5053_v12 = vmax.f32 %v8529_v26, %v6244_v9  ;;  %v3990_v44 = vpop.f32.mrb[137].mxu0  ;;  %v4774_v51 = vpop.f32.mrb[137].mxu1  ;;  %v8542_v25 = vld [vmem:[#allocation37_spill] sm:$0xff]  ;;  %v8543_v9 = vld [vmem:[#allocation48_spill] sm:$0xff] }
 0x286   : > { %v5446_v54 = vmax.f32 %v5348_v28, 0.0  ;;  %v5349_v29 = vadd.f32 %v7844_v23, %v5244_v38  ;;  %v5051_v30 = vmax.f32 %v8530_v47, %v3990_v44  ;;  %v6245_v27 = vpop.f32.mrb[138].mxu0  ;;  %v6441_v59 = vpop.f32.mrb[138].mxu1 }
 0x287   : > { %5547 = vst.msk [vmem:[%s7851_s28 + $0x120] sm:$0xff] %vm5510_vm0, %v5448_v7  ;;  %v5449_v50 = vmax.f32 %v5351_v22, 0.0  ;;  %v5151_v45 = vmax.f32 %v5053_v12, %v8531_v0  ;;  %v5054_v55 = vmax.f32 %v8532_v52, %v6245_v27  ;;  %v3993_v13 = vpop.f32.mrb[139].mxu0  ;;  %v4777_v2 = vpop.f32.mrb[139].mxu1  ;;  %v8544_v22 = vld [vmem:[#allocation38_spill] sm:$0xff] }
 0x288   : > { %5545 = vst.msk [vmem:[%s7851_s28 + $0x110] sm:$0xff] %vm5510_vm0, %v5446_v54  ;;  %v5447_v62 = vmax.f32 %v5349_v29, 0.0  ;;  %v5149_v31 = vmax.f32 %v5051_v30, %v8533_v10  ;;  %v5052_v36 = vmax.f32 %v8534_v17, %v3993_v13  ;;  %v8546_v13 = vld [vmem:[#allocation41_spill] sm:$0xff]  ;;  %v8547_v17 = vld [vmem:[#allocation52_spill] sm:$0xff] }
 0x289   : > { %5548 = vst.msk [vmem:[%s7851_s28 + $0x128] sm:$0xff] %vm5510_vm0, %v5449_v50  ;;  %v5249_v3 = vmax.f32 %v5151_v45, %v6440_v16  ;;  %v5152_v1 = vmax.f32 %v5054_v55, %v8535_v53 }
 0x28a   : > { %5546 = vst.msk [vmem:[%s7851_s28 + $0x118] sm:$0xff] %vm5510_vm0, %v5447_v62  ;;  %v5247_v35 = vmax.f32 %v5149_v31, %v4774_v51  ;;  %v5150_v37 = vmax.f32 %v5052_v36, %v8536_v4 }
 0x28b   : > { %v5354_v32 = vadd.f32 %v7844_v23, %v5249_v3  ;;  %v5250_v5 = vmax.f32 %v5152_v1, %v6441_v59  ;;  %v8545_v59 = vld [vmem:[#allocation51_spill] sm:$0xff] }
 0x28c   : > { %v5352_v63 = vadd.f32 %v7844_v23, %v5247_v35  ;;  %v5248_v60 = vmax.f32 %v5150_v37, %v4777_v2  ;;  %v6248_v18 = vpop.f32.mrb[140].mxu0  ;;  %v6444_v34 = vpop.f32.mrb[140].mxu1  ;;  %v8548_v3 = vld [vmem:[#allocation55_spill] sm:$0xff]  ;;  %v8549_v37 = vld [vmem:[#allocation42_spill] sm:$0xff] }
 0x28d   : > { %v5452_v46 = vmax.f32 %v5354_v32, 0.0  ;;  %v5355_v56 = vadd.f32 %v7844_v23, %v5250_v5  ;;  %v5057_v40 = vmax.f32 %v8537_v33, %v6248_v18  ;;  %v4006_v20 = vpop.f32.mrb[141].mxu0  ;;  %v4790_v42 = vpop.f32.mrb[141].mxu1  ;;  %v8550_v5 = vld [vmem:[#allocation45_spill] sm:$0xff]  ;;  %v8551_v18 = vld [vmem:[#allocation56_spill] sm:$0xff] }
 0x28e   : > { %v5450_v11 = vmax.f32 %v5352_v63, 0.0  ;;  %v5353_v8 = vadd.f32 %v7844_v23, %v5248_v60  ;;  %v5055_v14 = vmax.f32 %v8538_v57, %v4006_v20  ;;  %v6249_v19 = vpop.f32.mrb[142].mxu0  ;;  %v6445_v58 = vpop.f32.mrb[142].mxu1 }
 0x28f   : > { %5551 = vst.msk [vmem:[%s7851_s28 + $0x140] sm:$0xff] %vm5510_vm0, %v5452_v46  ;;  %v5453_v24 = vmax.f32 %v5355_v56, 0.0  ;;  %v5155_v6 = vmax.f32 %v5057_v40, %v8539_v43  ;;  %v5058_v41 = vmax.f32 %v8540_v48, %v6249_v19  ;;  %v4009_v15 = vpop.f32.mrb[143].mxu0  ;;  %v4793_v61 = vpop.f32.mrb[143].mxu1  ;;  %v8552_v56 = vld [vmem:[#allocation46_spill] sm:$0xff] }
 0x290   : > { %5549 = vst.msk [vmem:[%s7851_s28 + $0x130] sm:$0xff] %vm5510_vm0, %v5450_v11  ;;  %v5451_v39 = vmax.f32 %v5353_v8, 0.0  ;;  %v5153_v49 = vmax.f32 %v5055_v14, %v8541_v21  ;;  %v5056_v28 = vmax.f32 %v8542_v25, %v4009_v15  ;;  %v8554_v15 = vld [vmem:[#allocation49_spill] sm:$0xff]  ;;  %v8555_v25 = vld [vmem:[#allocation60_spill] sm:$0xff] }
 0x291   : > { %5552 = vst.msk [vmem:[%s7851_s28 + $0x148] sm:$0xff] %vm5510_vm0, %v5453_v24  ;;  %v5253_v38 = vmax.f32 %v5155_v6, %v6444_v34  ;;  %v5156_v16 = vmax.f32 %v5058_v41, %v8543_v9 }
 0x292   : > { %5550 = vst.msk [vmem:[%s7851_s28 + $0x138] sm:$0xff] %vm5510_vm0, %v5451_v39  ;;  %v5251_v7 = vmax.f32 %v5153_v49, %v4790_v42  ;;  %v5154_v26 = vmax.f32 %v5056_v28, %v8544_v22 }
 0x293   : > { %v5358_v12 = vadd.f32 %v7844_v23, %v5253_v38  ;;  %v5254_v44 = vmax.f32 %v5156_v16, %v6445_v58  ;;  %v8553_v58 = vld [vmem:[#allocation59_spill] sm:$0xff] }
 0x294   : > { %v5356_v51 = vadd.f32 %v7844_v23, %v5251_v7  ;;  %v5252_v54 = vmax.f32 %v5154_v26, %v4793_v61  ;;  %v6252_v29 = vpop.f32.mrb[144].mxu0  ;;  %v6448_v47 = vpop.f32.mrb[144].mxu1  ;;  %v8556_v38 = vld [vmem:[#allocation63_spill] sm:$0xff]  ;;  %v8557_v26 = vld [vmem:[#allocation50_spill] sm:$0xff] }
 0x295   : > { %v5456_v30 = vmax.f32 %v5358_v12, 0.0  ;;  %v5359_v27 = vadd.f32 %v7844_v23, %v5254_v44  ;;  %v5061_v50 = vmax.f32 %v8545_v59, %v6252_v29  ;;  %v4022_v0 = vpop.f32.mrb[145].mxu0  ;;  %v4806_v45 = vpop.f32.mrb[145].mxu1  ;;  %v8558_v44 = vld [vmem:[#allocation53_spill] sm:$0xff]  ;;  %v8559_v29 = vld [vmem:[#allocation64_spill] sm:$0xff] }
 0x296   : > { %v5454_v52 = vmax.f32 %v5356_v51, 0.0  ;;  %v5357_v55 = vadd.f32 %v7844_v23, %v5252_v54  ;;  %v5059_v2 = vmax.f32 %v8546_v13, %v4022_v0  ;;  %v6253_v62 = vpop.f32.mrb[146].mxu0  ;;  %v6449_v10 = vpop.f32.mrb[146].mxu1 }
 0x297   : > { %5555 = vst.msk [vmem:[%s7851_s28 + $0x160] sm:$0xff] %vm5510_vm0, %v5456_v30  ;;  %v5457_v31 = vmax.f32 %v5359_v27, 0.0  ;;  %v5159_v36 = vmax.f32 %v5061_v50, %v8547_v17  ;;  %v5062_v53 = vmax.f32 %v8548_v3, %v6253_v62  ;;  %v4025_v1 = vpop.f32.mrb[147].mxu0  ;;  %v4809_v35 = vpop.f32.mrb[147].mxu1  ;;  %v8560_v27 = vld [vmem:[#allocation54_spill] sm:$0xff] }
 0x298   : > { %5553 = vst.msk [vmem:[%s7851_s28 + $0x150] sm:$0xff] %vm5510_vm0, %v5454_v52  ;;  %v5455_v4 = vmax.f32 %v5357_v55, 0.0  ;;  %v5157_v32 = vmax.f32 %v5059_v2, %v8549_v37  ;;  %v5060_v63 = vmax.f32 %v8550_v5, %v4025_v1  ;;  %v8562_v1 = vld [vmem:[#allocation57_spill] sm:$0xff]  ;;  %v8563_v5 = vld [vmem:[#allocation68_spill] sm:$0xff] }
 0x299   : > { %5556 = vst.msk [vmem:[%s7851_s28 + $0x168] sm:$0xff] %vm5510_vm0, %v5457_v31  ;;  %v5257_v60 = vmax.f32 %v5159_v36, %v6448_v47  ;;  %v5160_v34 = vmax.f32 %v5062_v53, %v8551_v18 }
 0x29a   : > { %5554 = vst.msk [vmem:[%s7851_s28 + $0x158] sm:$0xff] %vm5510_vm0, %v5455_v4  ;;  %v5255_v46 = vmax.f32 %v5157_v32, %v4806_v45  ;;  %v5158_v33 = vmax.f32 %v5060_v63, %v8552_v56 }
 0x29b   : > { %v5362_v40 = vadd.f32 %v7844_v23, %v5257_v60  ;;  %v5258_v20 = vmax.f32 %v5160_v34, %v6449_v10  ;;  %v8561_v10 = vld [vmem:[#allocation67_spill] sm:$0xff] }
 0x29c   : > { %v5360_v42 = vadd.f32 %v7844_v23, %v5255_v46  ;;  %v5256_v11 = vmax.f32 %v5158_v33, %v4809_v35  ;;  %v6256_v8 = vpop.f32.mrb[148].mxu0  ;;  %v6452_v57 = vpop.f32.mrb[148].mxu1  ;;  %v8564_v60 = vld [vmem:[#allocation71_spill] sm:$0xff]  ;;  %v8565_v33 = vld [vmem:[#allocation58_spill] sm:$0xff] }
 0x29d   : > { %v5460_v14 = vmax.f32 %v5362_v40, 0.0  ;;  %v5363_v19 = vadd.f32 %v7844_v23, %v5258_v20  ;;  %v5065_v24 = vmax.f32 %v8553_v58, %v6256_v8  ;;  %v4038_v43 = vpop.f32.mrb[149].mxu0  ;;  %v4822_v6 = vpop.f32.mrb[149].mxu1  ;;  %v8566_v20 = vld [vmem:[#allocation61_spill] sm:$0xff]  ;;  %v8567_v8 = vld [vmem:[#allocation72_spill] sm:$0xff] }
 0x29e   : > { %v5458_v48 = vmax.f32 %v5360_v42, 0.0  ;;  %v5361_v41 = vadd.f32 %v7844_v23, %v5256_v11  ;;  %v5063_v61 = vmax.f32 %v8554_v15, %v4038_v43  ;;  %v6257_v39 = vpop.f32.mrb[150].mxu0  ;;  %v6453_v21 = vpop.f32.mrb[150].mxu1 }
 0x29f   : > { %5559 = vst.msk [vmem:[%s7851_s28 + $0x180] sm:$0xff] %vm5510_vm0, %v5460_v14  ;;  %v5461_v49 = vmax.f32 %v5363_v19, 0.0  ;;  %v5163_v28 = vmax.f32 %v5065_v24, %v8555_v25  ;;  %v5066_v9 = vmax.f32 %v8556_v38, %v6257_v39  ;;  %v4041_v16 = vpop.f32.mrb[151].mxu0  ;;  %v4825_v7 = vpop.f32.mrb[151].mxu1  ;;  %v8568_v19 = vld [vmem:[#allocation62_spill] sm:$0xff] }
 0x2a0   : > { %5557 = vst.msk [vmem:[%s7851_s28 + $0x170] sm:$0xff] %vm5510_vm0, %v5458_v48  ;;  %v5459_v22 = vmax.f32 %v5361_v41, 0.0  ;;  %v5161_v12 = vmax.f32 %v5063_v61, %v8557_v26  ;;  %v5064_v51 = vmax.f32 %v8558_v44, %v4041_v16  ;;  %v8570_v16 = vld [vmem:[#allocation65_spill] sm:$0xff]  ;;  %v8571_v44 = vld [vmem:[#allocation76_spill] sm:$0xff] }
 0x2a1   : > { %5560 = vst.msk [vmem:[%s7851_s28 + $0x188] sm:$0xff] %vm5510_vm0, %v5461_v49  ;;  %v5261_v54 = vmax.f32 %v5163_v28, %v6452_v57  ;;  %v5164_v47 = vmax.f32 %v5066_v9, %v8559_v29 }
 0x2a2   : > { %5558 = vst.msk [vmem:[%s7851_s28 + $0x178] sm:$0xff] %vm5510_vm0, %v5459_v22  ;;  %v5259_v30 = vmax.f32 %v5161_v12, %v4822_v6  ;;  %v5162_v59 = vmax.f32 %v5064_v51, %v8560_v27 }
 0x2a3   : > { %v5366_v50 = vadd.f32 %v7844_v23, %v5261_v54  ;;  %v5262_v0 = vmax.f32 %v5164_v47, %v6453_v21  ;;  %v8569_v21 = vld [vmem:[#allocation75_spill] sm:$0xff] }
 0x2a4   : > { %v5364_v45 = vadd.f32 %v7844_v23, %v5259_v30  ;;  %v5260_v52 = vmax.f32 %v5162_v59, %v4825_v7  ;;  %v6260_v55 = vpop.f32.mrb[152].mxu0  ;;  %v6456_v13 = vpop.f32.mrb[152].mxu1  ;;  %v8572_v54 = vld [vmem:[#allocation79_spill] sm:$0xff]  ;;  %v8573_v59 = vld [vmem:[#allocation66_spill] sm:$0xff] }
 0x2a5   : > { %v5464_v2 = vmax.f32 %v5366_v50, 0.0  ;;  %v5367_v62 = vadd.f32 %v7844_v23, %v5262_v0  ;;  %v5069_v31 = vmax.f32 %v8561_v10, %v6260_v55  ;;  %v4054_v17 = vpop.f32.mrb[153].mxu0  ;;  %v4838_v36 = vpop.f32.mrb[153].mxu1  ;;  %v8574_v0 = vld [vmem:[#allocation69_spill] sm:$0xff]  ;;  %v8575_v55 = vld [vmem:[#allocation80_spill] sm:$0xff] }
 0x2a6   : > { %v5462_v3 = vmax.f32 %v5364_v45, 0.0  ;;  %v5365_v53 = vadd.f32 %v7844_v23, %v5260_v52  ;;  %v5067_v35 = vmax.f32 %v8562_v1, %v4054_v17  ;;  %v6261_v4 = vpop.f32.mrb[154].mxu0  ;;  %v6457_v37 = vpop.f32.mrb[154].mxu1 }
 0x2a7   : > { %5563 = vst.msk [vmem:[%s7851_s28 + $0x1a0] sm:$0xff] %vm5510_vm0, %v5464_v2  ;;  %v5465_v32 = vmax.f32 %v5367_v62, 0.0  ;;  %v5167_v63 = vmax.f32 %v5069_v31, %v8563_v5  ;;  %v5070_v18 = vmax.f32 %v8564_v60, %v6261_v4  ;;  %v4057_v34 = vpop.f32.mrb[155].mxu0  ;;  %v4841_v46 = vpop.f32.mrb[155].mxu1  ;;  %v8576_v62 = vld [vmem:[#allocation70_spill] sm:$0xff] }
 0x2a8   : > { %5561 = vst.msk [vmem:[%s7851_s28 + $0x190] sm:$0xff] %vm5510_vm0, %v5462_v3  ;;  %v5463_v56 = vmax.f32 %v5365_v53, 0.0  ;;  %v5165_v40 = vmax.f32 %v5067_v35, %v8565_v33  ;;  %v5068_v42 = vmax.f32 %v8566_v20, %v4057_v34  ;;  %v8578_v34 = vld [vmem:[#allocation73_spill] sm:$0xff]  ;;  %v8579_v20 = vld [vmem:[#allocation84_spill] sm:$0xff] }
 0x2a9   : > { %5564 = vst.msk [vmem:[%s7851_s28 + $0x1a8] sm:$0xff] %vm5510_vm0, %v5465_v32  ;;  %v5265_v11 = vmax.f32 %v5167_v63, %v6456_v13  ;;  %v5168_v57 = vmax.f32 %v5070_v18, %v8567_v8 }
 0x2aa   : > { %5562 = vst.msk [vmem:[%s7851_s28 + $0x198] sm:$0xff] %vm5510_vm0, %v5463_v56  ;;  %v5263_v14 = vmax.f32 %v5165_v40, %v4838_v36  ;;  %v5166_v58 = vmax.f32 %v5068_v42, %v8568_v19 }
 0x2ab   : > { %v5370_v24 = vadd.f32 %v7844_v23, %v5265_v11  ;;  %v5266_v43 = vmax.f32 %v5168_v57, %v6457_v37  ;;  %v8577_v37 = vld [vmem:[#allocation83_spill] sm:$0xff] }
 0x2ac   : > { %v5368_v6 = vadd.f32 %v7844_v23, %v5263_v14  ;;  %v5264_v48 = vmax.f32 %v5166_v58, %v4841_v46  ;;  %v6264_v41 = vpop.f32.mrb[156].mxu0  ;;  %v6460_v15 = vpop.f32.mrb[156].mxu1  ;;  %v8580_v11 = vld [vmem:[#allocation87_spill] sm:$0xff]  ;;  %v8581_v58 = vld [vmem:[#allocation74_spill] sm:$0xff] }
 0x2ad   : > { %v5468_v61 = vmax.f32 %v5370_v24, 0.0  ;;  %v5371_v39 = vadd.f32 %v7844_v23, %v5266_v43  ;;  %v5073_v49 = vmax.f32 %v8569_v21, %v6264_v41  ;;  %v4070_v25 = vpop.f32.mrb[157].mxu0  ;;  %v4854_v28 = vpop.f32.mrb[157].mxu1  ;;  %v8582_v43 = vld [vmem:[#allocation77_spill] sm:$0xff]  ;;  %v8583_v41 = vld [vmem:[#allocation88_spill] sm:$0xff] }
 0x2ae   : > { %v5466_v38 = vmax.f32 %v5368_v6, 0.0  ;;  %v5369_v9 = vadd.f32 %v7844_v23, %v5264_v48  ;;  %v5071_v7 = vmax.f32 %v8570_v16, %v4070_v25  ;;  %v6265_v22 = vpop.f32.mrb[158].mxu0  ;;  %v6461_v26 = vpop.f32.mrb[158].mxu1 }
 0x2af   : > { %5567 = vst.msk [vmem:[%s7851_s28 + $0x1c0] sm:$0xff] %vm5510_vm0, %v5468_v61  ;;  %v5469_v12 = vmax.f32 %v5371_v39, 0.0  ;;  %v5171_v51 = vmax.f32 %v5073_v49, %v8571_v44  ;;  %v5074_v29 = vmax.f32 %v8572_v54, %v6265_v22  ;;  %v4073_v47 = vpop.f32.mrb[159].mxu0  ;;  %v4857_v30 = vpop.f32.mrb[159].mxu1  ;;  %v8584_v39 = vld [vmem:[#allocation78_spill] sm:$0xff] }
 0x2b0   : > { %5565 = vst.msk [vmem:[%s7851_s28 + $0x1b0] sm:$0xff] %vm5510_vm0, %v5466_v38  ;;  %v5467_v27 = vmax.f32 %v5369_v9, 0.0  ;;  %v5169_v50 = vmax.f32 %v5071_v7, %v8573_v59  ;;  %v5072_v45 = vmax.f32 %v8574_v0, %v4073_v47  ;;  %v8586_v47 = vld [vmem:[#allocation81_spill] sm:$0xff]  ;;  %v8587_v0 = vld [vmem:[#allocation92_spill] sm:$0xff] }
 0x2b1   : > { %5568 = vst.msk [vmem:[%s7851_s28 + $0x1c8] sm:$0xff] %vm5510_vm0, %v5469_v12  ;;  %v5269_v52 = vmax.f32 %v5171_v51, %v6460_v15  ;;  %v5172_v13 = vmax.f32 %v5074_v29, %v8575_v55  ;;  %v8585_v12 = vld [vmem:[#allocation91_spill] sm:$0xff] }
 0x2b2   : > { %5566 = vst.msk [vmem:[%s7851_s28 + $0x1b8] sm:$0xff] %vm5510_vm0, %v5467_v27  ;;  %v5267_v2 = vmax.f32 %v5169_v50, %v4854_v28  ;;  %v5170_v10 = vmax.f32 %v5072_v45, %v8576_v62  ;;  %v8170_v28 = vld [vmem:[%s8355_s2] ss:$0 sm:$0xff] }
 0x2b3   : > { %v5374_v31 = vadd.f32 %v7844_v23, %v5269_v52  ;;  %v5270_v17 = vmax.f32 %v5172_v13, %v6461_v26  ;;  %v8588_v52 = vld [vmem:[#allocation95_spill] sm:$0xff] }
 0x2b4   : > { %v5372_v36 = vadd.f32 %v7844_v23, %v5267_v2  ;;  %v5268_v3 = vmax.f32 %v5170_v10, %v4857_v30  ;;  %v6268_v53 = vpop.f32.mrb[160].mxu0  ;;  %v6464_v1 = vpop.f32.mrb[160].mxu1  ;;  %v8589_v10 = vld [vmem:[#allocation82_spill] sm:$0xff] }
 0x2b5   : > { %v5472_v35 = vmax.f32 %v5374_v31, 0.0  ;;  %v5375_v4 = vadd.f32 %v7844_v23, %v5270_v17  ;;  %v5077_v32 = vmax.f32 %v8577_v37, %v6268_v53  ;;  %v4086_v5 = vpop.f32.mrb[161].mxu0  ;;  %v4870_v63 = vpop.f32.mrb[161].mxu1  ;;  %v8590_v17 = vld [vmem:[#allocation85_spill] sm:$0xff]  ;;  %v8591_v53 = vld [vmem:[#allocation96_spill] sm:$0xff] }
 0x2b6   : > { %v5470_v60 = vmax.f32 %v5372_v36, 0.0  ;;  %v5373_v18 = vadd.f32 %v7844_v23, %v5268_v3  ;;  %v5075_v46 = vmax.f32 %v8578_v34, %v4086_v5  ;;  %v6269_v56 = vpop.f32.mrb[162].mxu0  ;;  %v6465_v33 = vpop.f32.mrb[162].mxu1 }
 0x2b7   : > { %5571 = vst.msk [vmem:[%s7851_s28 + $0x1e0] sm:$0xff] %vm5510_vm0, %v5472_v35  ;;  %v5473_v40 = vmax.f32 %v5375_v4, 0.0  ;;  %v5175_v42 = vmax.f32 %v5077_v32, %v8579_v20  ;;  %v5078_v8 = vmax.f32 %v8580_v11, %v6269_v56  ;;  %v4089_v57 = vpop.f32.mrb[163].mxu0  ;;  %v4873_v14 = vpop.f32.mrb[163].mxu1  ;;  %v8592_v4 = vld [vmem:[#allocation86_spill] sm:$0xff] }
 0x2b8   : > { %5569 = vst.msk [vmem:[%s7851_s28 + $0x1d0] sm:$0xff] %vm5510_vm0, %v5470_v60  ;;  %v5471_v19 = vmax.f32 %v5373_v18, 0.0  ;;  %v5173_v24 = vmax.f32 %v5075_v46, %v8581_v58  ;;  %v5076_v6 = vmax.f32 %v8582_v43, %v4089_v57  ;;  %v8594_v57 = vld [vmem:[#allocation89_spill] sm:$0xff]  ;;  %v8595_v43 = vld [vmem:[#allocation100_spill] sm:$0xff] }
 0x2b9   : > { %5572 = vst.msk [vmem:[%s7851_s28 + $0x1e8] sm:$0xff] %vm5510_vm0, %v5473_v40  ;;  %v5273_v48 = vmax.f32 %v5175_v42, %v6464_v1  ;;  %v5176_v15 = vmax.f32 %v5078_v8, %v8583_v41 }
 0x2ba   : > { %5570 = vst.msk [vmem:[%s7851_s28 + $0x1d8] sm:$0xff] %vm5510_vm0, %v5471_v19  ;;  %v5271_v61 = vmax.f32 %v5173_v24, %v4870_v63  ;;  %v5174_v21 = vmax.f32 %v5076_v6, %v8584_v39 }
 0x2bb   : > { %v5378_v49 = vadd.f32 %v7844_v23, %v5273_v48  ;;  %v5274_v25 = vmax.f32 %v5176_v15, %v6465_v33  ;;  %v8593_v33 = vld [vmem:[#allocation99_spill] sm:$0xff] }
 0x2bc   : > { %v5376_v38 = vadd.f32 %v8170_v28, %v5271_v61  ;;  %v5272_v9 = vmax.f32 %v5174_v21, %v4873_v14  ;;  %v6272_v16 = vpop.f32.mrb[164].mxu0  ;;  %v6468_v7 = vpop.f32.mrb[164].mxu1  ;;  %v8596_v48 = vld [vmem:[#allocation103_spill] sm:$0xff]  ;;  %v8597_v21 = vld [vmem:[#allocation90_spill] sm:$0xff] }
 0x2bd   : > { %v5476_v22 = vmax.f32 %v5378_v49, 0.0  ;;  %v5379_v26 = vadd.f32 %v8170_v28, %v5274_v25  ;;  %v5081_v44 = vmax.f32 %v8585_v12, %v6272_v16  ;;  %v4102_v51 = vpop.f32.mrb[165].mxu0  ;;  %v4886_v23 = vpop.f32.mrb[165].mxu1  ;;  %v8598_v25 = vld [vmem:[#allocation93_spill] sm:$0xff]  ;;  %v8599_v16 = vld [vmem:[#allocation104_spill] sm:$0xff] }
 0x2be   : > { %v5474_v54 = vmax.f32 %v5376_v38, 0.0  ;;  %v5377_v29 = vadd.f32 %v8170_v28, %v5272_v9  ;;  %v5079_v30 = vmax.f32 %v8586_v47, %v4102_v51  ;;  %v6273_v27 = vpop.f32.mrb[166].mxu0  ;;  %v6469_v59 = vpop.f32.mrb[166].mxu1 }
 0x2bf   : > { %5575 = vst.msk [vmem:[%s7851_s28 + $0x200] sm:$0xff] %vm5510_vm0, %v5476_v22  ;;  %v5477_v50 = vmax.f32 %v5379_v26, 0.0  ;;  %v5179_v45 = vmax.f32 %v5081_v44, %v8587_v0  ;;  %v5082_v55 = vmax.f32 %v8588_v52, %v6273_v27  ;;  %v4105_v13 = vpop.f32.mrb[167].mxu0  ;;  %v4889_v2 = vpop.f32.mrb[167].mxu1  ;;  %v8600_v26 = vld [vmem:[#allocation94_spill] sm:$0xff] }
 0x2c0   : > { %5573 = vst.msk [vmem:[%s7851_s28 + $0x1f0] sm:$0xff] %vm5510_vm0, %v5474_v54  ;;  %v5475_v62 = vmax.f32 %v5377_v29, 0.0  ;;  %v5177_v31 = vmax.f32 %v5079_v30, %v8589_v10  ;;  %v5080_v36 = vmax.f32 %v8590_v17, %v4105_v13  ;;  %v8602_v13 = vld [vmem:[#allocation97_spill] sm:$0xff]  ;;  %v8603_v17 = vld [vmem:[#allocation108_spill] sm:$0xff] }
 0x2c1   : > { %5576 = vst.msk [vmem:[%s7851_s28 + $0x208] sm:$0xff] %vm5510_vm0, %v5477_v50  ;;  %v5277_v3 = vmax.f32 %v5179_v45, %v6468_v7  ;;  %v5180_v1 = vmax.f32 %v5082_v55, %v8591_v53 }
 0x2c2   : > { %5574 = vst.msk [vmem:[%s7851_s28 + $0x1f8] sm:$0xff] %vm5510_vm0, %v5475_v62  ;;  %v5275_v35 = vmax.f32 %v5177_v31, %v4886_v23  ;;  %v5178_v37 = vmax.f32 %v5080_v36, %v8592_v4 }
 0x2c3   : > { %v5382_v32 = vadd.f32 %v8170_v28, %v5277_v3  ;;  %v5278_v5 = vmax.f32 %v5180_v1, %v6469_v59  ;;  %v8601_v59 = vld [vmem:[#allocation107_spill] sm:$0xff] }
 0x2c4   : > { %v5380_v63 = vadd.f32 %v8170_v28, %v5275_v35  ;;  %v5276_v60 = vmax.f32 %v5178_v37, %v4889_v2  ;;  %v6276_v18 = vpop.f32.mrb[168].mxu0  ;;  %v6472_v34 = vpop.f32.mrb[168].mxu1  ;;  %v8604_v3 = vld [vmem:[#allocation111_spill] sm:$0xff]  ;;  %v8605_v37 = vld [vmem:[#allocation98_spill] sm:$0xff] }
 0x2c5   : > { %v5480_v46 = vmax.f32 %v5382_v32, 0.0  ;;  %v5383_v56 = vadd.f32 %v8170_v28, %v5278_v5  ;;  %v5085_v40 = vmax.f32 %v8593_v33, %v6276_v18  ;;  %v4118_v20 = vpop.f32.mrb[169].mxu0  ;;  %v4902_v42 = vpop.f32.mrb[169].mxu1  ;;  %v8606_v5 = vld [vmem:[#allocation101_spill] sm:$0xff]  ;;  %v8607_v18 = vld [vmem:[#allocation112_spill] sm:$0xff] }
 0x2c6   : > { %v5478_v11 = vmax.f32 %v5380_v63, 0.0  ;;  %v5381_v8 = vadd.f32 %v8170_v28, %v5276_v60  ;;  %v5083_v14 = vmax.f32 %v8594_v57, %v4118_v20  ;;  %v6277_v19 = vpop.f32.mrb[170].mxu0  ;;  %v6473_v58 = vpop.f32.mrb[170].mxu1 }
 0x2c7   : > { %5579 = vst.msk [vmem:[%s7851_s28 + $0x220] sm:$0xff] %vm5510_vm0, %v5480_v46  ;;  %v5481_v24 = vmax.f32 %v5383_v56, 0.0  ;;  %v5183_v6 = vmax.f32 %v5085_v40, %v8595_v43  ;;  %v5086_v41 = vmax.f32 %v8596_v48, %v6277_v19  ;;  %v4121_v15 = vpop.f32.mrb[171].mxu0  ;;  %v4905_v61 = vpop.f32.mrb[171].mxu1  ;;  %v8608_v56 = vld [vmem:[#allocation102_spill] sm:$0xff] }
 0x2c8   : > { %5577 = vst.msk [vmem:[%s7851_s28 + $0x210] sm:$0xff] %vm5510_vm0, %v5478_v11  ;;  %v5479_v39 = vmax.f32 %v5381_v8, 0.0  ;;  %v5181_v49 = vmax.f32 %v5083_v14, %v8597_v21  ;;  %v5084_v38 = vmax.f32 %v8598_v25, %v4121_v15  ;;  %v8610_v15 = vld [vmem:[#allocation105_spill] sm:$0xff]  ;;  %v8611_v25 = vld [vmem:[#allocation116_spill] sm:$0xff] }
 0x2c9   : > { %5580 = vst.msk [vmem:[%s7851_s28 + $0x228] sm:$0xff] %vm5510_vm0, %v5481_v24  ;;  %v5281_v9 = vmax.f32 %v5183_v6, %v6472_v34  ;;  %v5184_v7 = vmax.f32 %v5086_v41, %v8599_v16 }
 0x2ca   : > { %5578 = vst.msk [vmem:[%s7851_s28 + $0x218] sm:$0xff] %vm5510_vm0, %v5479_v39  ;;  %v5279_v22 = vmax.f32 %v5181_v49, %v4902_v42  ;;  %v5182_v12 = vmax.f32 %v5084_v38, %v8600_v26 }
 0x2cb   : > { %v5386_v44 = vadd.f32 %v8170_v28, %v5281_v9  ;;  %v5282_v51 = vmax.f32 %v5184_v7, %v6473_v58  ;;  %v8609_v58 = vld [vmem:[#allocation115_spill] sm:$0xff] }
 0x2cc   : > { %v5384_v23 = vadd.f32 %v8170_v28, %v5279_v22  ;;  %v5280_v54 = vmax.f32 %v5182_v12, %v4905_v61  ;;  %v6280_v29 = vpop.f32.mrb[172].mxu0  ;;  %v6476_v47 = vpop.f32.mrb[172].mxu1  ;;  %v8612_v9 = vld [vmem:[#allocation119_spill] sm:$0xff]  ;;  %v8613_v12 = vld [vmem:[#allocation106_spill] sm:$0xff] }
 0x2cd   : > { %v5484_v30 = vmax.f32 %v5386_v44, 0.0  ;;  %v5387_v27 = vadd.f32 %v8170_v28, %v5282_v51  ;;  %v5089_v50 = vmax.f32 %v8601_v59, %v6280_v29  ;;  %v4134_v0 = vpop.f32.mrb[173].mxu0  ;;  %v4918_v45 = vpop.f32.mrb[173].mxu1  ;;  %v8614_v51 = vld [vmem:[#allocation109_spill] sm:$0xff]  ;;  %v8615_v29 = vld [vmem:[#allocation120_spill] sm:$0xff] }
 0x2ce   : > { %v5482_v52 = vmax.f32 %v5384_v23, 0.0  ;;  %v5385_v55 = vadd.f32 %v8170_v28, %v5280_v54  ;;  %v5087_v2 = vmax.f32 %v8602_v13, %v4134_v0  ;;  %v6281_v62 = vpop.f32.mrb[174].mxu0  ;;  %v6477_v10 = vpop.f32.mrb[174].mxu1 }
 0x2cf   : > { %5583 = vst.msk [vmem:[%s7851_s28 + $0x240] sm:$0xff] %vm5510_vm0, %v5484_v30  ;;  %v5485_v31 = vmax.f32 %v5387_v27, 0.0  ;;  %v5187_v36 = vmax.f32 %v5089_v50, %v8603_v17  ;;  %v5090_v53 = vmax.f32 %v8604_v3, %v6281_v62  ;;  %v4137_v1 = vpop.f32.mrb[175].mxu0  ;;  %v4921_v35 = vpop.f32.mrb[175].mxu1  ;;  %v8616_v27 = vld [vmem:[#allocation110_spill] sm:$0xff] }
 0x2d0   : > { %5581 = vst.msk [vmem:[%s7851_s28 + $0x230] sm:$0xff] %vm5510_vm0, %v5482_v52  ;;  %v5483_v4 = vmax.f32 %v5385_v55, 0.0  ;;  %v5185_v32 = vmax.f32 %v5087_v2, %v8605_v37  ;;  %v5088_v63 = vmax.f32 %v8606_v5, %v4137_v1  ;;  %v8618_v1 = vld [vmem:[#allocation113_spill] sm:$0xff]  ;;  %v8619_v5 = vld [vmem:[#allocation124_spill] sm:$0xff] }
 0x2d1   : > { %5584 = vst.msk [vmem:[%s7851_s28 + $0x248] sm:$0xff] %vm5510_vm0, %v5485_v31  ;;  %v5285_v60 = vmax.f32 %v5187_v36, %v6476_v47  ;;  %v5188_v34 = vmax.f32 %v5090_v53, %v8607_v18 }
 0x2d2   : > { %5582 = vst.msk [vmem:[%s7851_s28 + $0x238] sm:$0xff] %vm5510_vm0, %v5483_v4  ;;  %v5283_v46 = vmax.f32 %v5185_v32, %v4918_v45  ;;  %v5186_v33 = vmax.f32 %v5088_v63, %v8608_v56 }
 0x2d3   : > { %v5390_v40 = vadd.f32 %v8170_v28, %v5285_v60  ;;  %v5286_v20 = vmax.f32 %v5188_v34, %v6477_v10  ;;  %v8617_v10 = vld [vmem:[#allocation123_spill] sm:$0xff] }
 0x2d4   : > { %v5388_v42 = vadd.f32 %v8170_v28, %v5283_v46  ;;  %v5284_v11 = vmax.f32 %v5186_v33, %v4921_v35  ;;  %v6284_v8 = vpop.f32.mrb[176].mxu0  ;;  %v6480_v57 = vpop.f32.mrb[176].mxu1  ;;  %v8620_v60 = vld [vmem:[#allocation127_spill] sm:$0xff]  ;;  %v8621_v33 = vld [vmem:[#allocation114_spill] sm:$0xff] }
 0x2d5   : > { %v5488_v14 = vmax.f32 %v5390_v40, 0.0  ;;  %v5391_v19 = vadd.f32 %v8170_v28, %v5286_v20  ;;  %v5093_v24 = vmax.f32 %v8609_v58, %v6284_v8  ;;  %v4150_v43 = vpop.f32.mrb[177].mxu0  ;;  %v4934_v6 = vpop.f32.mrb[177].mxu1  ;;  %v8622_v20 = vld [vmem:[#allocation117_spill] sm:$0xff]  ;;  %v8623_v8 = vld [vmem:[#allocation128_spill] sm:$0xff] }
 0x2d6   : > { %v5486_v48 = vmax.f32 %v5388_v42, 0.0  ;;  %v5389_v41 = vadd.f32 %v8170_v28, %v5284_v11  ;;  %v5091_v61 = vmax.f32 %v8610_v15, %v4150_v43  ;;  %v6285_v39 = vpop.f32.mrb[178].mxu0  ;;  %v6481_v21 = vpop.f32.mrb[178].mxu1 }
 0x2d7   : > { %5587 = vst.msk [vmem:[%s7851_s28 + $0x260] sm:$0xff] %vm5510_vm0, %v5488_v14  ;;  %v5489_v49 = vmax.f32 %v5391_v19, 0.0  ;;  %v5191_v38 = vmax.f32 %v5093_v24, %v8611_v25  ;;  %v5094_v16 = vmax.f32 %v8612_v9, %v6285_v39  ;;  %v4153_v7 = vpop.f32.mrb[179].mxu0  ;;  %v4937_v22 = vpop.f32.mrb[179].mxu1  ;;  %v8624_v19 = vld [vmem:[#allocation118_spill] sm:$0xff] }
 0x2d8   : > { %5585 = vst.msk [vmem:[%s7851_s28 + $0x250] sm:$0xff] %vm5510_vm0, %v5486_v48  ;;  %v5487_v26 = vmax.f32 %v5389_v41, 0.0  ;;  %v5189_v44 = vmax.f32 %v5091_v61, %v8613_v12  ;;  %v5092_v23 = vmax.f32 %v8614_v51, %v4153_v7  ;;  %v8626_v7 = vld [vmem:[#allocation121_spill] sm:$0xff]  ;;  %v8627_v51 = vld [vmem:[#allocation132_spill] sm:$0xff] }
 0x2d9   : > { %5588 = vst.msk [vmem:[%s7851_s28 + $0x268] sm:$0xff] %vm5510_vm0, %v5489_v49  ;;  %v5289_v54 = vmax.f32 %v5191_v38, %v6480_v57  ;;  %v5192_v47 = vmax.f32 %v5094_v16, %v8615_v29 }
 0x2da   : > { %5586 = vst.msk [vmem:[%s7851_s28 + $0x258] sm:$0xff] %vm5510_vm0, %v5487_v26  ;;  %v5287_v30 = vmax.f32 %v5189_v44, %v4934_v6  ;;  %v5190_v59 = vmax.f32 %v5092_v23, %v8616_v27 }
 0x2db   : > { %v5394_v50 = vadd.f32 %v8170_v28, %v5289_v54  ;;  %v5290_v0 = vmax.f32 %v5192_v47, %v6481_v21  ;;  %v8625_v21 = vld [vmem:[#allocation131_spill] sm:$0xff] }
 0x2dc   : > { %v5392_v45 = vadd.f32 %v8170_v28, %v5287_v30  ;;  %v5288_v52 = vmax.f32 %v5190_v59, %v4937_v22  ;;  %v6288_v55 = vpop.f32.mrb[180].mxu0  ;;  %v6484_v13 = vpop.f32.mrb[180].mxu1  ;;  %v8628_v54 = vld [vmem:[#allocation135_spill] sm:$0xff]  ;;  %v8629_v59 = vld [vmem:[#allocation122_spill] sm:$0xff] }
 0x2dd   : > { %v5492_v2 = vmax.f32 %v5394_v50, 0.0  ;;  %v5395_v62 = vadd.f32 %v8170_v28, %v5290_v0  ;;  %v5097_v31 = vmax.f32 %v8617_v10, %v6288_v55  ;;  %v4166_v17 = vpop.f32.mrb[181].mxu0  ;;  %v4950_v36 = vpop.f32.mrb[181].mxu1  ;;  %v8630_v0 = vld [vmem:[#allocation125_spill] sm:$0xff]  ;;  %v8631_v55 = vld [vmem:[#allocation136_spill] sm:$0xff] }
 0x2de   : > { %v5490_v3 = vmax.f32 %v5392_v45, 0.0  ;;  %v5393_v53 = vadd.f32 %v8170_v28, %v5288_v52  ;;  %v5095_v35 = vmax.f32 %v8618_v1, %v4166_v17  ;;  %v6289_v4 = vpop.f32.mrb[182].mxu0  ;;  %v6485_v37 = vpop.f32.mrb[182].mxu1 }
 0x2df   : > { %5591 = vst.msk [vmem:[%s7851_s28 + $0x280] sm:$0xff] %vm5510_vm0, %v5492_v2  ;;  %v5493_v32 = vmax.f32 %v5395_v62, 0.0  ;;  %v5195_v63 = vmax.f32 %v5097_v31, %v8619_v5  ;;  %v5098_v18 = vmax.f32 %v8620_v60, %v6289_v4  ;;  %v4169_v34 = vpop.f32.mrb[183].mxu0  ;;  %v4953_v46 = vpop.f32.mrb[183].mxu1  ;;  %v8632_v62 = vld [vmem:[#allocation126_spill] sm:$0xff] }
 0x2e0   : > { %5589 = vst.msk [vmem:[%s7851_s28 + $0x270] sm:$0xff] %vm5510_vm0, %v5490_v3  ;;  %v5491_v56 = vmax.f32 %v5393_v53, 0.0  ;;  %v5193_v40 = vmax.f32 %v5095_v35, %v8621_v33  ;;  %v5096_v42 = vmax.f32 %v8622_v20, %v4169_v34  ;;  %v8634_v34 = vld [vmem:[#allocation129_spill] sm:$0xff]  ;;  %v8635_v20 = vld [vmem:[#allocation140_spill] sm:$0xff] }
 0x2e1   : > { %5592 = vst.msk [vmem:[%s7851_s28 + $0x288] sm:$0xff] %vm5510_vm0, %v5493_v32  ;;  %v5293_v11 = vmax.f32 %v5195_v63, %v6484_v13  ;;  %v5196_v57 = vmax.f32 %v5098_v18, %v8623_v8 }
 0x2e2   : > { %5590 = vst.msk [vmem:[%s7851_s28 + $0x278] sm:$0xff] %vm5510_vm0, %v5491_v56  ;;  %v5291_v14 = vmax.f32 %v5193_v40, %v4950_v36  ;;  %v5194_v58 = vmax.f32 %v5096_v42, %v8624_v19 }
 0x2e3   : > { %v5398_v24 = vadd.f32 %v8170_v28, %v5293_v11  ;;  %v5294_v43 = vmax.f32 %v5196_v57, %v6485_v37  ;;  %v8633_v37 = vld [vmem:[#allocation139_spill] sm:$0xff] }
 0x2e4   : > { %v5396_v6 = vadd.f32 %v8170_v28, %v5291_v14  ;;  %v5292_v48 = vmax.f32 %v5194_v58, %v4953_v46  ;;  %v6292_v41 = vpop.f32.mrb[184].mxu0  ;;  %v6488_v15 = vpop.f32.mrb[184].mxu1  ;;  %v8636_v11 = vld [vmem:[#allocation143_spill] sm:$0xff]  ;;  %v8637_v58 = vld [vmem:[#allocation130_spill] sm:$0xff] }
 0x2e5   : > { %v5496_v61 = vmax.f32 %v5398_v24, 0.0  ;;  %v5399_v39 = vadd.f32 %v8170_v28, %v5294_v43  ;;  %v5101_v49 = vmax.f32 %v8625_v21, %v6292_v41  ;;  %v4182_v25 = vpop.f32.mrb[185].mxu0  ;;  %v4966_v38 = vpop.f32.mrb[185].mxu1  ;;  %v8638_v43 = vld [vmem:[#allocation133_spill] sm:$0xff]  ;;  %v8639_v41 = vld [vmem:[#allocation144_spill] sm:$0xff] }
 0x2e6   : > { %v5494_v9 = vmax.f32 %v5396_v6, 0.0  ;;  %v5397_v16 = vadd.f32 %v8170_v28, %v5292_v48  ;;  %v5099_v22 = vmax.f32 %v8626_v7, %v4182_v25  ;;  %v6293_v26 = vpop.f32.mrb[186].mxu0  ;;  %v6489_v12 = vpop.f32.mrb[186].mxu1 }
 0x2e7   : > { %5595 = vst.msk [vmem:[%s7851_s28 + $0x2a0] sm:$0xff] %vm5510_vm0, %v5496_v61  ;;  %v5497_v44 = vmax.f32 %v5399_v39, 0.0  ;;  %v5199_v23 = vmax.f32 %v5101_v49, %v8627_v51  ;;  %v5102_v29 = vmax.f32 %v8628_v54, %v6293_v26  ;;  %v4185_v47 = vpop.f32.mrb[187].mxu0  ;;  %v4969_v30 = vpop.f32.mrb[187].mxu1  ;;  %v8640_v39 = vld [vmem:[#allocation134_spill] sm:$0xff] }
 0x2e8   : > { %5593 = vst.msk [vmem:[%s7851_s28 + $0x290] sm:$0xff] %vm5510_vm0, %v5494_v9  ;;  %v5495_v27 = vmax.f32 %v5397_v16, 0.0  ;;  %v5197_v50 = vmax.f32 %v5099_v22, %v8629_v59  ;;  %v5100_v45 = vmax.f32 %v8630_v0, %v4185_v47  ;;  %v8642_v47 = vld [vmem:[#allocation137_spill] sm:$0xff]  ;;  %v8643_v0 = vld [vmem:[#allocation146_spill] sm:$0xff] }
 0x2e9   : > { %5596 = vst.msk [vmem:[%s7851_s28 + $0x2a8] sm:$0xff] %vm5510_vm0, %v5497_v44  ;;  %v5297_v52 = vmax.f32 %v5199_v23, %v6488_v15  ;;  %v5200_v13 = vmax.f32 %v5102_v29, %v8631_v55 }
 0x2ea   : > { %5594 = vst.msk [vmem:[%s7851_s28 + $0x298] sm:$0xff] %vm5510_vm0, %v5495_v27  ;;  %v5295_v2 = vmax.f32 %v5197_v50, %v4966_v38  ;;  %v5198_v10 = vmax.f32 %v5100_v45, %v8632_v62 }
 0x2eb   : > { %v5402_v31 = vadd.f32 %v8170_v28, %v5297_v52  ;;  %v5298_v17 = vmax.f32 %v5200_v13, %v6489_v12  ;;  %v8641_v12 = vld [vmem:[#allocation145_spill] sm:$0xff]  ;;  %v8644_v52 = vld [vmem:[#allocation147_spill] sm:$0xff] }
 0x2ec   : > { %v5400_v36 = vadd.f32 %v8170_v28, %v5295_v2  ;;  %v5296_v3 = vmax.f32 %v5198_v10, %v4969_v30  ;;  %v6296_v53 = vpop.f32.mrb[188].mxu0  ;;  %v6492_v1 = vpop.f32.mrb[188].mxu1  ;;  %v8645_v10 = vld [vmem:[#allocation138_spill] sm:$0xff] }
 0x2ed   : > { %v5500_v35 = vmax.f32 %v5402_v31, 0.0  ;;  %v5403_v4 = vadd.f32 %v8170_v28, %v5298_v17  ;;  %v5105_v32 = vmax.f32 %v8633_v37, %v6296_v53  ;;  %v4198_v5 = vpop.f32.mrb[189].mxu0  ;;  %v4982_v63 = vpop.f32.mrb[189].mxu1  ;;  %v8646_v17 = vld [vmem:[#allocation141_spill] sm:$0xff]  ;;  %v8647_v53 = vld [vmem:[#allocation148_spill] sm:$0xff] }
 0x2ee   : > { %v5498_v60 = vmax.f32 %v5400_v36, 0.0  ;;  %v5401_v18 = vadd.f32 %v8170_v28, %v5296_v3  ;;  %v5103_v46 = vmax.f32 %v8634_v34, %v4198_v5  ;;  %v6297_v56 = vpop.f32.mrb[190].mxu0  ;;  %v6493_v33 = vpop.f32.mrb[190].mxu1 }
 0x2ef   : > { %5599 = vst.msk [vmem:[%s7851_s28 + $0x2c0] sm:$0xff] %vm5510_vm0, %v5500_v35  ;;  %v5501_v40 = vmax.f32 %v5403_v4, 0.0  ;;  %v5203_v42 = vmax.f32 %v5105_v32, %v8635_v20  ;;  %v5106_v8 = vmax.f32 %v8636_v11, %v6297_v56  ;;  %v4201_v57 = vpop.f32.mrb[191].mxu0  ;;  %v4985_v14 = vpop.f32.mrb[191].mxu1  ;;  %v8648_v4 = vld [vmem:[#allocation142_spill] sm:$0xff] }
 0x2f0   : > { %5597 = vst.msk [vmem:[%s7851_s28 + $0x2b0] sm:$0xff] %vm5510_vm0, %v5498_v60  ;;  %v5499_v19 = vmax.f32 %v5401_v18, 0.0  ;;  %v5201_v24 = vmax.f32 %v5103_v46, %v8637_v58  ;;  %v5104_v6 = vmax.f32 %v8638_v43, %v4201_v57 }
 0x2f1   : > { %5600 = vst.msk [vmem:[%s7851_s28 + $0x2c8] sm:$0xff] %vm5510_vm0, %v5501_v40  ;;  %v5301_v48 = vmax.f32 %v5203_v42, %v6492_v1  ;;  %v5204_v15 = vmax.f32 %v5106_v8, %v8639_v41 }
 0x2f2   : > { %5598 = vst.msk [vmem:[%s7851_s28 + $0x2b8] sm:$0xff] %vm5510_vm0, %v5499_v19  ;;  %v5299_v61 = vmax.f32 %v5201_v24, %v4982_v63  ;;  %v5202_v21 = vmax.f32 %v5104_v6, %v8640_v39 }
 0x2f3   : > { %v5406_v49 = vadd.f32 %v8170_v28, %v5301_v48  ;;  %v5302_v25 = vmax.f32 %v5204_v15, %v6493_v33 }
 0x2f4   : > { %v5404_v38 = vadd.f32 %v8170_v28, %v5299_v61  ;;  %v5300_v9 = vmax.f32 %v5202_v21, %v4985_v14  ;;  %v6300_v16 = vpop.f32.mrb[192].mxu0  ;;  %v6496_v7 = vpop.f32.mrb[192].mxu1 }
 0x2f5   : > { %v5504_v22 = vmax.f32 %v5406_v49, 0.0  ;;  %v5407_v26 = vadd.f32 %v8170_v28, %v5302_v25  ;;  %v5109_v44 = vmax.f32 %v8641_v12, %v6300_v16  ;;  %v4214_v51 = vpop.f32.mrb[193].mxu0  ;;  %v4998_v23 = vpop.f32.mrb[193].mxu1 }
 0x2f6   : > { %v5502_v54 = vmax.f32 %v5404_v38, 0.0  ;;  %v5405_v29 = vadd.f32 %v8170_v28, %v5300_v9  ;;  %v5107_v30 = vmax.f32 %v8642_v47, %v4214_v51  ;;  %v6301_v27 = vpop.f32.mrb[194].mxu0  ;;  %v6497_v59 = vpop.f32.mrb[194].mxu1 }
 0x2f7   : > { %5603 = vst.msk [vmem:[%s7851_s28 + $0x2e0] sm:$0xff] %vm5510_vm0, %v5504_v22  ;;  %v5505_v50 = vmax.f32 %v5407_v26, 0.0  ;;  %v5207_v45 = vmax.f32 %v5109_v44, %v8643_v0  ;;  %v5110_v55 = vmax.f32 %v8644_v52, %v6301_v27  ;;  %v4217_v13 = vpop.f32.mrb[195].mxu0  ;;  %v5001_v2 = vpop.f32.mrb[195].mxu1 }
 0x2f8   : > { %5601 = vst.msk [vmem:[%s7851_s28 + $0x2d0] sm:$0xff] %vm5510_vm0, %v5502_v54  ;;  %v5503_v62 = vmax.f32 %v5405_v29, 0.0  ;;  %v5205_v31 = vmax.f32 %v5107_v30, %v8645_v10  ;;  %v5108_v36 = vmax.f32 %v8646_v17, %v4217_v13 }
 0x2f9   : > { %5604 = vst.msk [vmem:[%s7851_s28 + $0x2e8] sm:$0xff] %vm5510_vm0, %v5505_v50  ;;  %v5305_v3 = vmax.f32 %v5207_v45, %v6496_v7  ;;  %v5208_v1 = vmax.f32 %v5110_v55, %v8647_v53 }
 0x2fa   : > { %5602 = vst.msk [vmem:[%s7851_s28 + $0x2d8] sm:$0xff] %vm5510_vm0, %v5503_v62  ;;  %v5303_v35 = vmax.f32 %v5205_v31, %v4998_v23  ;;  %v5206_v37 = vmax.f32 %v5108_v36, %v8648_v4 }
 0x2fb   : > { %v5410_v32 = vadd.f32 %v8170_v28, %v5305_v3  ;;  %v5306_v5 = vmax.f32 %v5208_v1, %v6497_v59 }
 0x2fc   : > { %v5408_v63 = vadd.f32 %v8170_v28, %v5303_v35  ;;  %v5304_v60 = vmax.f32 %v5206_v37, %v5001_v2 }
 0x2fd   : > { %v5508_v18 = vmax.f32 %v5410_v32, 0.0  ;;  %v5411_v34 = vadd.f32 %v8170_v28, %v5306_v5 }
 0x2fe   : > { %v5506_v46 = vmax.f32 %v5408_v63, 0.0  ;;  %v5409_v56 = vadd.f32 %v8170_v28, %v5304_v60 }
 0x2ff   : > { %5607 = vst.msk [vmem:[%s7851_s28 + $0x300] sm:$0xff] %vm5510_vm0, %v5508_v18  ;;  %v5509_v33 = vmax.f32 %v5411_v34, 0.0 }
 0x300   : > { %5605 = vst.msk [vmem:[%s7851_s28 + $0x2f0] sm:$0xff] %vm5510_vm0, %v5506_v46  ;;  %v5507_v40 = vmax.f32 %v5409_v56, 0.0 }
 0x301   : > { %5608 = vst.msk [vmem:[%s7851_s28 + $0x308] sm:$0xff] %vm5510_vm0, %v5509_v33 }
 0x302   : > { %5606 = vst.msk [vmem:[%s7851_s28 + $0x2f8] sm:$0xff] %vm5510_vm0, %v5507_v40 }
 0x303 PF: > { %p10_p9 = scmp.ge.s32.totalorder %s6806_s16, 6   ;;  %s8649_s12 = smov %s6763_s13 }
 0x304   : > { %s8650_s13 = smov %s6815_s19  ;;  %s8651_s14 = smov %s6806_s16 }
 0x305   :  { %12 = sbr.rel (!%p10_p9) target bundleno = 2 (0x2), region = 108 }

// kernel: net_forward.4
= control target key start
LH: loop header
LB: loop body
LE: loop exit
PB: predicated region body
PF: predicated region fallthrough
CT: control target
= control target key end

     0   :  { %v3054_v0 = vmov 0   ;;  %vm2433_vm0 = vcmask 130048   ;;  %s4310_s1 = inlined_call_operand.vmem [shape: bf16[256,16], index: 1, kind: input, shape index: {}]   ;;  %s4311_s0 = inlined_call_operand.vmem [shape: bf16[4,400,256], index: 0, kind: input, shape index: {}]   ;;  %s4312_s2 = inlined_call_operand.vmem [shape: f32[1,16], index: 2, kind: input, shape index: {}]   ;;  %s4313_s3 = inlined_call_operand.vmem [shape: f32[400,16], index: 3, kind: output, shape index: {}]  }
   0x1   :  { %1343 = vmatprep.subr.bf16.mxu0 %v3054_v0  ;;  %2705 = vmatprep.subr.bf16.mxu1 %v3054_v0  ;;  %v2738_v1 = vld [vmem:[%s4310_s1] sm:$0xff]   ;;  %v2739_v2 = vld [vmem:[%s4310_s1 + $0x8] sm:$0xff]   ;;  %v2740_v3 = vld [vmem:[%s4310_s1 + $0x10] sm:$0xff]  }
   0x2   :  { %1344 = vmatpush1.bf16.msra.mxu0 %v2738_v1  ;;  %2721 = vmatpush1.bf16.msra.mxu1 %v2738_v1  ;;  %v2741_v4 = vld [vmem:[%s4310_s1 + $0x18] sm:$0xff]   ;;  %v2742_v5 = vld [vmem:[%s4310_s1 + $0x20] sm:$0xff]   ;;  %v2743_v7 = vld [vmem:[%s4310_s1 + $0x28] sm:$0xff]  }
   0x3   :  { %1345 = vmatprep.subr.bf16.mxu0 %v3054_v0  ;;  %2706 = vmatprep.subr.bf16.mxu1 %v3054_v0  ;;  %v2756_v6 = vld [vmem:[%s4311_s0 + $0x4] ss:$8 sps:$4 sm:$0xff]   ;;  %v2744_v9 = vld [vmem:[%s4310_s1 + $0x30] sm:$0xff]   ;;  %v2745_v10 = vld [vmem:[%s4310_s1 + $0x38] sm:$0xff]  }
   0x4   :  { %v2759_v8 = vld [vmem:[%s4311_s0 + $0x324] ss:$8 sps:$4 sm:$0xff]   ;;  %1375 = vmatprep.mubr.bf16.mxu0 %v2756_v6  ;;  %v2748_v13 = vld [vmem:[%s4310_s1 + $0x50] sm:$0xff]   ;;  %v2749_v14 = vld [vmem:[%s4310_s1 + $0x58] sm:$0xff]  }
   0x5   :  { %1775 = vmatprep.mubr.bf16.mxu1 %v2759_v8  ;;  %v2746_v11 = vld [vmem:[%s4310_s1 + $0x40] sm:$0xff]   ;;  %v2747_v12 = vld [vmem:[%s4310_s1 + $0x48] sm:$0xff]   ;;  %v2752_v17 = vld [vmem:[%s4310_s1 + $0x70] sm:$0xff]  }
   0x6   :  { %1346 = vmatpush1.bf16.msra.mxu0 %v2739_v2  ;;  %2722 = vmatpush1.bf16.msra.mxu1 %v2739_v2  ;;  %v2750_v15 = vld [vmem:[%s4310_s1 + $0x60] sm:$0xff]   ;;  %v2751_v16 = vld [vmem:[%s4310_s1 + $0x68] sm:$0xff]   ;;  %v2753_v18 = vld [vmem:[%s4310_s1 + $0x78] sm:$0xff]  }
   0x7   :  { %1347 = vmatprep.subr.bf16.mxu0 %v3054_v0  ;;  %2707 = vmatprep.subr.bf16.mxu1 %v3054_v0  ;;  %v2754_v19 = vld [vmem:[%s4311_s0] ss:$8 sps:$4 sm:$0xff]   ;;  %v2760_v21 = vld [vmem:[%s4311_s0 + $0x14] ss:$8 sps:$4 sm:$0xff]   ;;  %v2762_v23 = vld [vmem:[%s4311_s0 + $0x10] ss:$8 sps:$4 sm:$0xff]  }
   0x8   :  { %v2757_v20 = vld [vmem:[%s4311_s0 + $0x320] ss:$8 sps:$4 sm:$0xff]   ;;  %v2763_v22 = vld [vmem:[%s4311_s0 + $0x334] ss:$8 sps:$4 sm:$0xff]   ;;  %v2765_v24 = vld [vmem:[%s4311_s0 + $0x330] ss:$8 sps:$4 sm:$0xff]  }
   0x9   :  { %v2766_v25 = vld [vmem:[%s4311_s0 + $0x24] ss:$8 sps:$4 sm:$0xff]   ;;  %v2768_v27 = vld [vmem:[%s4311_s0 + $0x20] ss:$8 sps:$4 sm:$0xff]   ;;  %v2772_v29 = vld [vmem:[%s4311_s0 + $0x34] ss:$8 sps:$4 sm:$0xff]  }
   0xa   :  { %1348 = vmatpush1.bf16.msra.mxu0 %v2740_v3  ;;  %2723 = vmatpush1.bf16.msra.mxu1 %v2740_v3  ;;  %v2769_v26 = vld [vmem:[%s4311_s0 + $0x344] ss:$8 sps:$4 sm:$0xff]   ;;  %v2771_v28 = vld [vmem:[%s4311_s0 + $0x340] ss:$8 sps:$4 sm:$0xff]   ;;  %v2775_v30 = vld [vmem:[%s4311_s0 + $0x354] ss:$8 sps:$4 sm:$0xff]  }
   0xb   :  { %1349 = vmatprep.subr.bf16.mxu0 %v3054_v0  ;;  %2708 = vmatprep.subr.bf16.mxu1 %v3054_v0  ;;  %v2774_v31 = vld [vmem:[%s4311_s0 + $0x30] ss:$8 sps:$4 sm:$0xff]   ;;  %v2778_v33 = vld [vmem:[%s4311_s0 + $0x44] ss:$8 sps:$4 sm:$0xff]   ;;  %v2780_v35 = vld [vmem:[%s4311_s0 + $0x40] ss:$8 sps:$4 sm:$0xff]  }
   0xc   :  { %v2777_v32 = vld [vmem:[%s4311_s0 + $0x350] ss:$8 sps:$4 sm:$0xff]   ;;  %v2781_v34 = vld [vmem:[%s4311_s0 + $0x364] ss:$8 sps:$4 sm:$0xff]   ;;  %v2783_v36 = vld [vmem:[%s4311_s0 + $0x360] ss:$8 sps:$4 sm:$0xff]  }
   0xd   :  { %v2784_v37 = vld [vmem:[%s4311_s0 + $0x54] ss:$8 sps:$4 sm:$0xff]   ;;  %v2786_v39 = vld [vmem:[%s4311_s0 + $0x50] ss:$8 sps:$4 sm:$0xff]   ;;  %v2790_v41 = vld [vmem:[%s4311_s0 + $0x64] ss:$8 sps:$4 sm:$0xff]  }
   0xe   :  { %1350 = vmatpush1.bf16.msra.mxu0 %v2741_v4  ;;  %2724 = vmatpush1.bf16.msra.mxu1 %v2741_v4  ;;  %v2787_v38 = vld [vmem:[%s4311_s0 + $0x374] ss:$8 sps:$4 sm:$0xff]   ;;  %v2789_v40 = vld [vmem:[%s4311_s0 + $0x370] ss:$8 sps:$4 sm:$0xff]   ;;  %v2793_v42 = vld [vmem:[%s4311_s0 + $0x384] ss:$8 sps:$4 sm:$0xff]  }
   0xf   :  { %1351 = vmatprep.subr.bf16.mxu0 %v3054_v0  ;;  %2709 = vmatprep.subr.bf16.mxu1 %v3054_v0  ;;  %v2792_v43 = vld [vmem:[%s4311_s0 + $0x60] ss:$8 sps:$4 sm:$0xff]   ;;  %v2796_v45 = vld [vmem:[%s4311_s0 + $0x74] ss:$8 sps:$4 sm:$0xff]   ;;  %v2798_v47 = vld [vmem:[%s4311_s0 + $0x70] ss:$8 sps:$4 sm:$0xff]  }
  0x10   :  { %v2795_v44 = vld [vmem:[%s4311_s0 + $0x380] ss:$8 sps:$4 sm:$0xff]   ;;  %v2799_v46 = vld [vmem:[%s4311_s0 + $0x394] ss:$8 sps:$4 sm:$0xff]   ;;  %v2801_v48 = vld [vmem:[%s4311_s0 + $0x390] ss:$8 sps:$4 sm:$0xff]  }
  0x11   :  { %v2802_v49 = vld [vmem:[%s4311_s0 + $0x84] ss:$8 sps:$4 sm:$0xff]   ;;  %v2804_v51 = vld [vmem:[%s4311_s0 + $0x80] ss:$8 sps:$4 sm:$0xff]   ;;  %v2808_v53 = vld [vmem:[%s4311_s0 + $0x94] ss:$8 sps:$4 sm:$0xff]  }
  0x12   :  { %1352 = vmatpush1.bf16.msra.mxu0 %v2742_v5  ;;  %2725 = vmatpush1.bf16.msra.mxu1 %v2742_v5  ;;  %v2805_v50 = vld [vmem:[%s4311_s0 + $0x3a4] ss:$8 sps:$4 sm:$0xff]   ;;  %v2807_v52 = vld [vmem:[%s4311_s0 + $0x3a0] ss:$8 sps:$4 sm:$0xff]   ;;  %v2811_v54 = vld [vmem:[%s4311_s0 + $0x3b4] ss:$8 sps:$4 sm:$0xff]  }
  0x13   :  { %1353 = vmatprep.subr.bf16.mxu0 %v3054_v0  ;;  %2710 = vmatprep.subr.bf16.mxu1 %v3054_v0  ;;  %v2810_v55 = vld [vmem:[%s4311_s0 + $0x90] ss:$8 sps:$4 sm:$0xff]   ;;  %v2814_v57 = vld [vmem:[%s4311_s0 + $0xa4] ss:$8 sps:$4 sm:$0xff]   ;;  %v2816_v59 = vld [vmem:[%s4311_s0 + $0xa0] ss:$8 sps:$4 sm:$0xff]  }
  0x14   :  { %v2813_v56 = vld [vmem:[%s4311_s0 + $0x3b0] ss:$8 sps:$4 sm:$0xff]   ;;  %v2817_v58 = vld [vmem:[%s4311_s0 + $0x3c4] ss:$8 sps:$4 sm:$0xff]   ;;  %v2819_v60 = vld [vmem:[%s4311_s0 + $0x3c0] ss:$8 sps:$4 sm:$0xff]  }
  0x15   :  { %v2820_v61 = vld [vmem:[%s4311_s0 + $0xb4] ss:$8 sps:$4 sm:$0xff]   ;;  %v2822_v63 = vld [vmem:[%s4311_s0 + $0xb0] ss:$8 sps:$4 sm:$0xff]   ;;  %v2826_v1 = vld [vmem:[%s4311_s0 + $0xc4] ss:$8 sps:$4 sm:$0xff]  }
  0x16   :  { %1354 = vmatpush1.bf16.msra.mxu0 %v2743_v7  ;;  %2726 = vmatpush1.bf16.msra.mxu1 %v2743_v7  ;;  %v2823_v62 = vld [vmem:[%s4311_s0 + $0x3d4] ss:$8 sps:$4 sm:$0xff]   ;;  %v2829_v2 = vld [vmem:[%s4311_s0 + $0x3e4] ss:$8 sps:$4 sm:$0xff]   ;;  %v2828_v3 = vld [vmem:[%s4311_s0 + $0xc0] ss:$8 sps:$4 sm:$0xff]  }
  0x17   :  { %1355 = vmatprep.subr.bf16.mxu0 %v3054_v0  ;;  %2711 = vmatprep.subr.bf16.mxu1 %v3054_v0  ;;  %v2831_v4 = vld [vmem:[%s4311_s0 + $0x3e0] ss:$8 sps:$4 sm:$0xff]   ;;  %v2832_v5 = vld [vmem:[%s4311_s0 + $0xd4] ss:$8 sps:$4 sm:$0xff]   ;;  %v2834_v7 = vld [vmem:[%s4311_s0 + $0xd0] ss:$8 sps:$4 sm:$0xff]  }
  0x18   :  { %v2835_v6 = vld [vmem:[%s4311_s0 + $0x3f4] ss:$8 sps:$4 sm:$0xff]   ;;  %v2837_v8 = vld [vmem:[%s4311_s0 + $0x3f0] ss:$8 sps:$4 sm:$0xff]  }
  0x1a   :  { %1356 = vmatpush1.bf16.msra.mxu0 %v2744_v9  ;;  %2727 = vmatpush1.bf16.msra.mxu1 %v2744_v9  ;;  %v2838_v9 = vld [vmem:[%s4311_s0 + $0xe4] ss:$8 sps:$4 sm:$0xff]  }
  0x1b   :  { %1357 = vmatprep.subr.bf16.mxu0 %v3054_v0  ;;  %2712 = vmatprep.subr.bf16.mxu1 %v3054_v0 }
  0x1e   :  { %1358 = vmatpush1.bf16.msra.mxu0 %v2745_v10  ;;  %2728 = vmatpush1.bf16.msra.mxu1 %v2745_v10  ;;  %v2841_v10 = vld [vmem:[%s4311_s0 + $0x404] ss:$8 sps:$4 sm:$0xff]  }
  0x1f   :  { %1359 = vmatprep.subr.bf16.mxu0 %v3054_v0  ;;  %2713 = vmatprep.subr.bf16.mxu1 %v3054_v0 }
  0x22   :  { %1360 = vmatpush1.bf16.msra.mxu0 %v2746_v11  ;;  %2729 = vmatpush1.bf16.msra.mxu1 %v2746_v11  ;;  %v2840_v11 = vld [vmem:[%s4311_s0 + $0xe0] ss:$8 sps:$4 sm:$0xff]  }
  0x23   :  { %1361 = vmatprep.subr.bf16.mxu0 %v3054_v0  ;;  %2714 = vmatprep.subr.bf16.mxu1 %v3054_v0 }
  0x26   :  { %1362 = vmatpush1.bf16.msra.mxu0 %v2747_v12  ;;  %2730 = vmatpush1.bf16.msra.mxu1 %v2747_v12  ;;  %v2843_v12 = vld [vmem:[%s4311_s0 + $0x400] ss:$8 sps:$4 sm:$0xff]  }
  0x27   :  { %1363 = vmatprep.subr.bf16.mxu0 %v3054_v0  ;;  %2715 = vmatprep.subr.bf16.mxu1 %v3054_v0 }
  0x2a   :  { %1364 = vmatpush1.bf16.msra.mxu0 %v2748_v13  ;;  %2731 = vmatpush1.bf16.msra.mxu1 %v2748_v13  ;;  %v2844_v13 = vld [vmem:[%s4311_s0 + $0xf4] ss:$8 sps:$4 sm:$0xff]  }
  0x2b   :  { %1365 = vmatprep.subr.bf16.mxu0 %v3054_v0  ;;  %2716 = vmatprep.subr.bf16.mxu1 %v3054_v0 }
  0x2e   :  { %1366 = vmatpush1.bf16.msra.mxu0 %v2749_v14  ;;  %2732 = vmatpush1.bf16.msra.mxu1 %v2749_v14  ;;  %v2847_v14 = vld [vmem:[%s4311_s0 + $0x414] ss:$8 sps:$4 sm:$0xff]  }
  0x2f   :  { %1367 = vmatprep.subr.bf16.mxu0 %v3054_v0  ;;  %2717 = vmatprep.subr.bf16.mxu1 %v3054_v0 }
  0x32   :  { %1368 = vmatpush1.bf16.msra.mxu0 %v2750_v15  ;;  %2733 = vmatpush1.bf16.msra.mxu1 %v2750_v15  ;;  %v2846_v15 = vld [vmem:[%s4311_s0 + $0xf0] ss:$8 sps:$4 sm:$0xff]  }
  0x33   :  { %1369 = vmatprep.subr.bf16.mxu0 %v3054_v0  ;;  %2718 = vmatprep.subr.bf16.mxu1 %v3054_v0 }
  0x36   :  { %1370 = vmatpush1.bf16.msra.mxu0 %v2751_v16  ;;  %2734 = vmatpush1.bf16.msra.mxu1 %v2751_v16  ;;  %v2849_v16 = vld [vmem:[%s4311_s0 + $0x410] ss:$8 sps:$4 sm:$0xff]  }
  0x37   :  { %1371 = vmatprep.subr.bf16.mxu0 %v3054_v0  ;;  %2719 = vmatprep.subr.bf16.mxu1 %v3054_v0 }
  0x3a   :  { %1372 = vmatpush1.bf16.msra.mxu0 %v2752_v17  ;;  %2735 = vmatpush1.bf16.msra.mxu1 %v2752_v17  ;;  %v2850_v17 = vld [vmem:[%s4311_s0 + $0x104] ss:$8 sps:$4 sm:$0xff]  }
  0x3b   :  { %1373 = vmatprep.subr.bf16.mxu0 %v3054_v0  ;;  %2720 = vmatprep.subr.bf16.mxu1 %v3054_v0  ;;  %v2825_v0 = vld [vmem:[%s4311_s0 + $0x3d0] ss:$8 sps:$4 sm:$0xff]  }
  0x3e   :  { %1374 = vmatpush1.bf16.msra.mxu0 %v2753_v18  ;;  %2736 = vmatpush1.bf16.msra.mxu1 %v2753_v18  ;;  %v2853_v18 = vld [vmem:[%s4311_s0 + $0x424] ss:$8 sps:$4 sm:$0xff]  }
  0x41   :  { %1376 = vmatmul.mubr.bf16.vlgmr.msra.gmra.mrb[0].mxu0 %v2754_v19  ;;  %1776 = vmatmul.mubr.bf16.vlgmr.msra.gmra.mrb[0].mxu1 %v2757_v20  ;;  %v2852_v19 = vld [vmem:[%s4311_s0 + $0x100] ss:$8 sps:$4 sm:$0xff]  }
  0x42   :  { %1383 = vmatprep.mubr.bf16.mxu0 %v2760_v21  ;;  %1783 = vmatprep.mubr.bf16.mxu1 %v2763_v22  ;;  %v2855_v20 = vld [vmem:[%s4311_s0 + $0x420] ss:$8 sps:$4 sm:$0xff]   ;;  %v2856_v21 = vld [vmem:[%s4311_s0 + $0x114] ss:$8 sps:$4 sm:$0xff]  }
  0x43   :  { %v2859_v22 = vld [vmem:[%s4311_s0 + $0x434] ss:$8 sps:$4 sm:$0xff]  }
  0x49   :  { %1384 = vmatmul.mubr.bf16.gmra.mrb[4].mxu0 %v2762_v23  ;;  %1784 = vmatmul.mubr.bf16.gmra.mrb[4].mxu1 %v2765_v24  ;;  %v2858_v23 = vld [vmem:[%s4311_s0 + $0x110] ss:$8 sps:$4 sm:$0xff]  }
  0x4a   :  { %1391 = vmatprep.mubr.bf16.mxu0 %v2766_v25  ;;  %1791 = vmatprep.mubr.bf16.mxu1 %v2769_v26  ;;  %v2861_v24 = vld [vmem:[%s4311_s0 + $0x430] ss:$8 sps:$4 sm:$0xff]   ;;  %v2862_v25 = vld [vmem:[%s4311_s0 + $0x124] ss:$8 sps:$4 sm:$0xff]  }
  0x4b   :  { %v2865_v26 = vld [vmem:[%s4311_s0 + $0x444] ss:$8 sps:$4 sm:$0xff]  }
  0x51   :  { %1392 = vmatmul.mubr.bf16.gmra.mrb[8].mxu0 %v2768_v27  ;;  %1792 = vmatmul.mubr.bf16.gmra.mrb[8].mxu1 %v2771_v28  ;;  %v2864_v27 = vld [vmem:[%s4311_s0 + $0x120] ss:$8 sps:$4 sm:$0xff]  }
  0x52   :  { %1399 = vmatprep.mubr.bf16.mxu0 %v2772_v29  ;;  %1799 = vmatprep.mubr.bf16.mxu1 %v2775_v30  ;;  %v2867_v28 = vld [vmem:[%s4311_s0 + $0x440] ss:$8 sps:$4 sm:$0xff]   ;;  %v2868_v29 = vld [vmem:[%s4311_s0 + $0x134] ss:$8 sps:$4 sm:$0xff]  }
  0x53   :  { %v2871_v30 = vld [vmem:[%s4311_s0 + $0x454] ss:$8 sps:$4 sm:$0xff]  }
  0x59   :  { %1400 = vmatmul.mubr.bf16.gmra.mrb[12].mxu0 %v2774_v31  ;;  %1800 = vmatmul.mubr.bf16.gmra.mrb[12].mxu1 %v2777_v32  ;;  %v2870_v31 = vld [vmem:[%s4311_s0 + $0x130] ss:$8 sps:$4 sm:$0xff]  }
  0x5a   :  { %1407 = vmatprep.mubr.bf16.mxu0 %v2778_v33  ;;  %1807 = vmatprep.mubr.bf16.mxu1 %v2781_v34  ;;  %v2873_v32 = vld [vmem:[%s4311_s0 + $0x450] ss:$8 sps:$4 sm:$0xff]   ;;  %v2874_v33 = vld [vmem:[%s4311_s0 + $0x144] ss:$8 sps:$4 sm:$0xff]  }
  0x5b   :  { %v2877_v34 = vld [vmem:[%s4311_s0 + $0x464] ss:$8 sps:$4 sm:$0xff]  }
  0x61   :  { %1408 = vmatmul.mubr.bf16.gmra.mrb[16].mxu0 %v2780_v35  ;;  %1808 = vmatmul.mubr.bf16.gmra.mrb[16].mxu1 %v2783_v36  ;;  %v2876_v35 = vld [vmem:[%s4311_s0 + $0x140] ss:$8 sps:$4 sm:$0xff]  }
  0x62   :  { %1415 = vmatprep.mubr.bf16.mxu0 %v2784_v37  ;;  %1815 = vmatprep.mubr.bf16.mxu1 %v2787_v38  ;;  %v2879_v36 = vld [vmem:[%s4311_s0 + $0x460] ss:$8 sps:$4 sm:$0xff]   ;;  %v2880_v37 = vld [vmem:[%s4311_s0 + $0x154] ss:$8 sps:$4 sm:$0xff]  }
  0x63   :  { %v2883_v38 = vld [vmem:[%s4311_s0 + $0x474] ss:$8 sps:$4 sm:$0xff]  }
  0x69   :  { %1416 = vmatmul.mubr.bf16.gmra.mrb[20].mxu0 %v2786_v39  ;;  %1816 = vmatmul.mubr.bf16.gmra.mrb[20].mxu1 %v2789_v40  ;;  %v2882_v39 = vld [vmem:[%s4311_s0 + $0x150] ss:$8 sps:$4 sm:$0xff]  }
  0x6a   :  { %1423 = vmatprep.mubr.bf16.mxu0 %v2790_v41  ;;  %1823 = vmatprep.mubr.bf16.mxu1 %v2793_v42  ;;  %v2885_v40 = vld [vmem:[%s4311_s0 + $0x470] ss:$8 sps:$4 sm:$0xff]   ;;  %v2886_v41 = vld [vmem:[%s4311_s0 + $0x164] ss:$8 sps:$4 sm:$0xff]  }
  0x6b   :  { %v2889_v42 = vld [vmem:[%s4311_s0 + $0x484] ss:$8 sps:$4 sm:$0xff]  }
  0x71   :  { %1424 = vmatmul.mubr.bf16.gmra.mrb[24].mxu0 %v2792_v43  ;;  %1824 = vmatmul.mubr.bf16.gmra.mrb[24].mxu1 %v2795_v44  ;;  %v2888_v43 = vld [vmem:[%s4311_s0 + $0x160] ss:$8 sps:$4 sm:$0xff]  }
  0x72   :  { %1431 = vmatprep.mubr.bf16.mxu0 %v2796_v45  ;;  %1831 = vmatprep.mubr.bf16.mxu1 %v2799_v46  ;;  %v2891_v44 = vld [vmem:[%s4311_s0 + $0x480] ss:$8 sps:$4 sm:$0xff]   ;;  %v2892_v45 = vld [vmem:[%s4311_s0 + $0x174] ss:$8 sps:$4 sm:$0xff]  }
  0x73   :  { %v2895_v46 = vld [vmem:[%s4311_s0 + $0x494] ss:$8 sps:$4 sm:$0xff]  }
  0x79   :  { %1432 = vmatmul.mubr.bf16.gmra.mrb[28].mxu0 %v2798_v47  ;;  %1832 = vmatmul.mubr.bf16.gmra.mrb[28].mxu1 %v2801_v48  ;;  %v2894_v47 = vld [vmem:[%s4311_s0 + $0x170] ss:$8 sps:$4 sm:$0xff]  }
  0x7a   :  { %1439 = vmatprep.mubr.bf16.mxu0 %v2802_v49  ;;  %1839 = vmatprep.mubr.bf16.mxu1 %v2805_v50  ;;  %v2897_v48 = vld [vmem:[%s4311_s0 + $0x490] ss:$8 sps:$4 sm:$0xff]   ;;  %v2898_v49 = vld [vmem:[%s4311_s0 + $0x184] ss:$8 sps:$4 sm:$0xff]  }
  0x7b   :  { %v2901_v50 = vld [vmem:[%s4311_s0 + $0x4a4] ss:$8 sps:$4 sm:$0xff]  }
  0x81   :  { %1440 = vmatmul.mubr.bf16.gmra.mrb[32].mxu0 %v2804_v51  ;;  %1840 = vmatmul.mubr.bf16.gmra.mrb[32].mxu1 %v2807_v52  ;;  %v2900_v51 = vld [vmem:[%s4311_s0 + $0x180] ss:$8 sps:$4 sm:$0xff]  }
  0x82   :  { %1447 = vmatprep.mubr.bf16.mxu0 %v2808_v53  ;;  %1847 = vmatprep.mubr.bf16.mxu1 %v2811_v54  ;;  %v2903_v52 = vld [vmem:[%s4311_s0 + $0x4a0] ss:$8 sps:$4 sm:$0xff]   ;;  %v2904_v53 = vld [vmem:[%s4311_s0 + $0x194] ss:$8 sps:$4 sm:$0xff]  }
  0x83   :  { %v2907_v54 = vld [vmem:[%s4311_s0 + $0x4b4] ss:$8 sps:$4 sm:$0xff]  }
  0x89   :  { %1448 = vmatmul.mubr.bf16.gmra.mrb[36].mxu0 %v2810_v55  ;;  %1848 = vmatmul.mubr.bf16.gmra.mrb[36].mxu1 %v2813_v56  ;;  %v2906_v55 = vld [vmem:[%s4311_s0 + $0x190] ss:$8 sps:$4 sm:$0xff]  }
  0x8a   :  { %1455 = vmatprep.mubr.bf16.mxu0 %v2814_v57  ;;  %1855 = vmatprep.mubr.bf16.mxu1 %v2817_v58  ;;  %v2909_v56 = vld [vmem:[%s4311_s0 + $0x4b0] ss:$8 sps:$4 sm:$0xff]   ;;  %v2910_v57 = vld [vmem:[%s4311_s0 + $0x1a4] ss:$8 sps:$4 sm:$0xff]  }
  0x8b   :  { %v2913_v58 = vld [vmem:[%s4311_s0 + $0x4c4] ss:$8 sps:$4 sm:$0xff]  }
  0x91   :  { %1456 = vmatmul.mubr.bf16.gmra.mrb[40].mxu0 %v2816_v59  ;;  %1856 = vmatmul.mubr.bf16.gmra.mrb[40].mxu1 %v2819_v60  ;;  %v2912_v59 = vld [vmem:[%s4311_s0 + $0x1a0] ss:$8 sps:$4 sm:$0xff]  }
  0x92   :  { %1463 = vmatprep.mubr.bf16.mxu0 %v2820_v61  ;;  %1863 = vmatprep.mubr.bf16.mxu1 %v2823_v62  ;;  %v2915_v60 = vld [vmem:[%s4311_s0 + $0x4c0] ss:$8 sps:$4 sm:$0xff]   ;;  %v2916_v61 = vld [vmem:[%s4311_s0 + $0x1b4] ss:$8 sps:$4 sm:$0xff]  }
  0x93   :  { %v2919_v62 = vld [vmem:[%s4311_s0 + $0x4d4] ss:$8 sps:$4 sm:$0xff]  }
  0x99   :  { %1464 = vmatmul.mubr.bf16.gmra.mrb[44].mxu0 %v2822_v63  ;;  %1864 = vmatmul.mubr.bf16.gmra.mrb[44].mxu1 %v2825_v0 }
  0x9a   :  { %1471 = vmatprep.mubr.bf16.mxu0 %v2826_v1  ;;  %1871 = vmatprep.mubr.bf16.mxu1 %v2829_v2 }
  0xa1   :  { %1472 = vmatmul.mubr.bf16.gmra.mrb[48].mxu0 %v2828_v3  ;;  %1872 = vmatmul.mubr.bf16.gmra.mrb[48].mxu1 %v2831_v4  ;;  %v2918_v3 = vld [vmem:[%s4311_s0 + $0x1b0] ss:$8 sps:$4 sm:$0xff]  }
  0xa2   :  { %1479 = vmatprep.mubr.bf16.mxu0 %v2832_v5  ;;  %1879 = vmatprep.mubr.bf16.mxu1 %v2835_v6  ;;  %v2921_v4 = vld [vmem:[%s4311_s0 + $0x4d0] ss:$8 sps:$4 sm:$0xff]  }
  0xa9   :  { %1480 = vmatmul.mubr.bf16.gmra.mrb[52].mxu0 %v2834_v7  ;;  %1880 = vmatmul.mubr.bf16.gmra.mrb[52].mxu1 %v2837_v8  ;;  %v2922_v7 = vld [vmem:[%s4311_s0 + $0x1c4] ss:$8 sps:$4 sm:$0xff]  }
  0xaa   :  { %1487 = vmatprep.mubr.bf16.mxu0 %v2838_v9  ;;  %1887 = vmatprep.mubr.bf16.mxu1 %v2841_v10  ;;  %v2925_v8 = vld [vmem:[%s4311_s0 + $0x4e4] ss:$8 sps:$4 sm:$0xff]  }
  0xb1   :  { %1488 = vmatmul.mubr.bf16.gmra.mrb[56].mxu0 %v2840_v11  ;;  %1888 = vmatmul.mubr.bf16.gmra.mrb[56].mxu1 %v2843_v12 }
  0xb2   :  { %1495 = vmatprep.mubr.bf16.mxu0 %v2844_v13  ;;  %1895 = vmatprep.mubr.bf16.mxu1 %v2847_v14 }
  0xb9   :  { %1496 = vmatmul.mubr.bf16.gmra.mrb[60].mxu0 %v2846_v15  ;;  %1896 = vmatmul.mubr.bf16.gmra.mrb[60].mxu1 %v2849_v16  ;;  %v2924_v15 = vld [vmem:[%s4311_s0 + $0x1c0] ss:$8 sps:$4 sm:$0xff]  }
  0xba   :  { %1503 = vmatprep.mubr.bf16.mxu0 %v2850_v17  ;;  %1903 = vmatprep.mubr.bf16.mxu1 %v2853_v18  ;;  %v2927_v16 = vld [vmem:[%s4311_s0 + $0x4e0] ss:$8 sps:$4 sm:$0xff]  }
  0xc1   :  { %1504 = vmatmul.mubr.bf16.gmra.mrb[64].mxu0 %v2852_v19  ;;  %1904 = vmatmul.mubr.bf16.gmra.mrb[64].mxu1 %v2855_v20  ;;  %v2928_v19 = vld [vmem:[%s4311_s0 + $0x1d4] ss:$8 sps:$4 sm:$0xff]  }
  0xc2   :  { %1511 = vmatprep.mubr.bf16.mxu0 %v2856_v21  ;;  %1911 = vmatprep.mubr.bf16.mxu1 %v2859_v22  ;;  %v2931_v20 = vld [vmem:[%s4311_s0 + $0x4f4] ss:$8 sps:$4 sm:$0xff]  }
  0xc9   :  { %1512 = vmatmul.mubr.bf16.gmra.mrb[68].mxu0 %v2858_v23  ;;  %1912 = vmatmul.mubr.bf16.gmra.mrb[68].mxu1 %v2861_v24 }
  0xca   :  { %1519 = vmatprep.mubr.bf16.mxu0 %v2862_v25  ;;  %1919 = vmatprep.mubr.bf16.mxu1 %v2865_v26 }
  0xd1   :  { %1520 = vmatmul.mubr.bf16.gmra.mrb[72].mxu0 %v2864_v27  ;;  %1920 = vmatmul.mubr.bf16.gmra.mrb[72].mxu1 %v2867_v28  ;;  %v2930_v27 = vld [vmem:[%s4311_s0 + $0x1d0] ss:$8 sps:$4 sm:$0xff]  }
  0xd2   :  { %1527 = vmatprep.mubr.bf16.mxu0 %v2868_v29  ;;  %1927 = vmatprep.mubr.bf16.mxu1 %v2871_v30  ;;  %v2933_v28 = vld [vmem:[%s4311_s0 + $0x4f0] ss:$8 sps:$4 sm:$0xff]  }
  0xd9   :  { %1528 = vmatmul.mubr.bf16.gmra.mrb[76].mxu0 %v2870_v31  ;;  %1928 = vmatmul.mubr.bf16.gmra.mrb[76].mxu1 %v2873_v32  ;;  %v2934_v31 = vld [vmem:[%s4311_s0 + $0x1e4] ss:$8 sps:$4 sm:$0xff]  }
  0xda   :  { %1535 = vmatprep.mubr.bf16.mxu0 %v2874_v33  ;;  %1935 = vmatprep.mubr.bf16.mxu1 %v2877_v34  ;;  %v2937_v32 = vld [vmem:[%s4311_s0 + $0x504] ss:$8 sps:$4 sm:$0xff]  }
  0xe1   :  { %1536 = vmatmul.mubr.bf16.gmra.mrb[80].mxu0 %v2876_v35  ;;  %1936 = vmatmul.mubr.bf16.gmra.mrb[80].mxu1 %v2879_v36 }
  0xe2   :  { %1543 = vmatprep.mubr.bf16.mxu0 %v2880_v37  ;;  %1943 = vmatprep.mubr.bf16.mxu1 %v2883_v38 }
  0xe9   :  { %1544 = vmatmul.mubr.bf16.gmra.mrb[84].mxu0 %v2882_v39  ;;  %1944 = vmatmul.mubr.bf16.gmra.mrb[84].mxu1 %v2885_v40  ;;  %v2936_v39 = vld [vmem:[%s4311_s0 + $0x1e0] ss:$8 sps:$4 sm:$0xff]  }
  0xea   :  { %1551 = vmatprep.mubr.bf16.mxu0 %v2886_v41  ;;  %1951 = vmatprep.mubr.bf16.mxu1 %v2889_v42  ;;  %v2939_v40 = vld [vmem:[%s4311_s0 + $0x500] ss:$8 sps:$4 sm:$0xff]  }
  0xf1   :  { %1552 = vmatmul.mubr.bf16.gmra.mrb[88].mxu0 %v2888_v43  ;;  %1952 = vmatmul.mubr.bf16.gmra.mrb[88].mxu1 %v2891_v44  ;;  %v2940_v43 = vld [vmem:[%s4311_s0 + $0x1f4] ss:$8 sps:$4 sm:$0xff]  }
  0xf2   :  { %1559 = vmatprep.mubr.bf16.mxu0 %v2892_v45  ;;  %1959 = vmatprep.mubr.bf16.mxu1 %v2895_v46  ;;  %v2943_v44 = vld [vmem:[%s4311_s0 + $0x514] ss:$8 sps:$4 sm:$0xff]  }
  0xf9   :  { %1560 = vmatmul.mubr.bf16.gmra.mrb[92].mxu0 %v2894_v47  ;;  %1960 = vmatmul.mubr.bf16.gmra.mrb[92].mxu1 %v2897_v48 }
  0xfa   :  { %1567 = vmatprep.mubr.bf16.mxu0 %v2898_v49  ;;  %1967 = vmatprep.mubr.bf16.mxu1 %v2901_v50 }
 0x101   :  { %1568 = vmatmul.mubr.bf16.gmra.mrb[96].mxu0 %v2900_v51  ;;  %1968 = vmatmul.mubr.bf16.gmra.mrb[96].mxu1 %v2903_v52  ;;  %v2942_v51 = vld [vmem:[%s4311_s0 + $0x1f0] ss:$8 sps:$4 sm:$0xff]  }
 0x102   :  { %1575 = vmatprep.mubr.bf16.mxu0 %v2904_v53  ;;  %1975 = vmatprep.mubr.bf16.mxu1 %v2907_v54  ;;  %v2945_v52 = vld [vmem:[%s4311_s0 + $0x510] ss:$8 sps:$4 sm:$0xff]  }
 0x109   :  { %1576 = vmatmul.mubr.bf16.gmra.mrb[100].mxu0 %v2906_v55  ;;  %1976 = vmatmul.mubr.bf16.gmra.mrb[100].mxu1 %v2909_v56  ;;  %v2946_v55 = vld [vmem:[%s4311_s0 + $0x204] ss:$8 sps:$4 sm:$0xff]  }
 0x10a   :  { %1583 = vmatprep.mubr.bf16.mxu0 %v2910_v57  ;;  %1983 = vmatprep.mubr.bf16.mxu1 %v2913_v58  ;;  %v2949_v56 = vld [vmem:[%s4311_s0 + $0x524] ss:$8 sps:$4 sm:$0xff]  }
 0x111   :  { %1584 = vmatmul.mubr.bf16.gmra.mrb[104].mxu0 %v2912_v59  ;;  %1984 = vmatmul.mubr.bf16.gmra.mrb[104].mxu1 %v2915_v60 }
 0x112   :  { %1591 = vmatprep.mubr.bf16.mxu0 %v2916_v61  ;;  %1991 = vmatprep.mubr.bf16.mxu1 %v2919_v62 }
 0x114   :  { %v3485_v63 = vpop.f32.mrb[0].mxu0  ;;  %v3487_v0 = vpop.f32.mrb[0].mxu1 }
 0x115   :  { %v1379_v1 = vpop.f32.mrb[1].mxu0  ;;  %v1779_v2 = vpop.f32.mrb[1].mxu1 }
 0x116   :  { %v3495_v5 = vpop.f32.mrb[2].mxu0  ;;  %v3497_v6 = vpop.f32.mrb[2].mxu1  ;;  %v2948_v1 = vld [vmem:[%s4311_s0 + $0x200] ss:$8 sps:$4 sm:$0xff]  }
 0x117   :  { %v1382_v9 = vpop.f32.mrb[3].mxu0  ;;  %v1782_v10 = vpop.f32.mrb[3].mxu1  ;;  %v2951_v2 = vld [vmem:[%s4311_s0 + $0x520] ss:$8 sps:$4 sm:$0xff]  }
 0x119   :  { %1592 = vmatmul.mubr.bf16.gmra.mrb[108].mxu0 %v2918_v3  ;;  %1992 = vmatmul.mubr.bf16.gmra.mrb[108].mxu1 %v2921_v4 }
 0x11a   :  { %1599 = vmatprep.mubr.bf16.mxu0 %v2922_v7  ;;  %1999 = vmatprep.mubr.bf16.mxu1 %v2925_v8  ;;  %v2952_v7 = vld [vmem:[%s4311_s0 + $0x214] ss:$8 sps:$4 sm:$0xff]  }
 0x11b   :  { %v2955_v8 = vld [vmem:[%s4311_s0 + $0x534] ss:$8 sps:$4 sm:$0xff]  }
 0x11c   :  { %v3505_v11 = vpop.f32.mrb[4].mxu0  ;;  %v3507_v12 = vpop.f32.mrb[4].mxu1 }
 0x11d   :  { %v1387_v13 = vpop.f32.mrb[5].mxu0  ;;  %v1787_v14 = vpop.f32.mrb[5].mxu1 }
 0x11e   :  { %v3515_v17 = vpop.f32.mrb[6].mxu0  ;;  %v3517_v18 = vpop.f32.mrb[6].mxu1 }
 0x11f   :  { %v1390_v21 = vpop.f32.mrb[7].mxu0  ;;  %v1790_v22 = vpop.f32.mrb[7].mxu1 }
 0x121   :  { %1600 = vmatmul.mubr.bf16.gmra.mrb[112].mxu0 %v2924_v15  ;;  %2000 = vmatmul.mubr.bf16.gmra.mrb[112].mxu1 %v2927_v16 }
 0x122   :  { %1607 = vmatprep.mubr.bf16.mxu0 %v2928_v19  ;;  %2007 = vmatprep.mubr.bf16.mxu1 %v2931_v20  ;;  %v2954_v19 = vld [vmem:[%s4311_s0 + $0x210] ss:$8 sps:$4 sm:$0xff]  }
 0x123   :  { %v2957_v20 = vld [vmem:[%s4311_s0 + $0x530] ss:$8 sps:$4 sm:$0xff]  }
 0x124   :  { %v3525_v23 = vpop.f32.mrb[8].mxu0  ;;  %v3527_v24 = vpop.f32.mrb[8].mxu1 }
 0x125   :  { %v1395_v25 = vpop.f32.mrb[9].mxu0  ;;  %v1795_v26 = vpop.f32.mrb[9].mxu1 }
 0x126   :  { %v3535_v29 = vpop.f32.mrb[10].mxu0  ;;  %v3537_v30 = vpop.f32.mrb[10].mxu1  ;;  %v2958_v25 = vld [vmem:[%s4311_s0 + $0x224] ss:$8 sps:$4 sm:$0xff]  }
 0x127   :  { %v1398_v33 = vpop.f32.mrb[11].mxu0  ;;  %v1798_v34 = vpop.f32.mrb[11].mxu1  ;;  %v2961_v26 = vld [vmem:[%s4311_s0 + $0x544] ss:$8 sps:$4 sm:$0xff]  }
 0x129   :  { %1608 = vmatmul.mubr.bf16.gmra.mrb[116].mxu0 %v2930_v27  ;;  %2008 = vmatmul.mubr.bf16.gmra.mrb[116].mxu1 %v2933_v28 }
 0x12a   :  { %1615 = vmatprep.mubr.bf16.mxu0 %v2934_v31  ;;  %2015 = vmatprep.mubr.bf16.mxu1 %v2937_v32 }
 0x12c   :  { %v3545_v35 = vpop.f32.mrb[12].mxu0  ;;  %v3547_v36 = vpop.f32.mrb[12].mxu1 }
 0x12d   :  { %v1403_v37 = vpop.f32.mrb[13].mxu0  ;;  %v1803_v38 = vpop.f32.mrb[13].mxu1 }
 0x12e   :  { %v3555_v41 = vpop.f32.mrb[14].mxu0  ;;  %v3557_v42 = vpop.f32.mrb[14].mxu1  ;;  %v2960_v37 = vld [vmem:[%s4311_s0 + $0x220] ss:$8 sps:$4 sm:$0xff]  }
 0x12f   :  { %v1406_v45 = vpop.f32.mrb[15].mxu0  ;;  %v1806_v46 = vpop.f32.mrb[15].mxu1  ;;  %v2963_v38 = vld [vmem:[%s4311_s0 + $0x540] ss:$8 sps:$4 sm:$0xff]  }
 0x131   :  { %1616 = vmatmul.mubr.bf16.gmra.mrb[120].mxu0 %v2936_v39  ;;  %2016 = vmatmul.mubr.bf16.gmra.mrb[120].mxu1 %v2939_v40 }
 0x132   :  { %1623 = vmatprep.mubr.bf16.mxu0 %v2940_v43  ;;  %2023 = vmatprep.mubr.bf16.mxu1 %v2943_v44  ;;  %v2964_v43 = vld [vmem:[%s4311_s0 + $0x234] ss:$8 sps:$4 sm:$0xff]  }
 0x133   :  { %v2967_v44 = vld [vmem:[%s4311_s0 + $0x554] ss:$8 sps:$4 sm:$0xff]  }
 0x134   :  { %v3565_v47 = vpop.f32.mrb[16].mxu0  ;;  %v3567_v48 = vpop.f32.mrb[16].mxu1 }
 0x135   :  { %v1411_v49 = vpop.f32.mrb[17].mxu0  ;;  %v1811_v50 = vpop.f32.mrb[17].mxu1 }
 0x136   :  { %v3575_v53 = vpop.f32.mrb[18].mxu0  ;;  %v3577_v54 = vpop.f32.mrb[18].mxu1 }
 0x137   :  { %v1414_v57 = vpop.f32.mrb[19].mxu0  ;;  %v1814_v58 = vpop.f32.mrb[19].mxu1 }
 0x139   :  { %1624 = vmatmul.mubr.bf16.gmra.mrb[124].mxu0 %v2942_v51  ;;  %2024 = vmatmul.mubr.bf16.gmra.mrb[124].mxu1 %v2945_v52 }
 0x13a   :  { %1631 = vmatprep.mubr.bf16.mxu0 %v2946_v55  ;;  %2031 = vmatprep.mubr.bf16.mxu1 %v2949_v56  ;;  %v2966_v55 = vld [vmem:[%s4311_s0 + $0x230] ss:$8 sps:$4 sm:$0xff]  }
 0x13b   :  { %v2969_v56 = vld [vmem:[%s4311_s0 + $0x550] ss:$8 sps:$4 sm:$0xff]  }
 0x13c   :  { %v3585_v59 = vpop.f32.mrb[20].mxu0  ;;  %v3587_v60 = vpop.f32.mrb[20].mxu1 }
 0x13d   :  { %v1419_v61 = vpop.f32.mrb[21].mxu0  ;;  %v1819_v62 = vpop.f32.mrb[21].mxu1 }
 0x13e   :  { %v3595_v3 = vpop.f32.mrb[22].mxu0  ;;  %v3597_v4 = vpop.f32.mrb[22].mxu1  ;;  %v2970_v61 = vld [vmem:[%s4311_s0 + $0x244] ss:$8 sps:$4 sm:$0xff]  }
 0x13f   :  { %v1422_v9 = vpop.f32.mrb[23].mxu0  ;;  %v1822_v10 = vpop.f32.mrb[23].mxu1  ;;  %v2973_v62 = vld [vmem:[%s4311_s0 + $0x564] ss:$8 sps:$4 sm:$0xff]  }
 0x141   :  { %1632 = vmatmul.mubr.bf16.gmra.mrb[128].mxu0 %v2948_v1  ;;  %2032 = vmatmul.mubr.bf16.gmra.mrb[128].mxu1 %v2951_v2 }
 0x142   :  { %1639 = vmatprep.mubr.bf16.mxu0 %v2952_v7  ;;  %2039 = vmatprep.mubr.bf16.mxu1 %v2955_v8 }
 0x144   :  { %v3605_v13 = vpop.f32.mrb[24].mxu0  ;;  %v3607_v14 = vpop.f32.mrb[24].mxu1 }
 0x145   :  { %v1427_v15 = vpop.f32.mrb[25].mxu0  ;;  %v1827_v16 = vpop.f32.mrb[25].mxu1 }
 0x146   :  { %v3615_v21 = vpop.f32.mrb[26].mxu0  ;;  %v3617_v22 = vpop.f32.mrb[26].mxu1  ;;  %v2972_v15 = vld [vmem:[%s4311_s0 + $0x240] ss:$8 sps:$4 sm:$0xff]  }
 0x147   :  { %v1430_v27 = vpop.f32.mrb[27].mxu0  ;;  %v1830_v28 = vpop.f32.mrb[27].mxu1  ;;  %v2975_v16 = vld [vmem:[%s4311_s0 + $0x560] ss:$8 sps:$4 sm:$0xff]  }
 0x149   :  { %1640 = vmatmul.mubr.bf16.gmra.mrb[132].mxu0 %v2954_v19  ;;  %2040 = vmatmul.mubr.bf16.gmra.mrb[132].mxu1 %v2957_v20 }
 0x14a   :  { %1647 = vmatprep.mubr.bf16.mxu0 %v2958_v25  ;;  %2047 = vmatprep.mubr.bf16.mxu1 %v2961_v26  ;;  %v2976_v25 = vld [vmem:[%s4311_s0 + $0x254] ss:$8 sps:$4 sm:$0xff]  }
 0x14b   :  { %v2979_v26 = vld [vmem:[%s4311_s0 + $0x574] ss:$8 sps:$4 sm:$0xff]  }
 0x14c   :  { %v3625_v31 = vpop.f32.mrb[28].mxu0  ;;  %v3627_v32 = vpop.f32.mrb[28].mxu1 }
 0x14d   :  { %v1435_v33 = vpop.f32.mrb[29].mxu0  ;;  %v1835_v34 = vpop.f32.mrb[29].mxu1 }
 0x14e   :  { %v3635_v39 = vpop.f32.mrb[30].mxu0  ;;  %v3637_v40 = vpop.f32.mrb[30].mxu1 }
 0x14f   :  { %v1438_v45 = vpop.f32.mrb[31].mxu0  ;;  %v1838_v46 = vpop.f32.mrb[31].mxu1 }
 0x151   :  { %1648 = vmatmul.mubr.bf16.gmra.mrb[136].mxu0 %v2960_v37  ;;  %2048 = vmatmul.mubr.bf16.gmra.mrb[136].mxu1 %v2963_v38 }
 0x152   :  { %1655 = vmatprep.mubr.bf16.mxu0 %v2964_v43  ;;  %2055 = vmatprep.mubr.bf16.mxu1 %v2967_v44  ;;  %v2978_v43 = vld [vmem:[%s4311_s0 + $0x250] ss:$8 sps:$4 sm:$0xff]  }
 0x153   :  { %v2981_v44 = vld [vmem:[%s4311_s0 + $0x570] ss:$8 sps:$4 sm:$0xff]  }
 0x154   :  { %v3645_v49 = vpop.f32.mrb[32].mxu0  ;;  %v3647_v50 = vpop.f32.mrb[32].mxu1 }
 0x155   :  { %v1443_v51 = vpop.f32.mrb[33].mxu0  ;;  %v1843_v52 = vpop.f32.mrb[33].mxu1 }
 0x156   :  { %v3655_v57 = vpop.f32.mrb[34].mxu0  ;;  %v3657_v58 = vpop.f32.mrb[34].mxu1  ;;  %v2982_v51 = vld [vmem:[%s4311_s0 + $0x264] ss:$8 sps:$4 sm:$0xff]  }
 0x157   :  { %v1446_v1 = vpop.f32.mrb[35].mxu0  ;;  %v1846_v2 = vpop.f32.mrb[35].mxu1  ;;  %v2985_v52 = vld [vmem:[%s4311_s0 + $0x584] ss:$8 sps:$4 sm:$0xff]  }
 0x159   :  { %1656 = vmatmul.mubr.bf16.gmra.mrb[140].mxu0 %v2966_v55  ;;  %2056 = vmatmul.mubr.bf16.gmra.mrb[140].mxu1 %v2969_v56 }
 0x15a   :  { %1663 = vmatprep.mubr.bf16.mxu0 %v2970_v61  ;;  %2063 = vmatprep.mubr.bf16.mxu1 %v2973_v62 }
 0x15c   :  { %v3665_v7 = vpop.f32.mrb[36].mxu0  ;;  %v3667_v8 = vpop.f32.mrb[36].mxu1 }
 0x15d   :  { %v1451_v9 = vpop.f32.mrb[37].mxu0  ;;  %v1851_v10 = vpop.f32.mrb[37].mxu1 }
 0x15e   :  { %v3675_v19 = vpop.f32.mrb[38].mxu0  ;;  %v3677_v20 = vpop.f32.mrb[38].mxu1  ;;  %v2984_v9 = vld [vmem:[%s4311_s0 + $0x260] ss:$8 sps:$4 sm:$0xff]  }
 0x15f   :  { %v1454_v27 = vpop.f32.mrb[39].mxu0  ;;  %v1854_v28 = vpop.f32.mrb[39].mxu1  ;;  %v2987_v10 = vld [vmem:[%s4311_s0 + $0x580] ss:$8 sps:$4 sm:$0xff]  }
 0x161   :  { %1664 = vmatmul.mubr.bf16.gmra.mrb[144].mxu0 %v2972_v15  ;;  %2064 = vmatmul.mubr.bf16.gmra.mrb[144].mxu1 %v2975_v16 }
 0x162   :  { %1671 = vmatprep.mubr.bf16.mxu0 %v2976_v25  ;;  %2071 = vmatprep.mubr.bf16.mxu1 %v2979_v26  ;;  %v2988_v25 = vld [vmem:[%s4311_s0 + $0x274] ss:$8 sps:$4 sm:$0xff]  }
 0x163   :  { %v2991_v26 = vld [vmem:[%s4311_s0 + $0x594] ss:$8 sps:$4 sm:$0xff]  }
 0x164   :  { %v3685_v33 = vpop.f32.mrb[40].mxu0  ;;  %v3687_v34 = vpop.f32.mrb[40].mxu1 }
 0x165   :  { %v1459_v37 = vpop.f32.mrb[41].mxu0  ;;  %v1859_v38 = vpop.f32.mrb[41].mxu1 }
 0x166   :  { %v3695_v45 = vpop.f32.mrb[42].mxu0  ;;  %v3697_v46 = vpop.f32.mrb[42].mxu1 }
 0x167   :  { %v1462_v55 = vpop.f32.mrb[43].mxu0  ;;  %v1862_v56 = vpop.f32.mrb[43].mxu1 }
 0x169   :  { %1672 = vmatmul.mubr.bf16.gmra.mrb[148].mxu0 %v2978_v43  ;;  %2072 = vmatmul.mubr.bf16.gmra.mrb[148].mxu1 %v2981_v44 }
 0x16a   :  { %1679 = vmatprep.mubr.bf16.mxu0 %v2982_v51  ;;  %2079 = vmatprep.mubr.bf16.mxu1 %v2985_v52  ;;  %v2990_v51 = vld [vmem:[%s4311_s0 + $0x270] ss:$8 sps:$4 sm:$0xff]  }
 0x16b   :  { %v2993_v52 = vld [vmem:[%s4311_s0 + $0x590] ss:$8 sps:$4 sm:$0xff]  }
 0x16c   :  { %v3705_v61 = vpop.f32.mrb[44].mxu0  ;;  %v3707_v62 = vpop.f32.mrb[44].mxu1 }
 0x16d   :  { %v1467_v1 = vpop.f32.mrb[45].mxu0  ;;  %v1867_v2 = vpop.f32.mrb[45].mxu1 }
 0x16e   :  { %v3715_v15 = vpop.f32.mrb[46].mxu0  ;;  %v3717_v16 = vpop.f32.mrb[46].mxu1  ;;  %v2994_v1 = vld [vmem:[%s4311_s0 + $0x284] ss:$8 sps:$4 sm:$0xff]  }
 0x16f   :  { %v1470_v27 = vpop.f32.mrb[47].mxu0  ;;  %v1870_v28 = vpop.f32.mrb[47].mxu1  ;;  %v2997_v2 = vld [vmem:[%s4311_s0 + $0x5a4] ss:$8 sps:$4 sm:$0xff]  }
 0x171   :  { %1680 = vmatmul.mubr.bf16.gmra.mrb[152].mxu0 %v2984_v9  ;;  %2080 = vmatmul.mubr.bf16.gmra.mrb[152].mxu1 %v2987_v10 }
 0x172   :  { %1687 = vmatprep.mubr.bf16.mxu0 %v2988_v25  ;;  %2087 = vmatprep.mubr.bf16.mxu1 %v2991_v26 }
 0x174   :  { %v3725_v37 = vpop.f32.mrb[48].mxu0  ;;  %v3727_v38 = vpop.f32.mrb[48].mxu1 }
 0x175   :  { %4314 = vst [vmem:[#allocation2_spill] sm:$0xff] %v3727_v38  ;;  %v1475_v43 = vpop.f32.mrb[49].mxu0  ;;  %v1875_v44 = vpop.f32.mrb[49].mxu1 }
 0x176   :  { %v3735_v55 = vpop.f32.mrb[50].mxu0  ;;  %v3737_v56 = vpop.f32.mrb[50].mxu1  ;;  %v2996_v43 = vld [vmem:[%s4311_s0 + $0x280] ss:$8 sps:$4 sm:$0xff]  }
 0x177   :  { %4315 = vst [vmem:[#allocation3_spill] sm:$0xff] %v3735_v55  ;;  %4316 = vst [vmem:[#allocation4_spill] sm:$0xff] %v3737_v56  ;;  %v1478_v9 = vpop.f32.mrb[51].mxu0  ;;  %v1878_v10 = vpop.f32.mrb[51].mxu1  ;;  %v2999_v44 = vld [vmem:[%s4311_s0 + $0x5a0] ss:$8 sps:$4 sm:$0xff]  }
 0x179   :  { %1688 = vmatmul.mubr.bf16.gmra.mrb[156].mxu0 %v2990_v51  ;;  %2088 = vmatmul.mubr.bf16.gmra.mrb[156].mxu1 %v2993_v52  ;;  %v3000_v52 = vld [vmem:[%s4311_s0 + $0x294] ss:$8 sps:$4 sm:$0xff]  }
 0x17a   :  { %1695 = vmatprep.mubr.bf16.mxu0 %v2994_v1  ;;  %2095 = vmatprep.mubr.bf16.mxu1 %v2997_v2  ;;  %v3003_v1 = vld [vmem:[%s4311_s0 + $0x5b4] ss:$8 sps:$4 sm:$0xff]  }
 0x17c   :  { %v3745_v25 = vpop.f32.mrb[52].mxu0  ;;  %v3747_v26 = vpop.f32.mrb[52].mxu1 }
 0x17d   :  { %4317 = vst [vmem:[#allocation5_spill] sm:$0xff] %v3745_v25  ;;  %4318 = vst [vmem:[#allocation6_spill] sm:$0xff] %v3747_v26  ;;  %v1483_v27 = vpop.f32.mrb[53].mxu0  ;;  %v1883_v28 = vpop.f32.mrb[53].mxu1  ;;  %v3002_v26 = vld [vmem:[%s4311_s0 + $0x290] ss:$8 sps:$4 sm:$0xff]  }
 0x17e   :  { %v3755_v9 = vpop.f32.mrb[54].mxu0  ;;  %v3757_v51 = vpop.f32.mrb[54].mxu1  ;;  %v3005_v25 = vld [vmem:[%s4311_s0 + $0x5b0] ss:$8 sps:$4 sm:$0xff]  }
 0x17f   :  { %4319 = vst [vmem:[#allocation7_spill] sm:$0xff] %v3755_v9  ;;  %4320 = vst [vmem:[#allocation8_spill] sm:$0xff] %v3757_v51  ;;  %v1486_v2 = vpop.f32.mrb[55].mxu0  ;;  %v1886_v10 = vpop.f32.mrb[55].mxu1 }
 0x181   :  { %1696 = vmatmul.mubr.bf16.gmra.mrb[160].mxu0 %v2996_v43  ;;  %2096 = vmatmul.mubr.bf16.gmra.mrb[160].mxu1 %v2999_v44  ;;  %v3006_v44 = vld [vmem:[%s4311_s0 + $0x2a4] ss:$8 sps:$4 sm:$0xff]  }
 0x182   :  { %1703 = vmatprep.mubr.bf16.mxu0 %v3000_v52  ;;  %2103 = vmatprep.mubr.bf16.mxu1 %v3003_v1 }
 0x184   :  { %v3765_v27 = vpop.f32.mrb[56].mxu0  ;;  %v3767_v28 = vpop.f32.mrb[56].mxu1 }
 0x185   :  { %4321 = vst [vmem:[#allocation9_spill] sm:$0xff] %v3765_v27  ;;  %4322 = vst [vmem:[#allocation10_spill] sm:$0xff] %v3767_v28  ;;  %v1491_v9 = vpop.f32.mrb[57].mxu0  ;;  %v1891_v51 = vpop.f32.mrb[57].mxu1  ;;  %v3008_v28 = vld [vmem:[%s4311_s0 + $0x2a0] ss:$8 sps:$4 sm:$0xff]  }
 0x186   :  { %v3775_v2 = vpop.f32.mrb[58].mxu0  ;;  %v3777_v43 = vpop.f32.mrb[58].mxu1  ;;  %v3009_v9 = vld [vmem:[%s4311_s0 + $0x5c4] ss:$8 sps:$4 sm:$0xff]   ;;  %v3011_v27 = vld [vmem:[%s4311_s0 + $0x5c0] ss:$8 sps:$4 sm:$0xff]  }
 0x187   :  { %4323 = vst [vmem:[#allocation11_spill] sm:$0xff] %v3775_v2  ;;  %4324 = vst [vmem:[#allocation12_spill] sm:$0xff] %v3777_v43  ;;  %v1494_v51 = vpop.f32.mrb[59].mxu0  ;;  %v1894_v52 = vpop.f32.mrb[59].mxu1 }
 0x189   :  { %1704 = vmatmul.mubr.bf16.gmra.mrb[164].mxu0 %v3002_v26  ;;  %2104 = vmatmul.mubr.bf16.gmra.mrb[164].mxu1 %v3005_v25  ;;  %v3012_v25 = vld [vmem:[%s4311_s0 + $0x2b4] ss:$8 sps:$4 sm:$0xff]  }
 0x18a   :  { %1711 = vmatprep.mubr.bf16.mxu0 %v3006_v44  ;;  %2111 = vmatprep.mubr.bf16.mxu1 %v3009_v9 }
 0x18c   :  { %v3785_v1 = vpop.f32.mrb[60].mxu0  ;;  %v3787_v10 = vpop.f32.mrb[60].mxu1 }
 0x18d   :  { %4325 = vst [vmem:[#allocation13_spill] sm:$0xff] %v3785_v1  ;;  %4326 = vst [vmem:[#allocation14_spill] sm:$0xff] %v3787_v10  ;;  %v1499_v2 = vpop.f32.mrb[61].mxu0  ;;  %v1899_v43 = vpop.f32.mrb[61].mxu1  ;;  %v3014_v10 = vld [vmem:[%s4311_s0 + $0x2b0] ss:$8 sps:$4 sm:$0xff]  }
 0x18e   :  { %v3795_v51 = vpop.f32.mrb[62].mxu0  ;;  %v3797_v26 = vpop.f32.mrb[62].mxu1  ;;  %v3015_v2 = vld [vmem:[%s4311_s0 + $0x5d4] ss:$8 sps:$4 sm:$0xff]   ;;  %v3017_v1 = vld [vmem:[%s4311_s0 + $0x5d0] ss:$8 sps:$4 sm:$0xff]  }
 0x18f   :  { %4327 = vst [vmem:[#allocation15_spill] sm:$0xff] %v3795_v51  ;;  %4328 = vst [vmem:[#allocation16_spill] sm:$0xff] %v3797_v26  ;;  %v1502_v43 = vpop.f32.mrb[63].mxu0  ;;  %v1902_v44 = vpop.f32.mrb[63].mxu1 }
 0x191   :  { %1712 = vmatmul.mubr.bf16.gmra.mrb[168].mxu0 %v3008_v28  ;;  %2112 = vmatmul.mubr.bf16.gmra.mrb[168].mxu1 %v3011_v27  ;;  %v3018_v27 = vld [vmem:[%s4311_s0 + $0x2c4] ss:$8 sps:$4 sm:$0xff]  }
 0x192   :  { %1719 = vmatprep.mubr.bf16.mxu0 %v3012_v25  ;;  %2119 = vmatprep.mubr.bf16.mxu1 %v3015_v2 }
 0x194   :  { %v3805_v9 = vpop.f32.mrb[64].mxu0  ;;  %v3807_v52 = vpop.f32.mrb[64].mxu1 }
 0x195   :  { %4329 = vst [vmem:[#allocation17_spill] sm:$0xff] %v3805_v9  ;;  %4330 = vst [vmem:[#allocation18_spill] sm:$0xff] %v3807_v52  ;;  %v1507_v51 = vpop.f32.mrb[65].mxu0  ;;  %v1907_v26 = vpop.f32.mrb[65].mxu1  ;;  %v3020_v52 = vld [vmem:[%s4311_s0 + $0x2c0] ss:$8 sps:$4 sm:$0xff]  }
 0x196   :  { %v3815_v43 = vpop.f32.mrb[66].mxu0  ;;  %v3817_v28 = vpop.f32.mrb[66].mxu1  ;;  %v3021_v51 = vld [vmem:[%s4311_s0 + $0x5e4] ss:$8 sps:$4 sm:$0xff]   ;;  %v3023_v9 = vld [vmem:[%s4311_s0 + $0x5e0] ss:$8 sps:$4 sm:$0xff]  }
 0x197   :  { %4331 = vst [vmem:[#allocation19_spill] sm:$0xff] %v3815_v43  ;;  %4332 = vst [vmem:[#allocation20_spill] sm:$0xff] %v3817_v28  ;;  %v1510_v26 = vpop.f32.mrb[67].mxu0  ;;  %v1910_v25 = vpop.f32.mrb[67].mxu1 }
 0x199   :  { %1720 = vmatmul.mubr.bf16.gmra.mrb[172].mxu0 %v3014_v10  ;;  %2120 = vmatmul.mubr.bf16.gmra.mrb[172].mxu1 %v3017_v1  ;;  %v3024_v1 = vld [vmem:[%s4311_s0 + $0x2d4] ss:$8 sps:$4 sm:$0xff]  }
 0x19a   :  { %1727 = vmatprep.mubr.bf16.mxu0 %v3018_v27  ;;  %2127 = vmatprep.mubr.bf16.mxu1 %v3021_v51 }
 0x19c   :  { %v3825_v2 = vpop.f32.mrb[68].mxu0  ;;  %v3827_v44 = vpop.f32.mrb[68].mxu1 }
 0x19d   :  { %4333 = vst [vmem:[#allocation21_spill] sm:$0xff] %v3825_v2  ;;  %4334 = vst [vmem:[#allocation22_spill] sm:$0xff] %v3827_v44  ;;  %v1515_v43 = vpop.f32.mrb[69].mxu0  ;;  %v1915_v28 = vpop.f32.mrb[69].mxu1  ;;  %v3026_v44 = vld [vmem:[%s4311_s0 + $0x2d0] ss:$8 sps:$4 sm:$0xff]  }
 0x19e   :  { %v3835_v26 = vpop.f32.mrb[70].mxu0  ;;  %v3837_v10 = vpop.f32.mrb[70].mxu1  ;;  %v3027_v43 = vld [vmem:[%s4311_s0 + $0x5f4] ss:$8 sps:$4 sm:$0xff]   ;;  %v3029_v2 = vld [vmem:[%s4311_s0 + $0x5f0] ss:$8 sps:$4 sm:$0xff]  }
 0x19f   :  { %4335 = vst [vmem:[#allocation23_spill] sm:$0xff] %v3835_v26  ;;  %4336 = vst [vmem:[#allocation24_spill] sm:$0xff] %v3837_v10  ;;  %v1518_v28 = vpop.f32.mrb[71].mxu0  ;;  %v1918_v27 = vpop.f32.mrb[71].mxu1 }
 0x1a1   :  { %1728 = vmatmul.mubr.bf16.gmra.mrb[176].mxu0 %v3020_v52  ;;  %2128 = vmatmul.mubr.bf16.gmra.mrb[176].mxu1 %v3023_v9  ;;  %v3030_v9 = vld [vmem:[%s4311_s0 + $0x2e4] ss:$8 sps:$4 sm:$0xff]  }
 0x1a2   :  { %1735 = vmatprep.mubr.bf16.mxu0 %v3024_v1  ;;  %2135 = vmatprep.mubr.bf16.mxu1 %v3027_v43 }
 0x1a4   :  { %v3845_v51 = vpop.f32.mrb[72].mxu0  ;;  %v3847_v25 = vpop.f32.mrb[72].mxu1 }
 0x1a5   :  { %4337 = vst [vmem:[#allocation25_spill] sm:$0xff] %v3845_v51  ;;  %4338 = vst [vmem:[#allocation26_spill] sm:$0xff] %v3847_v25  ;;  %v1523_v26 = vpop.f32.mrb[73].mxu0  ;;  %v1923_v10 = vpop.f32.mrb[73].mxu1  ;;  %v3032_v25 = vld [vmem:[%s4311_s0 + $0x2e0] ss:$8 sps:$4 sm:$0xff]  }
 0x1a6   :  { %v3855_v28 = vpop.f32.mrb[74].mxu0  ;;  %v3857_v52 = vpop.f32.mrb[74].mxu1  ;;  %v3033_v26 = vld [vmem:[%s4311_s0 + $0x604] ss:$8 sps:$4 sm:$0xff]   ;;  %v3035_v51 = vld [vmem:[%s4311_s0 + $0x600] ss:$8 sps:$4 sm:$0xff]  }
 0x1a7   :  { %4339 = vst [vmem:[#allocation27_spill] sm:$0xff] %v3855_v28  ;;  %4340 = vst [vmem:[#allocation28_spill] sm:$0xff] %v3857_v52  ;;  %v1526_v10 = vpop.f32.mrb[75].mxu0  ;;  %v1926_v1 = vpop.f32.mrb[75].mxu1 }
 0x1a9   :  { %1736 = vmatmul.mubr.bf16.gmra.mrb[180].mxu0 %v3026_v44  ;;  %2136 = vmatmul.mubr.bf16.gmra.mrb[180].mxu1 %v3029_v2  ;;  %v3036_v2 = vld [vmem:[%s4311_s0 + $0x2f4] ss:$8 sps:$4 sm:$0xff]  }
 0x1aa   :  { %1743 = vmatprep.mubr.bf16.mxu0 %v3030_v9  ;;  %2143 = vmatprep.mubr.bf16.mxu1 %v3033_v26 }
 0x1ac   :  { %v3865_v43 = vpop.f32.mrb[76].mxu0  ;;  %v3867_v27 = vpop.f32.mrb[76].mxu1 }
 0x1ad   :  { %4341 = vst [vmem:[#allocation29_spill] sm:$0xff] %v3865_v43  ;;  %4342 = vst [vmem:[#allocation30_spill] sm:$0xff] %v3867_v27  ;;  %v1531_v28 = vpop.f32.mrb[77].mxu0  ;;  %v1931_v52 = vpop.f32.mrb[77].mxu1  ;;  %v3038_v27 = vld [vmem:[%s4311_s0 + $0x2f0] ss:$8 sps:$4 sm:$0xff]  }
 0x1ae   :  { %v3875_v10 = vpop.f32.mrb[78].mxu0  ;;  %v3877_v44 = vpop.f32.mrb[78].mxu1  ;;  %v3039_v28 = vld [vmem:[%s4311_s0 + $0x614] ss:$8 sps:$4 sm:$0xff]   ;;  %v3041_v43 = vld [vmem:[%s4311_s0 + $0x610] ss:$8 sps:$4 sm:$0xff]  }
 0x1af   :  { %4343 = vst [vmem:[#allocation31_spill] sm:$0xff] %v3875_v10  ;;  %4344 = vst [vmem:[#allocation32_spill] sm:$0xff] %v3877_v44  ;;  %v1534_v52 = vpop.f32.mrb[79].mxu0  ;;  %v1934_v9 = vpop.f32.mrb[79].mxu1 }
 0x1b1   :  { %1744 = vmatmul.mubr.bf16.gmra.mrb[184].mxu0 %v3032_v25  ;;  %2144 = vmatmul.mubr.bf16.gmra.mrb[184].mxu1 %v3035_v51  ;;  %v3042_v51 = vld [vmem:[%s4311_s0 + $0x304] ss:$8 sps:$4 sm:$0xff]  }
 0x1b2   :  { %1751 = vmatprep.mubr.bf16.mxu0 %v3036_v2  ;;  %2151 = vmatprep.mubr.bf16.mxu1 %v3039_v28 }
 0x1b4   :  { %v3885_v26 = vpop.f32.mrb[80].mxu0  ;;  %v3887_v1 = vpop.f32.mrb[80].mxu1 }
 0x1b5   :  { %4345 = vst [vmem:[#allocation33_spill] sm:$0xff] %v3885_v26  ;;  %4346 = vst [vmem:[#allocation34_spill] sm:$0xff] %v3887_v1  ;;  %v1539_v10 = vpop.f32.mrb[81].mxu0  ;;  %v1939_v44 = vpop.f32.mrb[81].mxu1  ;;  %v3044_v1 = vld [vmem:[%s4311_s0 + $0x300] ss:$8 sps:$4 sm:$0xff]  }
 0x1b6   :  { %v3895_v52 = vpop.f32.mrb[82].mxu0  ;;  %v3897_v25 = vpop.f32.mrb[82].mxu1  ;;  %v3045_v10 = vld [vmem:[%s4311_s0 + $0x624] ss:$8 sps:$4 sm:$0xff]   ;;  %v3047_v26 = vld [vmem:[%s4311_s0 + $0x620] ss:$8 sps:$4 sm:$0xff]  }
 0x1b7   :  { %4347 = vst [vmem:[#allocation35_spill] sm:$0xff] %v3895_v52  ;;  %4348 = vst [vmem:[#allocation36_spill] sm:$0xff] %v3897_v25  ;;  %v1542_v44 = vpop.f32.mrb[83].mxu0  ;;  %v1942_v2 = vpop.f32.mrb[83].mxu1 }
 0x1b9   :  { %1752 = vmatmul.mubr.bf16.gmra.mrb[188].mxu0 %v3038_v27  ;;  %2152 = vmatmul.mubr.bf16.gmra.mrb[188].mxu1 %v3041_v43  ;;  %v3048_v43 = vld [vmem:[%s4311_s0 + $0x314] ss:$8 sps:$4 sm:$0xff]  }
 0x1ba   :  { %1759 = vmatprep.mubr.bf16.mxu0 %v3042_v51  ;;  %2159 = vmatprep.mubr.bf16.mxu1 %v3045_v10 }
 0x1bc   :  { %v3905_v28 = vpop.f32.mrb[84].mxu0  ;;  %v3907_v9 = vpop.f32.mrb[84].mxu1 }
 0x1bd   :  { %4349 = vst [vmem:[#allocation37_spill] sm:$0xff] %v3905_v28  ;;  %4350 = vst [vmem:[#allocation38_spill] sm:$0xff] %v3907_v9  ;;  %v1547_v52 = vpop.f32.mrb[85].mxu0  ;;  %v1947_v25 = vpop.f32.mrb[85].mxu1  ;;  %v3050_v9 = vld [vmem:[%s4311_s0 + $0x310] ss:$8 sps:$4 sm:$0xff]  }
 0x1be   :  { %v3915_v44 = vpop.f32.mrb[86].mxu0  ;;  %v3917_v27 = vpop.f32.mrb[86].mxu1  ;;  %v3051_v52 = vld [vmem:[%s4311_s0 + $0x634] ss:$8 sps:$4 sm:$0xff]   ;;  %v3053_v28 = vld [vmem:[%s4311_s0 + $0x630] ss:$8 sps:$4 sm:$0xff]  }
 0x1bf   :  { %4351 = vst [vmem:[#allocation39_spill] sm:$0xff] %v3915_v44  ;;  %4352 = vst [vmem:[#allocation40_spill] sm:$0xff] %v3917_v27  ;;  %v1550_v25 = vpop.f32.mrb[87].mxu0  ;;  %v1950_v51 = vpop.f32.mrb[87].mxu1 }
 0x1c1   :  { %1760 = vmatmul.mubr.bf16.gmra.mrb[192].mxu0 %v3044_v1  ;;  %2160 = vmatmul.mubr.bf16.gmra.mrb[192].mxu1 %v3047_v26 }
 0x1c2   :  { %1767 = vmatprep.mubr.bf16.mxu0 %v3048_v43  ;;  %2167 = vmatprep.mubr.bf16.mxu1 %v3051_v52 }
 0x1c4   :  { %v3925_v10 = vpop.f32.mrb[88].mxu0  ;;  %v3927_v2 = vpop.f32.mrb[88].mxu1 }
 0x1c5   :  { %4353 = vst [vmem:[#allocation41_spill] sm:$0xff] %v3925_v10  ;;  %4354 = vst [vmem:[#allocation42_spill] sm:$0xff] %v3927_v2  ;;  %v1555_v44 = vpop.f32.mrb[89].mxu0  ;;  %v1955_v27 = vpop.f32.mrb[89].mxu1 }
 0x1c6   :  { %v3935_v25 = vpop.f32.mrb[90].mxu0  ;;  %v3937_v1 = vpop.f32.mrb[90].mxu1 }
 0x1c7   :  { %4355 = vst [vmem:[#allocation43_spill] sm:$0xff] %v3935_v25  ;;  %4356 = vst [vmem:[#allocation44_spill] sm:$0xff] %v3937_v1  ;;  %v1558_v26 = vpop.f32.mrb[91].mxu0  ;;  %v1958_v43 = vpop.f32.mrb[91].mxu1 }
 0x1c9   :  { %1768 = vmatmul.mubr.bf16.gmra.mrb[196].mxu0 %v3050_v9  ;;  %2168 = vmatmul.mubr.bf16.gmra.mrb[196].mxu1 %v3053_v28 }
 0x1cc   :  { %v3939_v52 = vpop.f32.mrb[92].mxu0  ;;  %v3941_v44 = vpop.f32.mrb[92].mxu1 }
 0x1cd   :  { %4357 = vst [vmem:[#allocation45_spill] sm:$0xff] %v3939_v52  ;;  %4358 = vst [vmem:[#allocation46_spill] sm:$0xff] %v3941_v44  ;;  %v1563_v27 = vpop.f32.mrb[93].mxu0  ;;  %v1963_v51 = vpop.f32.mrb[93].mxu1 }
 0x1ce   :  { %v3943_v2 = vpop.f32.mrb[94].mxu0  ;;  %v3945_v10 = vpop.f32.mrb[94].mxu1 }
 0x1cf   :  { %4359 = vst [vmem:[#allocation47_spill] sm:$0xff] %v3943_v2  ;;  %4360 = vst [vmem:[#allocation48_spill] sm:$0xff] %v3945_v10  ;;  %v1566_v56 = vpop.f32.mrb[95].mxu0  ;;  %v1966_v55 = vpop.f32.mrb[95].mxu1 }
 0x1d4   :  { %v3947_v38 = vpop.f32.mrb[96].mxu0  ;;  %v3949_v25 = vpop.f32.mrb[96].mxu1 }
 0x1d5   :  { %4361 = vst [vmem:[#allocation49_spill] sm:$0xff] %v3947_v38  ;;  %4362 = vst [vmem:[#allocation50_spill] sm:$0xff] %v3949_v25  ;;  %v1571_v26 = vpop.f32.mrb[97].mxu0  ;;  %v1971_v43 = vpop.f32.mrb[97].mxu1 }
 0x1d6   :  { %v3951_v9 = vpop.f32.mrb[98].mxu0  ;;  %v3953_v28 = vpop.f32.mrb[98].mxu1 }
 0x1d7   :  { %4363 = vst [vmem:[#allocation51_spill] sm:$0xff] %v3951_v9  ;;  %4364 = vst [vmem:[#allocation52_spill] sm:$0xff] %v3953_v28  ;;  %v1574_v52 = vpop.f32.mrb[99].mxu0  ;;  %v1974_v44 = vpop.f32.mrb[99].mxu1  ;;  %v3961_v28 = vld [vmem:[%s4312_s2] ss:$0 sm:$0xff] }
 0x1dc   :  { %v1577_v27 = vpop.f32.mrb[100].mxu0  ;;  %v1977_v51 = vpop.f32.mrb[100].mxu1 }
 0x1dd   :  { %v2176_v2 = vmax.f32 %v3485_v63, %v1577_v27  ;;  %v1579_v1 = vpop.f32.mrb[101].mxu0  ;;  %v1979_v10 = vpop.f32.mrb[101].mxu1 }
 0x1de   :  { %v1580_v56 = vpop.f32.mrb[102].mxu0  ;;  %v1980_v55 = vpop.f32.mrb[102].mxu1 }
 0x1df   :  { %v2226_v38 = vmax.f32 %v2176_v2, %v3487_v0  ;;  %v2177_v25 = vmax.f32 %v3495_v5, %v1580_v56  ;;  %v1582_v26 = vpop.f32.mrb[103].mxu0  ;;  %v1982_v43 = vpop.f32.mrb[103].mxu1 }
 0x1e1   :  { %v2276_v52 = vmax.f32 %v2226_v38, %v1977_v51  ;;  %v2227_v44 = vmax.f32 %v2177_v25, %v3497_v6 }
 0x1e3   :  { %v2333_v63 = vadd.f32 %v3961_v28, %v2276_v52  ;;  %v2277_v1 = vmax.f32 %v2227_v44, %v1980_v55 }
 0x1e4   :  { %v1585_v10 = vpop.f32.mrb[104].mxu0  ;;  %v1985_v27 = vpop.f32.mrb[104].mxu1 }
 0x1e5   :  { %v2383_v9 = vmax.f32 %v2333_v63, 0.0  ;;  %v2334_v0 = vadd.f32 %v3961_v28, %v2277_v1  ;;  %v2178_v5 = vmax.f32 %v3505_v11, %v1585_v10  ;;  %v1587_v2 = vpop.f32.mrb[105].mxu0  ;;  %v1987_v56 = vpop.f32.mrb[105].mxu1 }
 0x1e6   :  { %v1588_v26 = vpop.f32.mrb[106].mxu0  ;;  %v1988_v43 = vpop.f32.mrb[106].mxu1 }
 0x1e7   :  { %2434 = vst.msk [vmem:[%s4313_s3] sm:$0xff] %vm2433_vm0, %v2383_v9  ;;  %v2384_v6 = vmax.f32 %v2334_v0, 0.0  ;;  %v2228_v38 = vmax.f32 %v2178_v5, %v3507_v12  ;;  %v2179_v25 = vmax.f32 %v3515_v17, %v1588_v26  ;;  %v1590_v51 = vpop.f32.mrb[107].mxu0  ;;  %v1990_v55 = vpop.f32.mrb[107].mxu1 }
 0x1e9   :  { %2435 = vst.msk [vmem:[%s4313_s3 + $0x8] sm:$0xff] %vm2433_vm0, %v2384_v6  ;;  %v2278_v11 = vmax.f32 %v2228_v38, %v1985_v27  ;;  %v2229_v52 = vmax.f32 %v2179_v25, %v3517_v18 }
 0x1eb   :  { %v2335_v44 = vadd.f32 %v3961_v28, %v2278_v11  ;;  %v2279_v63 = vmax.f32 %v2229_v52, %v1988_v43 }
 0x1ec   :  { %v1593_v1 = vpop.f32.mrb[108].mxu0  ;;  %v1993_v9 = vpop.f32.mrb[108].mxu1 }
 0x1ed   :  { %v2385_v10 = vmax.f32 %v2335_v44, 0.0  ;;  %v2336_v12 = vadd.f32 %v3961_v28, %v2279_v63  ;;  %v2180_v17 = vmax.f32 %v3525_v23, %v1593_v1  ;;  %v1595_v0 = vpop.f32.mrb[109].mxu0  ;;  %v1995_v5 = vpop.f32.mrb[109].mxu1 }
 0x1ee   :  { %v1596_v2 = vpop.f32.mrb[110].mxu0  ;;  %v1996_v56 = vpop.f32.mrb[110].mxu1 }
 0x1ef   :  { %2436 = vst.msk [vmem:[%s4313_s3 + $0x10] sm:$0xff] %vm2433_vm0, %v2385_v10  ;;  %v2386_v18 = vmax.f32 %v2336_v12, 0.0  ;;  %v2230_v27 = vmax.f32 %v2180_v17, %v3527_v24  ;;  %v2181_v26 = vmax.f32 %v3535_v29, %v1596_v2  ;;  %v1598_v43 = vpop.f32.mrb[111].mxu0  ;;  %v1998_v6 = vpop.f32.mrb[111].mxu1 }
 0x1f1   :  { %2437 = vst.msk [vmem:[%s4313_s3 + $0x18] sm:$0xff] %vm2433_vm0, %v2386_v18  ;;  %v2280_v23 = vmax.f32 %v2230_v27, %v1993_v9  ;;  %v2231_v38 = vmax.f32 %v2181_v26, %v3537_v30 }
 0x1f3   :  { %v2337_v25 = vadd.f32 %v3961_v28, %v2280_v23  ;;  %v2281_v51 = vmax.f32 %v2231_v38, %v1996_v56 }
 0x1f4   :  { %v1601_v55 = vpop.f32.mrb[112].mxu0  ;;  %v2001_v11 = vpop.f32.mrb[112].mxu1 }
 0x1f5   :  { %v2387_v52 = vmax.f32 %v2337_v25, 0.0  ;;  %v2338_v24 = vadd.f32 %v3961_v28, %v2281_v51  ;;  %v2182_v29 = vmax.f32 %v3545_v35, %v1601_v55  ;;  %v1603_v44 = vpop.f32.mrb[113].mxu0  ;;  %v2003_v63 = vpop.f32.mrb[113].mxu1 }
 0x1f6   :  { %v1604_v1 = vpop.f32.mrb[114].mxu0  ;;  %v2004_v10 = vpop.f32.mrb[114].mxu1 }
 0x1f7   :  { %2438 = vst.msk [vmem:[%s4313_s3 + $0x20] sm:$0xff] %vm2433_vm0, %v2387_v52  ;;  %v2388_v30 = vmax.f32 %v2338_v24, 0.0  ;;  %v2232_v9 = vmax.f32 %v2182_v29, %v3547_v36  ;;  %v2183_v12 = vmax.f32 %v3555_v41, %v1604_v1  ;;  %v1606_v17 = vpop.f32.mrb[115].mxu0  ;;  %v2006_v0 = vpop.f32.mrb[115].mxu1 }
 0x1f9   :  { %2439 = vst.msk [vmem:[%s4313_s3 + $0x28] sm:$0xff] %vm2433_vm0, %v2388_v30  ;;  %v2282_v35 = vmax.f32 %v2232_v9, %v2001_v11  ;;  %v2233_v5 = vmax.f32 %v2183_v12, %v3557_v42 }
 0x1fb   :  { %v2339_v2 = vadd.f32 %v3961_v28, %v2282_v35  ;;  %v2283_v56 = vmax.f32 %v2233_v5, %v2004_v10 }
 0x1fc   :  { %v1609_v18 = vpop.f32.mrb[116].mxu0  ;;  %v2009_v27 = vpop.f32.mrb[116].mxu1 }
 0x1fd   :  { %v2389_v26 = vmax.f32 %v2339_v2, 0.0  ;;  %v2340_v36 = vadd.f32 %v3961_v28, %v2283_v56  ;;  %v2184_v41 = vmax.f32 %v3565_v47, %v1609_v18  ;;  %v1611_v43 = vpop.f32.mrb[117].mxu0  ;;  %v2011_v6 = vpop.f32.mrb[117].mxu1 }
 0x1fe   :  { %v1612_v23 = vpop.f32.mrb[118].mxu0  ;;  %v2012_v38 = vpop.f32.mrb[118].mxu1 }
 0x1ff   :  { %2440 = vst.msk [vmem:[%s4313_s3 + $0x30] sm:$0xff] %vm2433_vm0, %v2389_v26  ;;  %v2390_v42 = vmax.f32 %v2340_v36, 0.0  ;;  %v2234_v25 = vmax.f32 %v2184_v41, %v3567_v48  ;;  %v2185_v51 = vmax.f32 %v3575_v53, %v1612_v23  ;;  %v1614_v55 = vpop.f32.mrb[119].mxu0  ;;  %v2014_v11 = vpop.f32.mrb[119].mxu1 }
 0x201   :  { %2441 = vst.msk [vmem:[%s4313_s3 + $0x38] sm:$0xff] %vm2433_vm0, %v2390_v42  ;;  %v2284_v47 = vmax.f32 %v2234_v25, %v2009_v27  ;;  %v2235_v52 = vmax.f32 %v2185_v51, %v3577_v54 }
 0x203   :  { %v2341_v24 = vadd.f32 %v3961_v28, %v2284_v47  ;;  %v2285_v29 = vmax.f32 %v2235_v52, %v2012_v38 }
 0x204   :  { %v1617_v44 = vpop.f32.mrb[120].mxu0  ;;  %v2017_v63 = vpop.f32.mrb[120].mxu1 }
 0x205   :  { %v2391_v1 = vmax.f32 %v2341_v24, 0.0  ;;  %v2342_v48 = vadd.f32 %v3961_v28, %v2285_v29  ;;  %v2186_v53 = vmax.f32 %v3585_v59, %v1617_v44  ;;  %v1619_v10 = vpop.f32.mrb[121].mxu0  ;;  %v2019_v30 = vpop.f32.mrb[121].mxu1 }
 0x206   :  { %v1620_v9 = vpop.f32.mrb[122].mxu0  ;;  %v2020_v12 = vpop.f32.mrb[122].mxu1 }
 0x207   :  { %2442 = vst.msk [vmem:[%s4313_s3 + $0x40] sm:$0xff] %vm2433_vm0, %v2391_v1  ;;  %v2392_v54 = vmax.f32 %v2342_v48, 0.0  ;;  %v2236_v17 = vmax.f32 %v2186_v53, %v3587_v60  ;;  %v2187_v0 = vmax.f32 %v3595_v3, %v1620_v9  ;;  %v1622_v35 = vpop.f32.mrb[123].mxu0  ;;  %v2022_v5 = vpop.f32.mrb[123].mxu1 }
 0x209   :  { %2443 = vst.msk [vmem:[%s4313_s3 + $0x48] sm:$0xff] %vm2433_vm0, %v2392_v54  ;;  %v2286_v59 = vmax.f32 %v2236_v17, %v2017_v63  ;;  %v2237_v2 = vmax.f32 %v2187_v0, %v3597_v4 }
 0x20b   :  { %v2343_v56 = vadd.f32 %v3961_v28, %v2286_v59  ;;  %v2287_v18 = vmax.f32 %v2237_v2, %v2020_v12 }
 0x20c   :  { %v1625_v27 = vpop.f32.mrb[124].mxu0  ;;  %v2025_v26 = vpop.f32.mrb[124].mxu1 }
 0x20d   :  { %v2393_v36 = vmax.f32 %v2343_v56, 0.0  ;;  %v2344_v60 = vadd.f32 %v3961_v28, %v2287_v18  ;;  %v2188_v3 = vmax.f32 %v3605_v13, %v1625_v27  ;;  %v1627_v41 = vpop.f32.mrb[125].mxu0  ;;  %v2027_v43 = vpop.f32.mrb[125].mxu1 }
 0x20e   :  { %v1628_v6 = vpop.f32.mrb[126].mxu0  ;;  %v2028_v23 = vpop.f32.mrb[126].mxu1 }
 0x20f   :  { %2444 = vst.msk [vmem:[%s4313_s3 + $0x50] sm:$0xff] %vm2433_vm0, %v2393_v36  ;;  %v2394_v4 = vmax.f32 %v2344_v60, 0.0  ;;  %v2238_v38 = vmax.f32 %v2188_v3, %v3607_v14  ;;  %v2189_v42 = vmax.f32 %v3615_v21, %v1628_v6  ;;  %v1630_v25 = vpop.f32.mrb[127].mxu0  ;;  %v2030_v51 = vpop.f32.mrb[127].mxu1 }
 0x211   :  { %2445 = vst.msk [vmem:[%s4313_s3 + $0x58] sm:$0xff] %vm2433_vm0, %v2394_v4  ;;  %v2288_v13 = vmax.f32 %v2238_v38, %v2025_v26  ;;  %v2239_v55 = vmax.f32 %v2189_v42, %v3617_v22 }
 0x213   :  { %v2345_v11 = vadd.f32 %v3961_v28, %v2288_v13  ;;  %v2289_v47 = vmax.f32 %v2239_v55, %v2028_v23 }
 0x214   :  { %v1633_v52 = vpop.f32.mrb[128].mxu0  ;;  %v2033_v24 = vpop.f32.mrb[128].mxu1 }
 0x215   :  { %v2395_v29 = vmax.f32 %v2345_v11, 0.0  ;;  %v2346_v14 = vadd.f32 %v3961_v28, %v2289_v47  ;;  %v2190_v21 = vmax.f32 %v3625_v31, %v1633_v52  ;;  %v1635_v44 = vpop.f32.mrb[129].mxu0  ;;  %v2035_v63 = vpop.f32.mrb[129].mxu1 }
 0x216   :  { %v1636_v1 = vpop.f32.mrb[130].mxu0  ;;  %v2036_v48 = vpop.f32.mrb[130].mxu1 }
 0x217   :  { %2446 = vst.msk [vmem:[%s4313_s3 + $0x60] sm:$0xff] %vm2433_vm0, %v2395_v29  ;;  %v2396_v22 = vmax.f32 %v2346_v14, 0.0  ;;  %v2240_v53 = vmax.f32 %v2190_v21, %v3627_v32  ;;  %v2191_v10 = vmax.f32 %v3635_v39, %v1636_v1  ;;  %v1638_v30 = vpop.f32.mrb[131].mxu0  ;;  %v2038_v9 = vpop.f32.mrb[131].mxu1 }
 0x219   :  { %2447 = vst.msk [vmem:[%s4313_s3 + $0x68] sm:$0xff] %vm2433_vm0, %v2396_v22  ;;  %v2290_v31 = vmax.f32 %v2240_v53, %v2033_v24  ;;  %v2241_v12 = vmax.f32 %v2191_v10, %v3637_v40 }
 0x21b   :  { %v2347_v54 = vadd.f32 %v3961_v28, %v2290_v31  ;;  %v2291_v17 = vmax.f32 %v2241_v12, %v2036_v48 }
 0x21c   :  { %v1641_v0 = vpop.f32.mrb[132].mxu0  ;;  %v2041_v35 = vpop.f32.mrb[132].mxu1 }
 0x21d   :  { %v2397_v5 = vmax.f32 %v2347_v54, 0.0  ;;  %v2348_v32 = vadd.f32 %v3961_v28, %v2291_v17  ;;  %v2192_v39 = vmax.f32 %v3645_v49, %v1641_v0  ;;  %v1643_v59 = vpop.f32.mrb[133].mxu0  ;;  %v2043_v2 = vpop.f32.mrb[133].mxu1 }
 0x21e   :  { %v1644_v56 = vpop.f32.mrb[134].mxu0  ;;  %v2044_v18 = vpop.f32.mrb[134].mxu1 }
 0x21f   :  { %2448 = vst.msk [vmem:[%s4313_s3 + $0x70] sm:$0xff] %vm2433_vm0, %v2397_v5  ;;  %v2398_v40 = vmax.f32 %v2348_v32, 0.0  ;;  %v2242_v27 = vmax.f32 %v2192_v39, %v3647_v50  ;;  %v2193_v26 = vmax.f32 %v3655_v57, %v1644_v56  ;;  %v1646_v36 = vpop.f32.mrb[135].mxu0  ;;  %v2046_v60 = vpop.f32.mrb[135].mxu1 }
 0x221   :  { %2449 = vst.msk [vmem:[%s4313_s3 + $0x78] sm:$0xff] %vm2433_vm0, %v2398_v40  ;;  %v2292_v49 = vmax.f32 %v2242_v27, %v2041_v35  ;;  %v2243_v3 = vmax.f32 %v2193_v26, %v3657_v58 }
 0x223   :  { %v2349_v41 = vadd.f32 %v3961_v28, %v2292_v49  ;;  %v2293_v43 = vmax.f32 %v2243_v3, %v2044_v18 }
 0x224   :  { %v1649_v6 = vpop.f32.mrb[136].mxu0  ;;  %v2049_v23 = vpop.f32.mrb[136].mxu1 }
 0x225   :  { %v2399_v4 = vmax.f32 %v2349_v41, 0.0  ;;  %v2350_v50 = vadd.f32 %v3961_v28, %v2293_v43  ;;  %v2194_v57 = vmax.f32 %v3665_v7, %v1649_v6  ;;  %v1651_v38 = vpop.f32.mrb[137].mxu0  ;;  %v2051_v42 = vpop.f32.mrb[137].mxu1 }
 0x226   :  { %v1652_v25 = vpop.f32.mrb[138].mxu0  ;;  %v2052_v51 = vpop.f32.mrb[138].mxu1 }
 0x227   :  { %2450 = vst.msk [vmem:[%s4313_s3 + $0x80] sm:$0xff] %vm2433_vm0, %v2399_v4  ;;  %v2400_v58 = vmax.f32 %v2350_v50, 0.0  ;;  %v2244_v13 = vmax.f32 %v2194_v57, %v3667_v8  ;;  %v2195_v55 = vmax.f32 %v3675_v19, %v1652_v25  ;;  %v1654_v11 = vpop.f32.mrb[139].mxu0  ;;  %v2054_v47 = vpop.f32.mrb[139].mxu1  ;;  %v4365_v4 = vld [vmem:[#allocation2_spill] sm:$0xff]  ;;  %v4366_v57 = vld [vmem:[#allocation3_spill] sm:$0xff] }
 0x229   :  { %2451 = vst.msk [vmem:[%s4313_s3 + $0x88] sm:$0xff] %vm2433_vm0, %v2400_v58  ;;  %v2294_v7 = vmax.f32 %v2244_v13, %v2049_v23  ;;  %v2245_v52 = vmax.f32 %v2195_v55, %v3677_v20 }
 0x22b   :  { %v2351_v24 = vadd.f32 %v3961_v28, %v2294_v7  ;;  %v2295_v29 = vmax.f32 %v2245_v52, %v2052_v51  ;;  %v4367_v51 = vld [vmem:[#allocation4_spill] sm:$0xff] }
 0x22c   :  { %v1657_v14 = vpop.f32.mrb[140].mxu0  ;;  %v2057_v21 = vpop.f32.mrb[140].mxu1 }
 0x22d   :  { %v2401_v44 = vmax.f32 %v2351_v24, 0.0  ;;  %v2352_v8 = vadd.f32 %v3961_v28, %v2295_v29  ;;  %v2196_v19 = vmax.f32 %v3685_v33, %v1657_v14  ;;  %v1659_v63 = vpop.f32.mrb[141].mxu0  ;;  %v2059_v1 = vpop.f32.mrb[141].mxu1  ;;  %v4368_v24 = vld [vmem:[#allocation5_spill] sm:$0xff] }
 0x22e   :  { %v1660_v48 = vpop.f32.mrb[142].mxu0  ;;  %v2060_v22 = vpop.f32.mrb[142].mxu1  ;;  %v4369_v63 = vld [vmem:[#allocation6_spill] sm:$0xff] }
 0x22f   :  { %2452 = vst.msk [vmem:[%s4313_s3 + $0x90] sm:$0xff] %vm2433_vm0, %v2401_v44  ;;  %v2402_v20 = vmax.f32 %v2352_v8, 0.0  ;;  %v2246_v53 = vmax.f32 %v2196_v19, %v3687_v34  ;;  %v2197_v10 = vmax.f32 %v3695_v45, %v1660_v48  ;;  %v1662_v30 = vpop.f32.mrb[143].mxu0  ;;  %v2062_v9 = vpop.f32.mrb[143].mxu1  ;;  %v4370_v48 = vld [vmem:[#allocation7_spill] sm:$0xff] }
 0x230   :  { %v4371_v30 = vld [vmem:[#allocation8_spill] sm:$0xff] }
 0x231   :  { %2453 = vst.msk [vmem:[%s4313_s3 + $0x98] sm:$0xff] %vm2433_vm0, %v2402_v20  ;;  %v2296_v33 = vmax.f32 %v2246_v53, %v2057_v21  ;;  %v2247_v31 = vmax.f32 %v2197_v10, %v3697_v46 }
 0x233   :  { %v2353_v12 = vadd.f32 %v3961_v28, %v2296_v33  ;;  %v2297_v54 = vmax.f32 %v2247_v31, %v2060_v22 }
 0x234   :  { %v1665_v17 = vpop.f32.mrb[144].mxu0  ;;  %v2065_v0 = vpop.f32.mrb[144].mxu1 }
 0x235   :  { %v2403_v35 = vmax.f32 %v2353_v12, 0.0  ;;  %v2354_v34 = vadd.f32 %v3961_v28, %v2297_v54  ;;  %v2198_v45 = vmax.f32 %v3705_v61, %v1665_v17  ;;  %v1667_v5 = vpop.f32.mrb[145].mxu0  ;;  %v2067_v32 = vpop.f32.mrb[145].mxu1 }
 0x236   :  { %v1668_v39 = vpop.f32.mrb[146].mxu0  ;;  %v2068_v59 = vpop.f32.mrb[146].mxu1 }
 0x237   :  { %2454 = vst.msk [vmem:[%s4313_s3 + $0xa0] sm:$0xff] %vm2433_vm0, %v2403_v35  ;;  %v2404_v46 = vmax.f32 %v2354_v34, 0.0  ;;  %v2248_v2 = vmax.f32 %v2198_v45, %v3707_v62  ;;  %v2199_v56 = vmax.f32 %v3715_v15, %v1668_v39  ;;  %v1670_v18 = vpop.f32.mrb[147].mxu0  ;;  %v2070_v40 = vpop.f32.mrb[147].mxu1  ;;  %v4372_v35 = vld [vmem:[#allocation9_spill] sm:$0xff] }
 0x239   :  { %2455 = vst.msk [vmem:[%s4313_s3 + $0xa8] sm:$0xff] %vm2433_vm0, %v2404_v46  ;;  %v2298_v61 = vmax.f32 %v2248_v2, %v2065_v0  ;;  %v2249_v27 = vmax.f32 %v2199_v56, %v3717_v16  ;;  %v4373_v46 = vld [vmem:[#allocation10_spill] sm:$0xff]  ;;  %v4374_v56 = vld [vmem:[#allocation11_spill] sm:$0xff] }
 0x23b   :  { %v2355_v26 = vadd.f32 %v3961_v28, %v2298_v61  ;;  %v2299_v36 = vmax.f32 %v2249_v27, %v2068_v59 }
 0x23c   :  { %v1673_v60 = vpop.f32.mrb[148].mxu0  ;;  %v2073_v49 = vpop.f32.mrb[148].mxu1 }
 0x23d   :  { %v2405_v3 = vmax.f32 %v2355_v26, 0.0  ;;  %v2356_v62 = vadd.f32 %v3961_v28, %v2299_v36  ;;  %v2200_v15 = vmax.f32 %v3725_v37, %v1673_v60  ;;  %v1675_v41 = vpop.f32.mrb[149].mxu0  ;;  %v2075_v43 = vpop.f32.mrb[149].mxu1  ;;  %v4375_v26 = vld [vmem:[#allocation12_spill] sm:$0xff] }
 0x23e   :  { %v1676_v6 = vpop.f32.mrb[150].mxu0  ;;  %v2076_v23 = vpop.f32.mrb[150].mxu1  ;;  %v4376_v43 = vld [vmem:[#allocation13_spill] sm:$0xff] }
 0x23f   :  { %2456 = vst.msk [vmem:[%s4313_s3 + $0xb0] sm:$0xff] %vm2433_vm0, %v2405_v3  ;;  %v2406_v16 = vmax.f32 %v2356_v62, 0.0  ;;  %v2250_v50 = vmax.f32 %v2200_v15, %v4365_v4  ;;  %v2201_v38 = vmax.f32 %v4366_v57, %v1676_v6  ;;  %v1678_v42 = vpop.f32.mrb[151].mxu0  ;;  %v2078_v25 = vpop.f32.mrb[151].mxu1 }
 0x240   :  { %v4378_v25 = vld [vmem:[#allocation15_spill] sm:$0xff] }
 0x241   :  { %2457 = vst.msk [vmem:[%s4313_s3 + $0xb8] sm:$0xff] %vm2433_vm0, %v2406_v16  ;;  %v2300_v37 = vmax.f32 %v2250_v50, %v2073_v49  ;;  %v2251_v58 = vmax.f32 %v2201_v38, %v4367_v51  ;;  %v4377_v38 = vld [vmem:[#allocation14_spill] sm:$0xff] }
 0x243   :  { %v2357_v13 = vadd.f32 %v3961_v28, %v2300_v37  ;;  %v2301_v55 = vmax.f32 %v2251_v58, %v2076_v23 }
 0x244   :  { %v1681_v11 = vpop.f32.mrb[152].mxu0  ;;  %v2081_v47 = vpop.f32.mrb[152].mxu1 }
 0x245   :  { %v2407_v7 = vmax.f32 %v2357_v13, 0.0  ;;  %v2358_v52 = vadd.f32 %v3961_v28, %v2301_v55  ;;  %v2202_v29 = vmax.f32 %v4368_v24, %v1681_v11  ;;  %v1683_v14 = vpop.f32.mrb[153].mxu0  ;;  %v2083_v21 = vpop.f32.mrb[153].mxu1  ;;  %v4379_v55 = vld [vmem:[#allocation16_spill] sm:$0xff] }
 0x246   :  { %v1684_v44 = vpop.f32.mrb[154].mxu0  ;;  %v2084_v8 = vpop.f32.mrb[154].mxu1  ;;  %v4380_v21 = vld [vmem:[#allocation17_spill] sm:$0xff] }
 0x247   :  { %2458 = vst.msk [vmem:[%s4313_s3 + $0xc0] sm:$0xff] %vm2433_vm0, %v2407_v7  ;;  %v2408_v19 = vmax.f32 %v2358_v52, 0.0  ;;  %v2252_v1 = vmax.f32 %v2202_v29, %v4369_v63  ;;  %v2203_v22 = vmax.f32 %v4370_v48, %v1684_v44  ;;  %v1686_v20 = vpop.f32.mrb[155].mxu0  ;;  %v2086_v53 = vpop.f32.mrb[155].mxu1 }
 0x248   :  { %v4382_v53 = vld [vmem:[#allocation19_spill] sm:$0xff] }
 0x249   :  { %2459 = vst.msk [vmem:[%s4313_s3 + $0xc8] sm:$0xff] %vm2433_vm0, %v2408_v19  ;;  %v2302_v10 = vmax.f32 %v2252_v1, %v2081_v47  ;;  %v2253_v9 = vmax.f32 %v2203_v22, %v4371_v30  ;;  %v4381_v22 = vld [vmem:[#allocation18_spill] sm:$0xff] }
 0x24b   :  { %v2359_v33 = vadd.f32 %v3961_v28, %v2302_v10  ;;  %v2303_v31 = vmax.f32 %v2253_v9, %v2084_v8 }
 0x24c   :  { %v1689_v12 = vpop.f32.mrb[156].mxu0  ;;  %v2089_v54 = vpop.f32.mrb[156].mxu1 }
 0x24d   :  { %v2409_v17 = vmax.f32 %v2359_v33, 0.0  ;;  %v2360_v0 = vadd.f32 %v3961_v28, %v2303_v31  ;;  %v2204_v34 = vmax.f32 %v4372_v35, %v1689_v12  ;;  %v1691_v45 = vpop.f32.mrb[157].mxu0  ;;  %v2091_v5 = vpop.f32.mrb[157].mxu1  ;;  %v4383_v31 = vld [vmem:[#allocation20_spill] sm:$0xff] }
 0x24e   :  { %v1692_v32 = vpop.f32.mrb[158].mxu0  ;;  %v2092_v39 = vpop.f32.mrb[158].mxu1  ;;  %v4384_v5 = vld [vmem:[#allocation21_spill] sm:$0xff] }
 0x24f   :  { %2460 = vst.msk [vmem:[%s4313_s3 + $0xd0] sm:$0xff] %vm2433_vm0, %v2409_v17  ;;  %v2410_v59 = vmax.f32 %v2360_v0, 0.0  ;;  %v2254_v2 = vmax.f32 %v2204_v34, %v4373_v46  ;;  %v2205_v18 = vmax.f32 %v4374_v56, %v1692_v32  ;;  %v1694_v40 = vpop.f32.mrb[159].mxu0  ;;  %v2094_v61 = vpop.f32.mrb[159].mxu1 }
 0x250   :  { %v4386_v61 = vld [vmem:[#allocation23_spill] sm:$0xff] }
 0x251   :  { %2461 = vst.msk [vmem:[%s4313_s3 + $0xd8] sm:$0xff] %vm2433_vm0, %v2410_v59  ;;  %v2304_v27 = vmax.f32 %v2254_v2, %v2089_v54  ;;  %v2255_v36 = vmax.f32 %v2205_v18, %v4375_v26  ;;  %v4385_v18 = vld [vmem:[#allocation22_spill] sm:$0xff] }
 0x253   :  { %v2361_v60 = vadd.f32 %v3961_v28, %v2304_v27  ;;  %v2305_v49 = vmax.f32 %v2255_v36, %v2092_v39 }
 0x254   :  { %v1697_v3 = vpop.f32.mrb[160].mxu0  ;;  %v2097_v62 = vpop.f32.mrb[160].mxu1 }
 0x255   :  { %v2411_v15 = vmax.f32 %v2361_v60, 0.0  ;;  %v2362_v41 = vadd.f32 %v3961_v28, %v2305_v49  ;;  %v2206_v6 = vmax.f32 %v4376_v43, %v1697_v3  ;;  %v1699_v23 = vpop.f32.mrb[161].mxu0  ;;  %v2099_v16 = vpop.f32.mrb[161].mxu1  ;;  %v4387_v49 = vld [vmem:[#allocation24_spill] sm:$0xff] }
 0x256   :  { %v1700_v4 = vpop.f32.mrb[162].mxu0  ;;  %v2100_v50 = vpop.f32.mrb[162].mxu1  ;;  %v4388_v16 = vld [vmem:[#allocation25_spill] sm:$0xff] }
 0x257   :  { %2462 = vst.msk [vmem:[%s4313_s3 + $0xe0] sm:$0xff] %vm2433_vm0, %v2411_v15  ;;  %v2412_v57 = vmax.f32 %v2362_v41, 0.0  ;;  %v2256_v42 = vmax.f32 %v2206_v6, %v4377_v38  ;;  %v2207_v37 = vmax.f32 %v4378_v25, %v1700_v4  ;;  %v1702_v51 = vpop.f32.mrb[163].mxu0  ;;  %v2102_v58 = vpop.f32.mrb[163].mxu1 }
 0x258   :  { %v4390_v58 = vld [vmem:[#allocation27_spill] sm:$0xff] }
 0x259   :  { %2463 = vst.msk [vmem:[%s4313_s3 + $0xe8] sm:$0xff] %vm2433_vm0, %v2412_v57  ;;  %v2306_v13 = vmax.f32 %v2256_v42, %v2097_v62  ;;  %v2257_v11 = vmax.f32 %v2207_v37, %v4379_v55  ;;  %v4389_v37 = vld [vmem:[#allocation26_spill] sm:$0xff] }
 0x25b   :  { %v2363_v47 = vadd.f32 %v3961_v28, %v2306_v13  ;;  %v2307_v7 = vmax.f32 %v2257_v11, %v2100_v50 }
 0x25c   :  { %v1705_v52 = vpop.f32.mrb[164].mxu0  ;;  %v2105_v24 = vpop.f32.mrb[164].mxu1 }
 0x25d   :  { %v2413_v29 = vmax.f32 %v2363_v47, 0.0  ;;  %v2364_v14 = vadd.f32 %v3961_v28, %v2307_v7  ;;  %v2208_v44 = vmax.f32 %v4380_v21, %v1705_v52  ;;  %v1707_v8 = vpop.f32.mrb[165].mxu0  ;;  %v2107_v19 = vpop.f32.mrb[165].mxu1  ;;  %v4391_v7 = vld [vmem:[#allocation28_spill] sm:$0xff] }
 0x25e   :  { %v1708_v63 = vpop.f32.mrb[166].mxu0  ;;  %v2108_v1 = vpop.f32.mrb[166].mxu1  ;;  %v4392_v19 = vld [vmem:[#allocation29_spill] sm:$0xff] }
 0x25f   :  { %2464 = vst.msk [vmem:[%s4313_s3 + $0xf0] sm:$0xff] %vm2433_vm0, %v2413_v29  ;;  %v2414_v48 = vmax.f32 %v2364_v14, 0.0  ;;  %v2258_v20 = vmax.f32 %v2208_v44, %v4381_v22  ;;  %v2209_v10 = vmax.f32 %v4382_v53, %v1708_v63  ;;  %v1710_v30 = vpop.f32.mrb[167].mxu0  ;;  %v2110_v9 = vpop.f32.mrb[167].mxu1 }
 0x260   :  { %v4394_v9 = vld [vmem:[#allocation31_spill] sm:$0xff] }
 0x261   :  { %2465 = vst.msk [vmem:[%s4313_s3 + $0xf8] sm:$0xff] %vm2433_vm0, %v2414_v48  ;;  %v2308_v33 = vmax.f32 %v2258_v20, %v2105_v24  ;;  %v2259_v12 = vmax.f32 %v2209_v10, %v4383_v31  ;;  %v4393_v10 = vld [vmem:[#allocation30_spill] sm:$0xff] }
 0x263   :  { %v2365_v54 = vadd.f32 %v3961_v28, %v2308_v33  ;;  %v2309_v17 = vmax.f32 %v2259_v12, %v2108_v1 }
 0x264   :  { %v1713_v0 = vpop.f32.mrb[168].mxu0  ;;  %v2113_v35 = vpop.f32.mrb[168].mxu1 }
 0x265   :  { %v2415_v34 = vmax.f32 %v2365_v54, 0.0  ;;  %v2366_v45 = vadd.f32 %v3961_v28, %v2309_v17  ;;  %v2210_v32 = vmax.f32 %v4384_v5, %v1713_v0  ;;  %v1715_v39 = vpop.f32.mrb[169].mxu0  ;;  %v2115_v59 = vpop.f32.mrb[169].mxu1  ;;  %v4395_v17 = vld [vmem:[#allocation32_spill] sm:$0xff] }
 0x266   :  { %v1716_v46 = vpop.f32.mrb[170].mxu0  ;;  %v2116_v2 = vpop.f32.mrb[170].mxu1  ;;  %v4396_v59 = vld [vmem:[#allocation33_spill] sm:$0xff] }
 0x267   :  { %2466 = vst.msk [vmem:[%s4313_s3 + $0x100] sm:$0xff] %vm2433_vm0, %v2415_v34  ;;  %v2416_v56 = vmax.f32 %v2366_v45, 0.0  ;;  %v2260_v40 = vmax.f32 %v2210_v32, %v4385_v18  ;;  %v2211_v27 = vmax.f32 %v4386_v61, %v1716_v46  ;;  %v1718_v26 = vpop.f32.mrb[171].mxu0  ;;  %v2118_v36 = vpop.f32.mrb[171].mxu1 }
 0x268   :  { %v4398_v36 = vld [vmem:[#allocation35_spill] sm:$0xff] }
 0x269   :  { %2467 = vst.msk [vmem:[%s4313_s3 + $0x108] sm:$0xff] %vm2433_vm0, %v2416_v56  ;;  %v2310_v60 = vmax.f32 %v2260_v40, %v2113_v35  ;;  %v2261_v3 = vmax.f32 %v2211_v27, %v4387_v49  ;;  %v4397_v27 = vld [vmem:[#allocation34_spill] sm:$0xff] }
 0x26b   :  { %v2367_v62 = vadd.f32 %v3961_v28, %v2310_v60  ;;  %v2311_v15 = vmax.f32 %v2261_v3, %v2116_v2 }
 0x26c   :  { %v1721_v41 = vpop.f32.mrb[172].mxu0  ;;  %v2121_v43 = vpop.f32.mrb[172].mxu1 }
 0x26d   :  { %v2417_v6 = vmax.f32 %v2367_v62, 0.0  ;;  %v2368_v23 = vadd.f32 %v3961_v28, %v2311_v15  ;;  %v2212_v4 = vmax.f32 %v4388_v16, %v1721_v41  ;;  %v1723_v50 = vpop.f32.mrb[173].mxu0  ;;  %v2123_v57 = vpop.f32.mrb[173].mxu1  ;;  %v4399_v15 = vld [vmem:[#allocation36_spill] sm:$0xff] }
 0x26e   :  { %v1724_v38 = vpop.f32.mrb[174].mxu0  ;;  %v2124_v42 = vpop.f32.mrb[174].mxu1  ;;  %v4400_v57 = vld [vmem:[#allocation37_spill] sm:$0xff] }
 0x26f   :  { %2468 = vst.msk [vmem:[%s4313_s3 + $0x110] sm:$0xff] %vm2433_vm0, %v2417_v6  ;;  %v2418_v25 = vmax.f32 %v2368_v23, 0.0  ;;  %v2262_v51 = vmax.f32 %v2212_v4, %v4389_v37  ;;  %v2213_v13 = vmax.f32 %v4390_v58, %v1724_v38  ;;  %v1726_v55 = vpop.f32.mrb[175].mxu0  ;;  %v2126_v11 = vpop.f32.mrb[175].mxu1 }
 0x270   :  { %v4402_v11 = vld [vmem:[#allocation39_spill] sm:$0xff] }
 0x271   :  { %2469 = vst.msk [vmem:[%s4313_s3 + $0x118] sm:$0xff] %vm2433_vm0, %v2418_v25  ;;  %v2312_v47 = vmax.f32 %v2262_v51, %v2121_v43  ;;  %v2263_v52 = vmax.f32 %v2213_v13, %v4391_v7  ;;  %v4401_v13 = vld [vmem:[#allocation38_spill] sm:$0xff] }
 0x273   :  { %v2369_v24 = vadd.f32 %v3961_v28, %v2312_v47  ;;  %v2313_v29 = vmax.f32 %v2263_v52, %v2124_v42 }
 0x274   :  { %v1729_v14 = vpop.f32.mrb[176].mxu0  ;;  %v2129_v21 = vpop.f32.mrb[176].mxu1 }
 0x275   :  { %v2419_v44 = vmax.f32 %v2369_v24, 0.0  ;;  %v2370_v8 = vadd.f32 %v3961_v28, %v2313_v29  ;;  %v2214_v63 = vmax.f32 %v4392_v19, %v1729_v14  ;;  %v1731_v1 = vpop.f32.mrb[177].mxu0  ;;  %v2131_v48 = vpop.f32.mrb[177].mxu1  ;;  %v4403_v29 = vld [vmem:[#allocation40_spill] sm:$0xff] }
 0x276   :  { %v1732_v22 = vpop.f32.mrb[178].mxu0  ;;  %v2132_v20 = vpop.f32.mrb[178].mxu1  ;;  %v4404_v48 = vld [vmem:[#allocation41_spill] sm:$0xff] }
 0x277   :  { %2470 = vst.msk [vmem:[%s4313_s3 + $0x120] sm:$0xff] %vm2433_vm0, %v2419_v44  ;;  %v2420_v53 = vmax.f32 %v2370_v8, 0.0  ;;  %v2264_v30 = vmax.f32 %v2214_v63, %v4393_v10  ;;  %v2215_v33 = vmax.f32 %v4394_v9, %v1732_v22  ;;  %v1734_v31 = vpop.f32.mrb[179].mxu0  ;;  %v2134_v12 = vpop.f32.mrb[179].mxu1 }
 0x278   :  { %v4406_v12 = vld [vmem:[#allocation43_spill] sm:$0xff] }
 0x279   :  { %2471 = vst.msk [vmem:[%s4313_s3 + $0x128] sm:$0xff] %vm2433_vm0, %v2420_v53  ;;  %v2314_v54 = vmax.f32 %v2264_v30, %v2129_v21  ;;  %v2265_v0 = vmax.f32 %v2215_v33, %v4395_v17  ;;  %v4405_v33 = vld [vmem:[#allocation42_spill] sm:$0xff] }
 0x27b   :  { %v2371_v35 = vadd.f32 %v3961_v28, %v2314_v54  ;;  %v2315_v34 = vmax.f32 %v2265_v0, %v2132_v20 }
 0x27c   :  { %v1737_v45 = vpop.f32.mrb[180].mxu0  ;;  %v2137_v5 = vpop.f32.mrb[180].mxu1 }
 0x27d   :  { %v2421_v32 = vmax.f32 %v2371_v35, 0.0  ;;  %v2372_v39 = vadd.f32 %v3961_v28, %v2315_v34  ;;  %v2216_v46 = vmax.f32 %v4396_v59, %v1737_v45  ;;  %v1739_v2 = vpop.f32.mrb[181].mxu0  ;;  %v2139_v56 = vpop.f32.mrb[181].mxu1  ;;  %v4407_v34 = vld [vmem:[#allocation44_spill] sm:$0xff] }
 0x27e   :  { %v1740_v18 = vpop.f32.mrb[182].mxu0  ;;  %v2140_v40 = vpop.f32.mrb[182].mxu1  ;;  %v4408_v56 = vld [vmem:[#allocation45_spill] sm:$0xff] }
 0x27f   :  { %2472 = vst.msk [vmem:[%s4313_s3 + $0x130] sm:$0xff] %vm2433_vm0, %v2421_v32  ;;  %v2422_v61 = vmax.f32 %v2372_v39, 0.0  ;;  %v2266_v26 = vmax.f32 %v2216_v46, %v4397_v27  ;;  %v2217_v60 = vmax.f32 %v4398_v36, %v1740_v18  ;;  %v1742_v49 = vpop.f32.mrb[183].mxu0  ;;  %v2142_v3 = vpop.f32.mrb[183].mxu1 }
 0x280   :  { %v4410_v3 = vld [vmem:[#allocation47_spill] sm:$0xff] }
 0x281   :  { %2473 = vst.msk [vmem:[%s4313_s3 + $0x138] sm:$0xff] %vm2433_vm0, %v2422_v61  ;;  %v2316_v62 = vmax.f32 %v2266_v26, %v2137_v5  ;;  %v2267_v41 = vmax.f32 %v2217_v60, %v4399_v15  ;;  %v4409_v60 = vld [vmem:[#allocation46_spill] sm:$0xff] }
 0x283   :  { %v2373_v43 = vadd.f32 %v3961_v28, %v2316_v62  ;;  %v2317_v6 = vmax.f32 %v2267_v41, %v2140_v40 }
 0x284   :  { %v1745_v23 = vpop.f32.mrb[184].mxu0  ;;  %v2145_v16 = vpop.f32.mrb[184].mxu1 }
 0x285   :  { %v2423_v4 = vmax.f32 %v2373_v43, 0.0  ;;  %v2374_v50 = vadd.f32 %v3961_v28, %v2317_v6  ;;  %v2218_v38 = vmax.f32 %v4400_v57, %v1745_v23  ;;  %v1747_v42 = vpop.f32.mrb[185].mxu0  ;;  %v2147_v25 = vpop.f32.mrb[185].mxu1  ;;  %v4411_v6 = vld [vmem:[#allocation48_spill] sm:$0xff] }
 0x286   :  { %v1748_v37 = vpop.f32.mrb[186].mxu0  ;;  %v2148_v51 = vpop.f32.mrb[186].mxu1  ;;  %v4412_v25 = vld [vmem:[#allocation49_spill] sm:$0xff] }
 0x287   :  { %2474 = vst.msk [vmem:[%s4313_s3 + $0x140] sm:$0xff] %vm2433_vm0, %v2423_v4  ;;  %v2424_v58 = vmax.f32 %v2374_v50, 0.0  ;;  %v2268_v55 = vmax.f32 %v2218_v38, %v4401_v13  ;;  %v2219_v47 = vmax.f32 %v4402_v11, %v1748_v37  ;;  %v1750_v7 = vpop.f32.mrb[187].mxu0  ;;  %v2150_v52 = vpop.f32.mrb[187].mxu1 }
 0x288   :  { %v4414_v52 = vld [vmem:[#allocation51_spill] sm:$0xff] }
 0x289   :  { %2475 = vst.msk [vmem:[%s4313_s3 + $0x148] sm:$0xff] %vm2433_vm0, %v2424_v58  ;;  %v2318_v24 = vmax.f32 %v2268_v55, %v2145_v16  ;;  %v2269_v14 = vmax.f32 %v2219_v47, %v4403_v29  ;;  %v4413_v47 = vld [vmem:[#allocation50_spill] sm:$0xff] }
 0x28b   :  { %v2375_v21 = vadd.f32 %v3961_v28, %v2318_v24  ;;  %v2319_v44 = vmax.f32 %v2269_v14, %v2148_v51 }
 0x28c   :  { %v1753_v8 = vpop.f32.mrb[188].mxu0  ;;  %v2153_v19 = vpop.f32.mrb[188].mxu1 }
 0x28d   :  { %v2425_v63 = vmax.f32 %v2375_v21, 0.0  ;;  %v2376_v1 = vadd.f32 %v3961_v28, %v2319_v44  ;;  %v2220_v22 = vmax.f32 %v4404_v48, %v1753_v8  ;;  %v1755_v20 = vpop.f32.mrb[189].mxu0  ;;  %v2155_v53 = vpop.f32.mrb[189].mxu1  ;;  %v4415_v44 = vld [vmem:[#allocation52_spill] sm:$0xff] }
 0x28e   :  { %v1756_v10 = vpop.f32.mrb[190].mxu0  ;;  %v2156_v30 = vpop.f32.mrb[190].mxu1 }
 0x28f   :  { %2476 = vst.msk [vmem:[%s4313_s3 + $0x150] sm:$0xff] %vm2433_vm0, %v2425_v63  ;;  %v2426_v9 = vmax.f32 %v2376_v1, 0.0  ;;  %v2270_v31 = vmax.f32 %v2220_v22, %v4405_v33  ;;  %v2221_v54 = vmax.f32 %v4406_v12, %v1756_v10  ;;  %v1758_v17 = vpop.f32.mrb[191].mxu0  ;;  %v2158_v0 = vpop.f32.mrb[191].mxu1 }
 0x291   :  { %2477 = vst.msk [vmem:[%s4313_s3 + $0x158] sm:$0xff] %vm2433_vm0, %v2426_v9  ;;  %v2320_v35 = vmax.f32 %v2270_v31, %v2153_v19  ;;  %v2271_v45 = vmax.f32 %v2221_v54, %v4407_v34 }
 0x293   :  { %v2377_v5 = vadd.f32 %v3961_v28, %v2320_v35  ;;  %v2321_v32 = vmax.f32 %v2271_v45, %v2156_v30 }
 0x294   :  { %v1761_v39 = vpop.f32.mrb[192].mxu0  ;;  %v2161_v59 = vpop.f32.mrb[192].mxu1 }
 0x295   :  { %v2427_v46 = vmax.f32 %v2377_v5, 0.0  ;;  %v2378_v2 = vadd.f32 %v3961_v28, %v2321_v32  ;;  %v2222_v18 = vmax.f32 %v4408_v56, %v1761_v39  ;;  %v1763_v40 = vpop.f32.mrb[193].mxu0  ;;  %v2163_v61 = vpop.f32.mrb[193].mxu1 }
 0x296   :  { %v1764_v27 = vpop.f32.mrb[194].mxu0  ;;  %v2164_v26 = vpop.f32.mrb[194].mxu1 }
 0x297   :  { %2478 = vst.msk [vmem:[%s4313_s3 + $0x160] sm:$0xff] %vm2433_vm0, %v2427_v46  ;;  %v2428_v36 = vmax.f32 %v2378_v2, 0.0  ;;  %v2272_v49 = vmax.f32 %v2222_v18, %v4409_v60  ;;  %v2223_v62 = vmax.f32 %v4410_v3, %v1764_v27  ;;  %v1766_v15 = vpop.f32.mrb[195].mxu0  ;;  %v2166_v41 = vpop.f32.mrb[195].mxu1 }
 0x299   :  { %2479 = vst.msk [vmem:[%s4313_s3 + $0x168] sm:$0xff] %vm2433_vm0, %v2428_v36  ;;  %v2322_v43 = vmax.f32 %v2272_v49, %v2161_v59  ;;  %v2273_v23 = vmax.f32 %v2223_v62, %v4411_v6 }
 0x29b   :  { %v2379_v16 = vadd.f32 %v3961_v28, %v2322_v43  ;;  %v2323_v4 = vmax.f32 %v2273_v23, %v2164_v26 }
 0x29c   :  { %v1769_v50 = vpop.f32.mrb[196].mxu0  ;;  %v2169_v57 = vpop.f32.mrb[196].mxu1 }
 0x29d   :  { %v2429_v38 = vmax.f32 %v2379_v16, 0.0  ;;  %v2380_v42 = vadd.f32 %v3961_v28, %v2323_v4  ;;  %v2224_v37 = vmax.f32 %v4412_v25, %v1769_v50  ;;  %v1771_v51 = vpop.f32.mrb[197].mxu0  ;;  %v2171_v58 = vpop.f32.mrb[197].mxu1 }
 0x29e   :  { %v1772_v13 = vpop.f32.mrb[198].mxu0  ;;  %v2172_v55 = vpop.f32.mrb[198].mxu1 }
 0x29f   :  { %2480 = vst.msk [vmem:[%s4313_s3 + $0x170] sm:$0xff] %vm2433_vm0, %v2429_v38  ;;  %v2430_v11 = vmax.f32 %v2380_v42, 0.0  ;;  %v2274_v7 = vmax.f32 %v2224_v37, %v4413_v47  ;;  %v2225_v24 = vmax.f32 %v4414_v52, %v1772_v13  ;;  %v1774_v29 = vpop.f32.mrb[199].mxu0  ;;  %v2174_v14 = vpop.f32.mrb[199].mxu1 }
 0x2a1   :  { %2481 = vst.msk [vmem:[%s4313_s3 + $0x178] sm:$0xff] %vm2433_vm0, %v2430_v11  ;;  %v2324_v21 = vmax.f32 %v2274_v7, %v2169_v57  ;;  %v2275_v8 = vmax.f32 %v2225_v24, %v4415_v44 }
 0x2a3   :  { %v2381_v19 = vadd.f32 %v3961_v28, %v2324_v21  ;;  %v2325_v63 = vmax.f32 %v2275_v8, %v2172_v55 }
 0x2a5   :  { %v2431_v1 = vmax.f32 %v2381_v19, 0.0  ;;  %v2382_v48 = vadd.f32 %v3961_v28, %v2325_v63 }
 0x2a7   :  { %2482 = vst.msk [vmem:[%s4313_s3 + $0x180] sm:$0xff] %vm2433_vm0, %v2431_v1  ;;  %v2432_v22 = vmax.f32 %v2382_v48, 0.0 }
 0x2a9   :  { %2483 = vst.msk [vmem:[%s4313_s3 + $0x188] sm:$0xff] %vm2433_vm0, %v2432_v22 }

// kernel: net_forward.5
= control target key start
LH: loop header
LB: loop body
LE: loop exit
PB: predicated region body
PF: predicated region fallthrough
CT: control target
= control target key end

     0   :  { %v727_v2 = vmov 0.0|0.0   ;;  %vm91_vm0 = vcmask 130048   ;;  %s1064_s1 = inlined_call_operand.vmem [shape: f32[400,128], index: 1, kind: input, shape index: {}]   ;;  %s1065_s0 = inlined_call_operand.vmem [shape: f32[16,400], index: 0, kind: input, shape index: {}]   ;;  %s1066_s3 = inlined_call_operand.vmem [shape: f32[128,128], index: 3, kind: input, shape index: {}]   ;;  %s1067_s5 = inlined_call_operand.vmem [shape: f32[128,128], index: 5, kind: input, shape index: {}]   ;;  %s1068_s2 = inlined_call_operand.vmem [shape: f32[1,128], index: 2, kind: input, shape index: {}]   ;;  %s1069_s4 = inlined_call_operand.vmem [shape: f32[1,128], index: 4, kind: input, shape index: {}]   ;;  %s1070_s6 = inlined_call_operand.vmem [shape: f32[1,128], index: 6, kind: input, shape index: {}]   ;;  %s1071_s7 = inlined_call_operand.vmem [shape: f32[16,128], index: 7, kind: output, shape index: {}]  }
   0x1   :  { %v50_v0 = vld [vmem:[%s1064_s1 + $0x80] sm:$0xff]  ;;  %v51_v1 = vld [vmem:[%s1064_s1 + $0x88] sm:$0xff]  ;;  %635 = vmatprep.subr.bf16.mxu1 %v727_v2  ;;  %v52_v10 = vld [vmem:[%s1064_s1 + $0x90] sm:$0xff] }
   0x2   :  { %v34_v3 = vld [vmem:[%s1064_s1] sm:$0xff]  ;;  %v603_v4 = vpack.c.bf16 %v51_v1, %v50_v0  ;;  %v35_v5 = vld [vmem:[%s1064_s1 + $0x8] sm:$0xff]  ;;  %v53_v11 = vld [vmem:[%s1064_s1 + $0x98] sm:$0xff] }
   0x3   :  { %v66_v6 = vld [vmem:[%s1064_s1 + $0x100] sm:$0xff]  ;;  %v67_v7 = vld [vmem:[%s1064_s1 + $0x108] sm:$0xff]  ;;  %v605_v8 = vpack.c.bf16 %v35_v5, %v34_v3  ;;  %v36_v12 = vld [vmem:[%s1064_s1 + $0x10] sm:$0xff]  ;;  %v607_v13 = vpack.c.bf16 %v53_v11, %v52_v10 }
   0x4   :  { %v636_v9 = vpack.c.bf16 %v67_v7, %v66_v6  ;;  %604 = vmatprep.subr.bf16.mxu0 %v603_v4  ;;  %v37_v14 = vld [vmem:[%s1064_s1 + $0x18] sm:$0xff]  ;;  %v68_v15 = vld [vmem:[%s1064_s1 + $0x110] sm:$0xff]  ;;  %v54_v19 = vld [vmem:[%s1064_s1 + $0xa0] sm:$0xff] }
   0x5   :  { %v69_v16 = vld [vmem:[%s1064_s1 + $0x118] sm:$0xff]  ;;  %606 = vmatpush3.bf16.msra.mxu0 %v605_v8  ;;  %v609_v17 = vpack.c.bf16 %v37_v14, %v36_v12  ;;  %v55_v20 = vld [vmem:[%s1064_s1 + $0xa8] sm:$0xff]  ;;  %v38_v21 = vld [vmem:[%s1064_s1 + $0x20] sm:$0xff] }
   0x6   :  { %637 = vmatpush1.bf16.msra.mxu1 %v636_v9  ;;  %v639_v18 = vpack.c.bf16 %v69_v16, %v68_v15  ;;  %608 = vmatprep.subr.bf16.mxu0 %v607_v13  ;;  %v611_v22 = vpack.c.bf16 %v55_v20, %v54_v19  ;;  %v39_v23 = vld [vmem:[%s1064_s1 + $0x28] sm:$0xff]  ;;  %v70_v24 = vld [vmem:[%s1064_s1 + $0x120] sm:$0xff]  ;;  %v56_v26 = vld [vmem:[%s1064_s1 + $0xb0] sm:$0xff] }
   0x7   :  { %638 = vmatprep.subr.bf16.mxu1 %v727_v2  ;;  %v71_v25 = vld [vmem:[%s1064_s1 + $0x128] sm:$0xff]  ;;  %v57_v27 = vld [vmem:[%s1064_s1 + $0xb8] sm:$0xff]  ;;  %v613_v28 = vpack.c.bf16 %v39_v23, %v38_v21  ;;  %v40_v30 = vld [vmem:[%s1064_s1 + $0x30] sm:$0xff] }
   0x8   :  { %v642_v29 = vpack.c.bf16 %v71_v25, %v70_v24  ;;  %v615_v31 = vpack.c.bf16 %v57_v27, %v56_v26  ;;  %v41_v32 = vld [vmem:[%s1064_s1 + $0x38] sm:$0xff]  ;;  %v72_v33 = vld [vmem:[%s1064_s1 + $0x130] sm:$0xff]  ;;  %v58_v35 = vld [vmem:[%s1064_s1 + $0xc0] sm:$0xff] }
   0x9   :  { %610 = vmatpush3.bf16.msra.mxu0 %v609_v17  ;;  %v73_v34 = vld [vmem:[%s1064_s1 + $0x138] sm:$0xff]  ;;  %v59_v36 = vld [vmem:[%s1064_s1 + $0xc8] sm:$0xff]  ;;  %v617_v37 = vpack.c.bf16 %v41_v32, %v40_v30  ;;  %v42_v39 = vld [vmem:[%s1064_s1 + $0x40] sm:$0xff] }
   0xa   :  { %640 = vmatpush1.bf16.msra.mxu1 %v639_v18  ;;  %612 = vmatprep.subr.bf16.mxu0 %v611_v22  ;;  %v645_v38 = vpack.c.bf16 %v73_v34, %v72_v33  ;;  %v619_v40 = vpack.c.bf16 %v59_v36, %v58_v35  ;;  %v43_v41 = vld [vmem:[%s1064_s1 + $0x48] sm:$0xff]  ;;  %v74_v42 = vld [vmem:[%s1064_s1 + $0x140] sm:$0xff]  ;;  %v60_v44 = vld [vmem:[%s1064_s1 + $0xd0] sm:$0xff] }
   0xb   :  { %641 = vmatprep.subr.bf16.mxu1 %v727_v2  ;;  %v75_v43 = vld [vmem:[%s1064_s1 + $0x148] sm:$0xff]  ;;  %v61_v45 = vld [vmem:[%s1064_s1 + $0xd8] sm:$0xff]  ;;  %v621_v46 = vpack.c.bf16 %v43_v41, %v42_v39  ;;  %v44_v48 = vld [vmem:[%s1064_s1 + $0x50] sm:$0xff] }
   0xc   :  { %v648_v47 = vpack.c.bf16 %v75_v43, %v74_v42  ;;  %v45_v49 = vld [vmem:[%s1064_s1 + $0x58] sm:$0xff]  ;;  %v27_v50 = vld [vmem:[%s1065_s0 + $0x8] sm:$0xff]  ;;  %v623_v51 = vpack.c.bf16 %v61_v45, %v60_v44  ;;  %v76_v52 = vld [vmem:[%s1064_s1 + $0x150] sm:$0xff] }
   0xd   :  { %614 = vmatpush3.bf16.msra.mxu0 %v613_v28  ;;  %v77_v53 = vld [vmem:[%s1064_s1 + $0x158] sm:$0xff]  ;;  %v62_v55 = vld [vmem:[%s1064_s1 + $0xe0] sm:$0xff]  ;;  %v63_v56 = vld [vmem:[%s1064_s1 + $0xe8] sm:$0xff]  ;;  %162 = vmatprep.mubr.f32.mxu0 %v27_v50  ;;  %v625_v57 = vpack.c.bf16 %v45_v49, %v44_v48 }
   0xe   :  { %643 = vmatpush1.bf16.msra.mxu1 %v642_v29  ;;  %616 = vmatprep.subr.bf16.mxu0 %v615_v31  ;;  %v29_v54 = vld [vmem:[%s1065_s0 + $0x18] sm:$0xff]  ;;  %v651_v58 = vpack.c.bf16 %v77_v53, %v76_v52  ;;  %v46_v59 = vld [vmem:[%s1064_s1 + $0x60] sm:$0xff]  ;;  %v627_v60 = vpack.c.bf16 %v63_v56, %v62_v55  ;;  %v47_v61 = vld [vmem:[%s1064_s1 + $0x68] sm:$0xff] }
   0xf   :  { %644 = vmatprep.subr.bf16.mxu1 %v727_v2  ;;  %455 = vmatprep.mubr.msk.f32.mxu1 %vm91_vm0, %v29_v54  ;;  %v78_v62 = vld [vmem:[%s1064_s1 + $0x160] sm:$0xff]  ;;  %v79_v63 = vld [vmem:[%s1064_s1 + $0x168] sm:$0xff]  ;;  %v64_v0 = vld [vmem:[%s1064_s1 + $0xf0] sm:$0xff]  ;;  %v629_v3 = vpack.c.bf16 %v47_v61, %v46_v59 }
  0x10   :  { %v65_v1 = vld [vmem:[%s1064_s1 + $0xf8] sm:$0xff]  ;;  %v654_v4 = vpack.c.bf16 %v79_v63, %v78_v62  ;;  %v48_v5 = vld [vmem:[%s1064_s1 + $0x70] sm:$0xff]  ;;  %v250_v10 = vld [vmem:[%s1066_s3] sm:$0xff] }
  0x11   :  { %618 = vmatpush3.bf16.msra.mxu0 %v617_v37  ;;  %v631_v6 = vpack.c.bf16 %v65_v1, %v64_v0  ;;  %v49_v7 = vld [vmem:[%s1064_s1 + $0x78] sm:$0xff]  ;;  %v80_v8 = vld [vmem:[%s1064_s1 + $0x170] sm:$0xff]  ;;  %v251_v11 = vld [vmem:[%s1066_s3 + $0x8] sm:$0xff] }
  0x12   :  { %646 = vmatpush1.bf16.msra.mxu1 %v645_v38  ;;  %620 = vmatprep.subr.bf16.mxu0 %v619_v40  ;;  %v81_v9 = vld [vmem:[%s1064_s1 + $0x178] sm:$0xff]  ;;  %v633_v12 = vpack.c.bf16 %v49_v7, %v48_v5  ;;  %v82_v14 = vld [vmem:[%s1064_s1 + $0x180] sm:$0xff]  ;;  %v83_v15 = vld [vmem:[%s1064_s1 + $0x188] sm:$0xff]  ;;  %v662_v16 = vpack.c.bf16 %v251_v11, %v250_v10 }
  0x13   :  { %647 = vmatprep.subr.bf16.mxu1 %v727_v2  ;;  %v657_v13 = vpack.c.bf16 %v81_v9, %v80_v8  ;;  %v252_v17 = vld [vmem:[%s1066_s3 + $0x10] sm:$0xff]  ;;  %v253_v18 = vld [vmem:[%s1066_s3 + $0x18] sm:$0xff]  ;;  %v26_v19 = vld [vmem:[%s1065_s0] sm:$0xff]  ;;  %v660_v20 = vpack.c.bf16 %v83_v15, %v82_v14 }
  0x14   :  { %v31_v21 = vld [vmem:[%s1065_s0 + $0x28] sm:$0xff]  ;;  %v666_v22 = vpack.c.bf16 %v253_v18, %v252_v17  ;;  %v254_v23 = vld [vmem:[%s1066_s3 + $0x20] sm:$0xff]  ;;  %v28_v25 = vld [vmem:[%s1065_s0 + $0x10] sm:$0xff] }
  0x15   :  { %622 = vmatpush3.bf16.msra.mxu0 %v621_v46  ;;  %v255_v24 = vld [vmem:[%s1066_s3 + $0x28] sm:$0xff]  ;;  %v33_v26 = vld [vmem:[%s1065_s0 + $0x38] sm:$0xff]  ;;  %v256_v28 = vld [vmem:[%s1066_s3 + $0x30] sm:$0xff] }
  0x16   :  { %649 = vmatpush1.bf16.msra.mxu1 %v648_v47  ;;  %624 = vmatprep.subr.bf16.mxu0 %v623_v51  ;;  %v670_v27 = vpack.c.bf16 %v255_v24, %v254_v23  ;;  %v257_v29 = vld [vmem:[%s1066_s3 + $0x38] sm:$0xff]  ;;  %v32_v30 = vld [vmem:[%s1065_s0 + $0x30] sm:$0xff]  ;;  %v258_v32 = vld [vmem:[%s1066_s3 + $0x40] sm:$0xff] }
  0x17   :  { %650 = vmatprep.subr.bf16.mxu1 %v727_v2  ;;  %v674_v31 = vpack.c.bf16 %v257_v29, %v256_v28  ;;  %v259_v33 = vld [vmem:[%s1066_s3 + $0x48] sm:$0xff]  ;;  %v260_v35 = vld [vmem:[%s1066_s3 + $0x50] sm:$0xff]  ;;  %v261_v36 = vld [vmem:[%s1066_s3 + $0x58] sm:$0xff] }
  0x18   :  { %v678_v34 = vpack.c.bf16 %v259_v33, %v258_v32  ;;  %v682_v37 = vpack.c.bf16 %v261_v36, %v260_v35  ;;  %v262_v38 = vld [vmem:[%s1066_s3 + $0x60] sm:$0xff]  ;;  %v263_v39 = vld [vmem:[%s1066_s3 + $0x68] sm:$0xff]  ;;  %v264_v41 = vld [vmem:[%s1066_s3 + $0x70] sm:$0xff] }
  0x19   :  { %626 = vmatpush3.bf16.msra.mxu0 %v625_v57  ;;  %v686_v40 = vpack.c.bf16 %v263_v39, %v262_v38  ;;  %v265_v42 = vld [vmem:[%s1066_s3 + $0x78] sm:$0xff]  ;;  %v350_v44 = vld [vmem:[%s1067_s5] sm:$0xff]  ;;  %v351_v45 = vld [vmem:[%s1067_s5 + $0x8] sm:$0xff] }
  0x1a   :  { %652 = vmatpush1.bf16.msra.mxu1 %v651_v58  ;;  %628 = vmatprep.subr.bf16.mxu0 %v627_v60  ;;  %v690_v43 = vpack.c.bf16 %v265_v42, %v264_v41  ;;  %v352_v46 = vld [vmem:[%s1067_s5 + $0x10] sm:$0xff]  ;;  %v694_v47 = vpack.c.bf16 %v351_v45, %v350_v44  ;;  %v353_v48 = vld [vmem:[%s1067_s5 + $0x18] sm:$0xff]  ;;  %v354_v50 = vld [vmem:[%s1067_s5 + $0x20] sm:$0xff] }
  0x1b   :  { %653 = vmatprep.subr.bf16.mxu1 %v727_v2  ;;  %v698_v49 = vpack.c.bf16 %v353_v48, %v352_v46  ;;  %v355_v51 = vld [vmem:[%s1067_s5 + $0x28] sm:$0xff]  ;;  %v356_v53 = vld [vmem:[%s1067_s5 + $0x30] sm:$0xff]  ;;  %v357_v54 = vld [vmem:[%s1067_s5 + $0x38] sm:$0xff] }
  0x1c   :  { %v702_v52 = vpack.c.bf16 %v355_v51, %v354_v50  ;;  %v706_v55 = vpack.c.bf16 %v357_v54, %v356_v53  ;;  %v358_v56 = vld [vmem:[%s1067_s5 + $0x40] sm:$0xff]  ;;  %v359_v57 = vld [vmem:[%s1067_s5 + $0x48] sm:$0xff]  ;;  %v360_v59 = vld [vmem:[%s1067_s5 + $0x50] sm:$0xff] }
  0x1d   :  { %630 = vmatpush3.bf16.msra.mxu0 %v629_v3  ;;  %v710_v58 = vpack.c.bf16 %v359_v57, %v358_v56  ;;  %v361_v60 = vld [vmem:[%s1067_s5 + $0x58] sm:$0xff]  ;;  %v362_v62 = vld [vmem:[%s1067_s5 + $0x60] sm:$0xff]  ;;  %v363_v63 = vld [vmem:[%s1067_s5 + $0x68] sm:$0xff] }
  0x1e   :  { %655 = vmatpush1.bf16.msra.mxu1 %v654_v4  ;;  %632 = vmatprep.subr.bf16.mxu0 %v631_v6  ;;  %v714_v61 = vpack.c.bf16 %v361_v60, %v360_v59  ;;  %v718_v0 = vpack.c.bf16 %v363_v63, %v362_v62  ;;  %v454_v4 = vld [vmem:[%s1068_s2] ss:$0 sm:$0xff] }
  0x1f   :  { %656 = vmatprep.subr.bf16.mxu1 %v727_v2  ;;  %v458_v28 = vld [vmem:[%s1070_s6] ss:$0 sm:$0xff] }
  0x21   :  { %634 = vmatpush3.bf16.msra.mxu0 %v633_v12 }
  0x22   :  { %658 = vmatpush1.bf16.msra.mxu1 %v657_v13  ;;  %663 = vmatprep.subr.bf16.mxu0 %v662_v16 }
  0x23   :  { %659 = vmatprep.subr.bf16.mxu1 %v727_v2  ;;  %v30_v2 = vld [vmem:[%s1065_s0 + $0x20] sm:$0xff] }
  0x24   :  { %163 = vmatmul.mubr.f32.vlgmr.msra.gmra.mrb[0].mxu0 %v26_v19  ;;  %v364_v19 = vld [vmem:[%s1067_s5 + $0x70] sm:$0xff] }
  0x25   :  { %167 = vmatprep.mubr.f32.mxu0 %v31_v21  ;;  %665 = vmatpush3.bf16.msra.mxu0 %v662_v16 }
  0x26   :  { %661 = vmatpush1.bf16.msra.mxu1 %v660_v20  ;;  %667 = vmatprep.subr.bf16.mxu0 %v666_v22  ;;  %v365_v20 = vld [vmem:[%s1067_s5 + $0x78] sm:$0xff] }
  0x27   :  { %695 = vmatprep.subr.bf16.mxu1 %v694_v47  ;;  %v722_v21 = vpack.c.bf16 %v365_v20, %v364_v19 }
  0x28   :  { %168 = vmatmul.mubr.f32.gmra.mrb[2].mxu0 %v30_v2 }
  0x29   :  { %238 = vmatmul.mubr.f32.vlgmr.msra.gmra.mrb[0].mxu1 %v28_v25  ;;  %669 = vmatpush3.bf16.msra.mxu0 %v666_v22  ;;  %v457_v22 = vld [vmem:[%s1069_s4] ss:$0 sm:$0xff] }
  0x2a   :  { %456 = vmatprep.mubr.msk.f32.mxu1 %vm91_vm0, %v33_v26  ;;  %671 = vmatprep.subr.bf16.mxu0 %v670_v27 }
  0x2b   :  { %697 = vmatpush3.bf16.msra.mxu1 %v694_v47 }
  0x2c   :  { %699 = vmatprep.subr.bf16.mxu1 %v698_v49 }
  0x2d   :  { %243 = vmatmul.mubr.f32.gmra.mrb[2].mxu1 %v32_v30  ;;  %673 = vmatpush3.bf16.msra.mxu0 %v670_v27 }
  0x2e   :  { %675 = vmatprep.subr.bf16.mxu0 %v674_v31 }
  0x2f   :  { %701 = vmatpush3.bf16.msra.mxu1 %v698_v49 }
  0x30   :  { %703 = vmatprep.subr.bf16.mxu1 %v702_v52 }
  0x31   :  { %677 = vmatpush3.bf16.msra.mxu0 %v674_v31 }
  0x32   :  { %679 = vmatprep.subr.bf16.mxu0 %v678_v34 }
  0x33   :  { %705 = vmatpush3.bf16.msra.mxu1 %v702_v52 }
  0x34   :  { %707 = vmatprep.subr.bf16.mxu1 %v706_v55 }
  0x35   :  { %681 = vmatpush3.bf16.msra.mxu0 %v678_v34 }
  0x36   :  { %683 = vmatprep.subr.bf16.mxu0 %v682_v37 }
  0x37   :  { %709 = vmatpush3.bf16.msra.mxu1 %v706_v55 }
  0x38   :  { %711 = vmatprep.subr.bf16.mxu1 %v710_v58 }
  0x39   :  { %685 = vmatpush3.bf16.msra.mxu0 %v682_v37 }
  0x3a   :  { %687 = vmatprep.subr.bf16.mxu0 %v686_v40 }
  0x3b   :  { %713 = vmatpush3.bf16.msra.mxu1 %v710_v58 }
  0x3c   :  { %715 = vmatprep.subr.bf16.mxu1 %v714_v61 }
  0x3d   :  { %689 = vmatpush3.bf16.msra.mxu0 %v686_v40 }
  0x3e   :  { %691 = vmatprep.subr.bf16.mxu0 %v690_v43 }
  0x3f   :  { %717 = vmatpush3.bf16.msra.mxu1 %v714_v61 }
  0x40   :  { %719 = vmatprep.subr.bf16.mxu1 %v718_v0 }
  0x41   :  { %693 = vmatpush3.bf16.msra.mxu0 %v690_v43 }
  0x43   :  { %721 = vmatpush3.bf16.msra.mxu1 %v718_v0 }
  0x44   :  { %723 = vmatprep.subr.bf16.mxu1 %v722_v21 }
  0x47   :  { %725 = vmatpush3.bf16.msra.mxu1 %v722_v21 }
  0xf7   :  { %v491_v1 = vpop.f32.mrb[0].mxu0 }
  0xf8   :  { %v492_v3 = vpop.f32.mrb[1].mxu0 }
  0xf9   :  { %v493_v5 = vadd.f32 %v492_v3, %v491_v1 }
  0xfb   :  { %v494_v6 = vpop.f32.mrb[2].mxu0  ;;  %v165_v7 = vadd.f32 %v493_v5, %v454_v4 }
  0xfc   :  { %v239_v8 = vpop.f32.mrb[0].mxu1  ;;  %v495_v9 = vpop.f32.mrb[3].mxu0 }
  0xfd   :  { %v241_v10 = vpop.f32.mrb[1].mxu1  ;;  %v240_v11 = vadd.f32 %v239_v8, %v165_v7  ;;  %v496_v12 = vadd.f32 %v495_v9, %v494_v6 }
  0xff   :  { %v248_v13 = vmax.f32 %v240_v11, 0.0  ;;  %v170_v14 = vadd.f32 %v496_v12, %v454_v4 }
 0x100   :  { %v244_v15 = vpop.f32.mrb[2].mxu1 }
 0x101   :  { %v246_v16 = vpop.f32.mrb[3].mxu1  ;;  %v245_v17 = vadd.f32 %v244_v15, %v170_v14  ;;  %565 = vmatprep.mubr.f32.mxu0 %v248_v13 }
 0x103   :  { %v249_v18 = vmax.f32 %v245_v17, 0.0 }
 0x105   :  { %566 = vmatmul.mubr.f32.vlgmr.msra.gmra.mrb[4].mxu0 %v249_v18 }
 0x1d8   :  { %v567_v23 = vpop.f32.mrb[4].mxu0 }
 0x1d9   :  { %v345_v24 = vadd.f32 %v567_v23, %v457_v22  ;;  %v339_v2 = vpop.f32.mrb[5].mxu0 }
 0x1da   :  { %v340_v25 = vadd.f32 %v457_v22, %v339_v2 }
 0x1db   :  { %v349_v27 = vmax.f32 %v345_v24, 0.0 }
 0x1dc   :  { %v348_v26 = vmax.f32 %v340_v25, 0.0 }
 0x1de   :  { %600 = vmatprep.mubr.f32.mxu1 %v348_v26 }
 0x1df   :  { %601 = vmatmul.mubr.f32.vlgmr.msra.gmra.mrb[4].mxu1 %v349_v27 }
 0x2b2   :  { %v602_v29 = vpop.f32.mrb[4].mxu1 }
 0x2b3   :  { %v445_v30 = vadd.f32 %v602_v29, %v458_v28  ;;  %v439_v31 = vpop.f32.mrb[5].mxu1 }
 0x2b4   :  { %v440_v32 = vadd.f32 %v458_v28, %v439_v31 }
 0x2b5   :  { %449 = vst [vmem:[%s1071_s7 + $0x8] sm:$0xff] %v445_v30 }
 0x2b6   :  { %448 = vst [vmem:[%s1071_s7] sm:$0xff] %v440_v32 }

</bundles_post_ra>
